<compile_context>
chip_gen: v6e
topology: v6e:2x2x1
jax: 0.10.0
libtpu: 0.0.40
codegen_flags: <defaults>
</compile_context>

<pallas_src>
import jax
import jax.numpy as jnp
import numpy as np
from jax.experimental import pallas as pl
from jax.experimental.pallas import tpu as pltpu

# ---------------- model hyper-parameters ----------------
EMBEDDING_DIM = 128
HEAD_NUM = 4
QKV_DIM = 32                      # head_num * qkv_dim == embedding_dim
FF_HIDDEN_DIM = 256
ENCODER_LAYER_NUM = 2
EPS = 1e-5                        # InstanceNorm1d default eps

# MXU operand dtype for the big flattened matmuls only (QKV proj, combine, FF).
# Attention-internal math stays f32.  Set to jnp.float32 for exact-f32 math.
MATMUL_DTYPE = jnp.bfloat16

# Instances per grid step (upper bound).  The wrapper clamps it so the grid has
# at least 2 parallel steps whenever B >= 2 (keeps both v7x TensorCores busy).
BLOCK_B = 64


# ---------------- shared instance-norm helper ----------------
def _instance_norm(a, w, b):
    # a: (B, N, E).  InstanceNorm1d: normalize over the sequence axis per
    # channel (biased variance, eps=1e-5), then per-channel affine.
    mean = jnp.mean(a, axis=1, keepdims=True)
    var = jnp.mean((a - mean) ** 2, axis=1, keepdims=True)
    return (a - mean) * jax.lax.rsqrt(var + EPS) * w + b


# ---------------- fused Pallas kernel ----------------
def fused_encoder_kernel(feats_ref, we_ref, be_ref,
                         wqkv_ref, wc_ref, bc_ref, n1w_ref, n1b_ref,
                         w1_ref, b1_ref, w2_ref, b2_ref, n2w_ref, n2b_ref,
                         out_ref):
    BB, N, E = out_ref.shape
    M = BB * N
    H, D = HEAD_NUM, QKV_DIM
    f32 = jnp.float32
    scale = 1.0 / float(np.sqrt(D))

    # ---- fused depot/node embedding: x = bias + feats @ We (broadcast MACs) ----
    feats = feats_ref[...]                               # (BB, N, 6) f32
    we = we_ref[...]                                     # (6, E)     f32
    x = be_ref[...] + feats[:, :, 0:1] * we[0:1, :]
    for j in range(1, 6):
        x = x + feats[:, :, j:j + 1] * we[j:j + 1, :]    # (BB, N, E) f32

    # ---- both encoder layers fused; all weights VMEM-resident ----
    for l in range(ENCODER_LAYER_NUM):                   # static unroll (L=2)
        # hoist per-layer weights / biases / norm params once
        wqkv = wqkv_ref[l]                               # (E, 3E) bf16
        wc = wc_ref[l]                                   # (E, E)  bf16
        bc = bc_ref[l]                                   # (1, E)  f32
        n1w, n1b = n1w_ref[l], n1b_ref[l]
        w1, b1 = w1_ref[l], b1_ref[l]
        w2, b2 = w2_ref[l], b2_ref[l]
        n2w, n2b = n2w_ref[l], n2b_ref[l]

        x_flat = x.reshape(M, E)

        # fused Q|K|V projection: one (M,128)@(128,384) bf16 MXU call, f32 acc
        qkv = jnp.dot(x_flat.astype(MATMUL_DTYPE), wqkv,
                      preferred_element_type=f32).reshape(BB, N, 3 * E)

        # split heads into a merged (H*BB) batch axis (head-major ordering);
        # all attention-internal math stays f32 (no bf16 relayouts on N=24).
        def heads(off):
            return jnp.concatenate(
                [qkv[:, :, off + h * D: off + (h + 1) * D] for h in range(H)],
                axis=0)                                  # (H*BB, N, D)
        qh, kh, vh = heads(0), heads(E), heads(2 * E)

        s = jnp.einsum("xnd,xmd->xnm", qh, kh,
                       preferred_element_type=f32) * scale        # (H*BB, N, N)
        s = s - jnp.max(s, axis=-1, keepdims=True)
        ex = jnp.exp(s)
        p = ex * pl.reciprocal(jnp.sum(ex, axis=-1, keepdims=True), approx=True)
        oh = jnp.einsum("xnm,xmd->xnd", p, vh,
                        preferred_element_type=f32)               # (H*BB, N, D)

        # merge heads back along lanes -> (M, 128); single K=128 combine matmul
        oc = jnp.concatenate([oh[h * BB:(h + 1) * BB] for h in range(H)],
                             axis=-1)                             # (BB, N, E)
        mh = jnp.dot(oc.reshape(M, E).astype(MATMUL_DTYPE), wc,
                     preferred_element_type=f32) + bc             # (M, E)

        out1 = _instance_norm(x + mh.reshape(BB, N, E), n1w, n1b)

        h1 = jnp.maximum(
            jnp.dot(out1.reshape(M, E).astype(MATMUL_DTYPE), w1,
                    preferred_element_type=f32) + b1, 0.0)        # (M, F)
        ff = jnp.dot(h1.astype(MATMUL_DTYPE), w2,
                     preferred_element_type=f32) + b2             # (M, E)

        x = _instance_norm(out1 + ff.reshape(BB, N, E), n2w, n2b)

    out_ref[...] = x


# ---------------- wrapper ----------------
def _cost_estimate(B, N):
    E, F, H, D, L = EMBEDDING_DIM, FF_HIDDEN_DIM, HEAD_NUM, QKV_DIM, ENCODER_LAYER_NUM
    M = B * N
    flops = 2 * M * 6 * E                                      # fused embedding
    flops += L * (2 * M * E * 3 * E                            # QKV projection
                  + 4 * B * H * N * N * D                      # scores + attn@v
                  + 2 * M * E * E                              # combine
                  + 4 * M * E * F                              # feed-forward
                  + 12 * M * E)                                # norms / residuals
    transcendentals = L * (B * H * N * N + 4 * B * E)          # exp + rsqrt/recip
    itemsize = jnp.dtype(MATMUL_DTYPE).itemsize
    weight_bytes = (L * (E * 3 * E + E * E + 2 * E * F) * itemsize
                    + (L * (6 * E + F) + 7 * E) * 4)
    act_bytes = (B * N * 6 + M * E) * 4
    return pl.CostEstimate(flops=int(flops),
                           transcendentals=int(transcendentals),
                           bytes_accessed=int(weight_bytes + act_bytes))


def cvrp_encoder_forward(depot_xy, node_xy_demand, params, block_b=BLOCK_B):
    E, F, L = EMBEDDING_DIM, FF_HIDDEN_DIM, ENCODER_LAYER_NUM
    B = depot_xy.shape[0]
    Nn = node_xy_demand.shape[1]
    N = 1 + Nn

    # ---- pack depot+node inputs into one dense (B, N, 6) feature tensor ----
    # depot row: [x, y, 0, 0, 0, 1]; node rows: [0, 0, x, y, demand, 0]
    f32z = lambda *s: jnp.zeros(s, jnp.float32)
    depot_feat = jnp.concatenate(
        [depot_xy, f32z(B, 1, 3), jnp.ones((B, 1, 1), jnp.float32)], axis=-1)
    node_feat = jnp.concatenate(
        [f32z(B, Nn, 2), node_xy_demand, f32z(B, Nn, 1)], axis=-1)
    feats = jnp.concatenate([depot_feat, node_feat], axis=1)           # (B, N, 6)

    # fused embedding weight: rows = [Wd ; Wn ; (bd - bn)], shared bias = bn
    we = jnp.concatenate(
        [params["Wd"], params["Wn"], params["bd"] - params["bn"]], axis=0)  # (6, E)
    be = params["bn"]                                                  # (1, E)

    # ---- stacked per-layer weights, MXU-friendly layouts ----
    layers = params["layers"]
    wqkv = jnp.stack([jnp.concatenate([lp["Wq"], lp["Wk"], lp["Wv"]], axis=1)
                      for lp in layers]).astype(MATMUL_DTYPE)          # (L, E, 3E)
    wc = jnp.stack([lp["Wc"] for lp in layers]).astype(MATMUL_DTYPE)   # (L, E, E)
    w1 = jnp.stack([lp["W1"] for lp in layers]).astype(MATMUL_DTYPE)   # (L, E, F)
    w2 = jnp.stack([lp["W2"] for lp in layers]).astype(MATMUL_DTYPE)   # (L, F, E)
    bc = jnp.stack([lp["bc"] for lp in layers])                        # (L, 1, E)
    b1 = jnp.stack([lp["b1"] for lp in layers])                        # (L, 1, F)
    b2 = jnp.stack([lp["b2"] for lp in layers])                        # (L, 1, E)
    n1w = jnp.stack([lp["n1w"] for lp in layers])
    n1b = jnp.stack([lp["n1b"] for lp in layers])
    n2w = jnp.stack([lp["n2w"] for lp in layers])
    n2b = jnp.stack([lp["n2b"] for lp in layers])

    # ---- batch blocking: guarantee >= 2 grid steps whenever B >= 2 so both
    # v7x TensorCores get work; zero-padding extra rows is numerically safe ----
    BB = max(1, min(block_b, (B + 1) // 2))
    B_pad = ((B + BB - 1) // BB) * BB
    if B_pad != B:
        feats = jnp.pad(feats, ((0, B_pad - B), (0, 0), (0, 0)))

    const = lambda shape: pl.BlockSpec(shape, lambda i: (0,) * len(shape))

    out = pl.pallas_call(
        fused_encoder_kernel,
        out_shape=jax.ShapeDtypeStruct((B_pad, N, E), jnp.float32),
        grid=(B_pad // BB,),
        in_specs=[
            pl.BlockSpec((BB, N, 6), lambda i: (i, 0, 0)),     # packed features
            const((6, E)), const((1, E)),                      # fused embed W, b
            const((L, E, 3 * E)),                              # Wq|Wk|Wv
            const((L, E, E)), const((L, 1, E)),                # Wc, bc
            const((L, 1, E)), const((L, 1, E)),                # norm1 w, b
            const((L, E, F)), const((L, 1, F)),                # W1, b1
            const((L, F, E)), const((L, 1, E)),                # W2, b2
            const((L, 1, E)), const((L, 1, E)),                # norm2 w, b
        ],
        out_specs=pl.BlockSpec((BB, N, E), lambda i: (i, 0, 0)),
        compiler_params=pltpu.CompilerParams(
            dimension_semantics=("parallel",),
            vmem_limit_bytes=48 * 1024 * 1024),
        cost_estimate=_cost_estimate(B_pad, N),
    )(feats, we, be, wqkv, wc, bc, n1w, n1b, w1, b1, w2, b2, n2w, n2b)
    return out[:B]


# ---------------- pure-JAX reference (correctness check) ----------------
def ref_forward(depot_xy, node_xy_demand, params, matmul_dtype=MATMUL_DTYPE):
    """Faithful translation of CVRP_Encoder.forward.  Mirrors the kernel's
    precision choices: the four big matmuls use `matmul_dtype` operands with
    f32 accumulation, attention-internal math stays f32."""
    f32 = jnp.float32
    cast = lambda a: a.astype(matmul_dtype)
    ed = depot_xy @ params["Wd"] + params["bd"][0]
    en = node_xy_demand @ params["Wn"] + params["bn"][0]
    x = jnp.concatenate([ed, en], axis=1)                      # (B, N, E)
    B, N, E = x.shape
    H, D = HEAD_NUM, QKV_DIM
    scale = 1.0 / float(np.sqrt(D))
    for lp in params["layers"]:
        q = jnp.dot(cast(x), cast(lp["Wq"]), preferred_element_type=f32)
        k = jnp.dot(cast(x), cast(lp["Wk"]), preferred_element_type=f32)
        v = jnp.dot(cast(x), cast(lp["Wv"]), preferred_element_type=f32)
        q = q.reshape(B, N, H, D).transpose(0, 2, 1, 3)
        k = k.reshape(B, N, H, D).transpose(0, 2, 1, 3)
        v = v.reshape(B, N, H, D).transpose(0, 2, 1, 3)
        score = jnp.einsum("bhnd,bhmd->bhnm", q, k,
                           preferred_element_type=f32) * scale
        attn = jax.nn.softmax(score, axis=-1)
        out = jnp.einsum("bhnm,bhmd->bhnd", attn, v, preferred_element_type=f32)
        out_concat = out.transpose(0, 2, 1, 3).reshape(B, N, H * D)
        mh = jnp.dot(cast(out_concat), cast(lp["Wc"]),
                     preferred_element_type=f32) + lp["bc"][0]
        out1 = _instance_norm(x + mh, lp["n1w"], lp["n1b"])
        h1 = jnp.maximum(
            jnp.dot(cast(out1), cast(lp["W1"]),
                    preferred_element_type=f32) + lp["b1"][0], 0.0)
        ff = jnp.dot(cast(h1), cast(lp["W2"]),
                     preferred_element_type=f32) + lp["b2"][0]
        x = _instance_norm(out1 + ff, lp["n2w"], lp["n2b"])
    return x


# ---------------- deterministic parameter init ----------------
def _uniform(key, shape, fan_in):
    bound = 1.0 / np.sqrt(fan_in)
    return jax.random.uniform(key, shape, jnp.float32, -bound, bound)


def init_params(key):
    E, HD, F = EMBEDDING_DIM, HEAD_NUM * QKV_DIM, FF_HIDDEN_DIM
    keys = jax.random.split(key, 4 + 10 * ENCODER_LAYER_NUM)
    ki = iter(range(len(keys)))
    params = {
        "Wd": _uniform(keys[next(ki)], (2, E), 2),
        "bd": _uniform(keys[next(ki)], (1, E), 2),
        "Wn": _uniform(keys[next(ki)], (3, E), 3),
        "bn": _uniform(keys[next(ki)], (1, E), 3),
        "layers": [],
    }
    for _ in range(ENCODER_LAYER_NUM):
        lp = {
            "Wq": _uniform(keys[next(ki)], (E, HD), E),
            "Wk": _uniform(keys[next(ki)], (E, HD), E),
            "Wv": _uniform(keys[next(ki)], (E, HD), E),
            "Wc": _uniform(keys[next(ki)], (HD, E), HD),
            "bc": _uniform(keys[next(ki)], (1, E), HD),
            "n1w": jnp.ones((1, E), jnp.float32),
            "n1b": jnp.zeros((1, E), jnp.float32),
            "W1": _uniform(keys[next(ki)], (E, F), E),
            "b1": _uniform(keys[next(ki)], (1, F), E),
            "W2": _uniform(keys[next(ki)], (F, E), F),
            "b2": _uniform(keys[next(ki)], (1, E), F),
            "n2w": jnp.ones((1, E), jnp.float32),
            "n2b": jnp.zeros((1, E), jnp.float32),
        }
        params["layers"].append(lp)
    return params


# ---------------- main ----------------
if __name__ == "__main__":
    key = jax.random.PRNGKey(0)
    k_params, k_depot, k_node = jax.random.split(key, 3)

    B = 2
    NUM_NODES = 23                 # seq = 1 depot + 23 nodes = 24
    params = init_params(k_params)

    depot_xy = jax.random.uniform(k_depot, (B, 1, 2), jnp.float32)
    node_xy_demand = jax.random.uniform(k_node, (B, NUM_NODES, 3), jnp.float32)

    out = jax.block_until_ready(
        cvrp_encoder_forward(depot_xy, node_xy_demand, params))
    ref = jax.block_until_ready(
        ref_forward(depot_xy, node_xy_demand, params))

    # Tolerance covers the approx (EUP) softmax reciprocal and the bf16-operand
    # matmuls interacting with instance-norm rescaling; structural errors
    # would be O(1) on these unit-variance outputs.
    np.testing.assert_allclose(np.asarray(out), np.asarray(ref),
                               rtol=2e-2, atol=2e-2)

    print("KERNEL_OK")
</pallas_src>

<mosaic_0001>
module attributes {stable_mosaic.version = 11 : i64} {
  func.func @fused_encoder_kernel(%arg0: i32, %arg1: memref<1x24x6xf32, #tpu.memory_space<vmem>>, %arg2: memref<6x128xf32, #tpu.memory_space<vmem>>, %arg3: memref<1x128xf32, #tpu.memory_space<vmem>>, %arg4: memref<2x128x384xbf16, #tpu.memory_space<vmem>>, %arg5: memref<2x128x128xbf16, #tpu.memory_space<vmem>>, %arg6: memref<2x1x128xf32, #tpu.memory_space<vmem>>, %arg7: memref<2x1x128xf32, #tpu.memory_space<vmem>>, %arg8: memref<2x1x128xf32, #tpu.memory_space<vmem>>, %arg9: memref<2x128x256xbf16, #tpu.memory_space<vmem>>, %arg10: memref<2x1x256xf32, #tpu.memory_space<vmem>>, %arg11: memref<2x256x128xbf16, #tpu.memory_space<vmem>>, %arg12: memref<2x1x128xf32, #tpu.memory_space<vmem>>, %arg13: memref<2x1x128xf32, #tpu.memory_space<vmem>>, %arg14: memref<2x1x128xf32, #tpu.memory_space<vmem>>, %arg15: memref<1x24x128xf32, #tpu.memory_space<vmem>>) attributes {dimension_semantics = [#tpu.dimension_semantics<parallel>], iteration_bounds = array<i64: 2>, scalar_prefetch = 0 : i64, scratch_operands = 0 : i64, tpu.core_type = #tpu.core_type<tc>, window_params = [{transform_indices = @transform_0, window_bounds = array<i64: 1, 24, 6>}, {pipeline_mode = #tpu.pipeline_mode<synchronous>, transform_indices = @transform_1, window_bounds = array<i64: 6, 128>}, {pipeline_mode = #tpu.pipeline_mode<synchronous>, transform_indices = @transform_2, window_bounds = array<i64: 1, 128>}, {pipeline_mode = #tpu.pipeline_mode<synchronous>, transform_indices = @transform_3, window_bounds = array<i64: 2, 128, 384>}, {pipeline_mode = #tpu.pipeline_mode<synchronous>, transform_indices = @transform_4, window_bounds = array<i64: 2, 128, 128>}, {pipeline_mode = #tpu.pipeline_mode<synchronous>, transform_indices = @transform_5, window_bounds = array<i64: 2, 1, 128>}, {pipeline_mode = #tpu.pipeline_mode<synchronous>, transform_indices = @transform_6, window_bounds = array<i64: 2, 1, 128>}, {pipeline_mode = #tpu.pipeline_mode<synchronous>, transform_indices = @transform_7, window_bounds = array<i64: 2, 1, 128>}, {pipeline_mode = #tpu.pipeline_mode<synchronous>, transform_indices = @transform_8, window_bounds = array<i64: 2, 128, 256>}, {pipeline_mode = #tpu.pipeline_mode<synchronous>, transform_indices = @transform_9, window_bounds = array<i64: 2, 1, 256>}, {pipeline_mode = #tpu.pipeline_mode<synchronous>, transform_indices = @transform_10, window_bounds = array<i64: 2, 256, 128>}, {pipeline_mode = #tpu.pipeline_mode<synchronous>, transform_indices = @transform_11, window_bounds = array<i64: 2, 1, 128>}, {pipeline_mode = #tpu.pipeline_mode<synchronous>, transform_indices = @transform_12, window_bounds = array<i64: 2, 1, 128>}, {pipeline_mode = #tpu.pipeline_mode<synchronous>, transform_indices = @transform_13, window_bounds = array<i64: 2, 1, 128>}, {transform_indices = @transform_14, window_bounds = array<i64: 1, 24, 128>}]} {
    %c0 = arith.constant 0 : index
    %c0_0 = arith.constant 0 : index
    %c0_1 = arith.constant 0 : index
    %0 = vector.load %arg1[%c0, %c0_0, %c0_1] : memref<1x24x6xf32, #tpu.memory_space<vmem>>, vector<1x24x6xf32>
    %c0_2 = arith.constant 0 : index
    %c0_3 = arith.constant 0 : index
    %1 = vector.load %arg2[%c0_2, %c0_3] : memref<6x128xf32, #tpu.memory_space<vmem>>, vector<6x128xf32>
    %c0_4 = arith.constant 0 : index
    %c0_5 = arith.constant 0 : index
    %2 = vector.load %arg3[%c0_4, %c0_5] : memref<1x128xf32, #tpu.memory_space<vmem>>, vector<1x128xf32>
    %3 = vector.extract_strided_slice %0 {offsets = [0, 0, 0], sizes = [1, 24, 1], strides = [1, 1, 1]} : vector<1x24x6xf32> to vector<1x24x1xf32>
    %4 = vector.extract_strided_slice %1 {offsets = [0, 0], sizes = [1, 128], strides = [1, 1]} : vector<6x128xf32> to vector<1x128xf32>
    %5 = vector.shape_cast %4 : vector<1x128xf32> to vector<1x1x128xf32>
    %6 = vector.broadcast %3 : vector<1x24x1xf32> to vector<1x24x128xf32>
    %7 = vector.broadcast %5 : vector<1x1x128xf32> to vector<1x24x128xf32>
    %8 = arith.mulf %6, %7 : vector<1x24x128xf32>
    %9 = vector.shape_cast %2 : vector<1x128xf32> to vector<1x1x128xf32>
    %10 = vector.broadcast %9 : vector<1x1x128xf32> to vector<1x24x128xf32>
    %11 = arith.addf %10, %8 : vector<1x24x128xf32>
    %12 = vector.extract_strided_slice %0 {offsets = [0, 0, 1], sizes = [1, 24, 1], strides = [1, 1, 1]} : vector<1x24x6xf32> to vector<1x24x1xf32>
    %13 = vector.extract_strided_slice %1 {offsets = [1, 0], sizes = [1, 128], strides = [1, 1]} : vector<6x128xf32> to vector<1x128xf32>
    %14 = vector.shape_cast %13 : vector<1x128xf32> to vector<1x1x128xf32>
    %15 = vector.broadcast %12 : vector<1x24x1xf32> to vector<1x24x128xf32>
    %16 = vector.broadcast %14 : vector<1x1x128xf32> to vector<1x24x128xf32>
    %17 = arith.mulf %15, %16 : vector<1x24x128xf32>
    %18 = arith.addf %11, %17 : vector<1x24x128xf32>
    %19 = vector.extract_strided_slice %0 {offsets = [0, 0, 2], sizes = [1, 24, 1], strides = [1, 1, 1]} : vector<1x24x6xf32> to vector<1x24x1xf32>
    %20 = vector.extract_strided_slice %1 {offsets = [2, 0], sizes = [1, 128], strides = [1, 1]} : vector<6x128xf32> to vector<1x128xf32>
    %21 = vector.shape_cast %20 : vector<1x128xf32> to vector<1x1x128xf32>
    %22 = vector.broadcast %19 : vector<1x24x1xf32> to vector<1x24x128xf32>
    %23 = vector.broadcast %21 : vector<1x1x128xf32> to vector<1x24x128xf32>
    %24 = arith.mulf %22, %23 : vector<1x24x128xf32>
    %25 = arith.addf %18, %24 : vector<1x24x128xf32>
    %26 = vector.extract_strided_slice %0 {offsets = [0, 0, 3], sizes = [1, 24, 1], strides = [1, 1, 1]} : vector<1x24x6xf32> to vector<1x24x1xf32>
    %27 = vector.extract_strided_slice %1 {offsets = [3, 0], sizes = [1, 128], strides = [1, 1]} : vector<6x128xf32> to vector<1x128xf32>
    %28 = vector.shape_cast %27 : vector<1x128xf32> to vector<1x1x128xf32>
    %29 = vector.broadcast %26 : vector<1x24x1xf32> to vector<1x24x128xf32>
    %30 = vector.broadcast %28 : vector<1x1x128xf32> to vector<1x24x128xf32>
    %31 = arith.mulf %29, %30 : vector<1x24x128xf32>
    %32 = arith.addf %25, %31 : vector<1x24x128xf32>
    %33 = vector.extract_strided_slice %0 {offsets = [0, 0, 4], sizes = [1, 24, 1], strides = [1, 1, 1]} : vector<1x24x6xf32> to vector<1x24x1xf32>
    %34 = vector.extract_strided_slice %1 {offsets = [4, 0], sizes = [1, 128], strides = [1, 1]} : vector<6x128xf32> to vector<1x128xf32>
    %35 = vector.shape_cast %34 : vector<1x128xf32> to vector<1x1x128xf32>
    %36 = vector.broadcast %33 : vector<1x24x1xf32> to vector<1x24x128xf32>
    %37 = vector.broadcast %35 : vector<1x1x128xf32> to vector<1x24x128xf32>
    %38 = arith.mulf %36, %37 : vector<1x24x128xf32>
    %39 = arith.addf %32, %38 : vector<1x24x128xf32>
    %40 = vector.extract_strided_slice %0 {offsets = [0, 0, 5], sizes = [1, 24, 1], strides = [1, 1, 1]} : vector<1x24x6xf32> to vector<1x24x1xf32>
    %41 = vector.extract_strided_slice %1 {offsets = [5, 0], sizes = [1, 128], strides = [1, 1]} : vector<6x128xf32> to vector<1x128xf32>
    %42 = vector.shape_cast %41 : vector<1x128xf32> to vector<1x1x128xf32>
    %43 = vector.broadcast %40 : vector<1x24x1xf32> to vector<1x24x128xf32>
    %44 = vector.broadcast %42 : vector<1x1x128xf32> to vector<1x24x128xf32>
    %45 = arith.mulf %43, %44 : vector<1x24x128xf32>
    %46 = arith.addf %39, %45 : vector<1x24x128xf32>
    %c0_6 = arith.constant 0 : index
    %c0_7 = arith.constant 0 : index
    %c0_8 = arith.constant 0 : index
    %47 = vector.load %arg4[%c0_6, %c0_7, %c0_8] : memref<2x128x384xbf16, #tpu.memory_space<vmem>>, vector<1x128x384xbf16>
    %48 = vector.shape_cast %47 : vector<1x128x384xbf16> to vector<128x384xbf16>
    %c0_9 = arith.constant 0 : index
    %c0_10 = arith.constant 0 : index
    %c0_11 = arith.constant 0 : index
    %49 = vector.load %arg5[%c0_9, %c0_10, %c0_11] : memref<2x128x128xbf16, #tpu.memory_space<vmem>>, vector<1x128x128xbf16>
    %50 = vector.shape_cast %49 : vector<1x128x128xbf16> to vector<128x128xbf16>
    %c0_12 = arith.constant 0 : index
    %c0_13 = arith.constant 0 : index
    %c0_14 = arith.constant 0 : index
    %51 = vector.load %arg6[%c0_12, %c0_13, %c0_14] : memref<2x1x128xf32, #tpu.memory_space<vmem>>, vector<1x1x128xf32>
    %52 = vector.shape_cast %51 : vector<1x1x128xf32> to vector<1x128xf32>
    %c0_15 = arith.constant 0 : index
    %c0_16 = arith.constant 0 : index
    %c0_17 = arith.constant 0 : index
    %53 = vector.load %arg7[%c0_15, %c0_16, %c0_17] : memref<2x1x128xf32, #tpu.memory_space<vmem>>, vector<1x1x128xf32>
    %54 = vector.shape_cast %53 : vector<1x1x128xf32> to vector<1x128xf32>
    %c0_18 = arith.constant 0 : index
    %c0_19 = arith.constant 0 : index
    %c0_20 = arith.constant 0 : index
    %55 = vector.load %arg8[%c0_18, %c0_19, %c0_20] : memref<2x1x128xf32, #tpu.memory_space<vmem>>, vector<1x1x128xf32>
    %56 = vector.shape_cast %55 : vector<1x1x128xf32> to vector<1x128xf32>
    %c0_21 = arith.constant 0 : index
    %c0_22 = arith.constant 0 : index
    %c0_23 = arith.constant 0 : index
    %57 = vector.load %arg9[%c0_21, %c0_22, %c0_23] : memref<2x128x256xbf16, #tpu.memory_space<vmem>>, vector<1x128x256xbf16>
    %58 = vector.shape_cast %57 : vector<1x128x256xbf16> to vector<128x256xbf16>
    %c0_24 = arith.constant 0 : index
    %c0_25 = arith.constant 0 : index
    %c0_26 = arith.constant 0 : index
    %59 = vector.load %arg10[%c0_24, %c0_25, %c0_26] : memref<2x1x256xf32, #tpu.memory_space<vmem>>, vector<1x1x256xf32>
    %60 = vector.shape_cast %59 : vector<1x1x256xf32> to vector<1x256xf32>
    %c0_27 = arith.constant 0 : index
    %c0_28 = arith.constant 0 : index
    %c0_29 = arith.constant 0 : index
    %61 = vector.load %arg11[%c0_27, %c0_28, %c0_29] : memref<2x256x128xbf16, #tpu.memory_space<vmem>>, vector<1x256x128xbf16>
    %62 = vector.shape_cast %61 : vector<1x256x128xbf16> to vector<256x128xbf16>
    %c0_30 = arith.constant 0 : index
    %c0_31 = arith.constant 0 : index
    %c0_32 = arith.constant 0 : index
    %63 = vector.load %arg12[%c0_30, %c0_31, %c0_32] : memref<2x1x128xf32, #tpu.memory_space<vmem>>, vector<1x1x128xf32>
    %64 = vector.shape_cast %63 : vector<1x1x128xf32> to vector<1x128xf32>
    %c0_33 = arith.constant 0 : index
    %c0_34 = arith.constant 0 : index
    %c0_35 = arith.constant 0 : index
    %65 = vector.load %arg13[%c0_33, %c0_34, %c0_35] : memref<2x1x128xf32, #tpu.memory_space<vmem>>, vector<1x1x128xf32>
    %66 = vector.shape_cast %65 : vector<1x1x128xf32> to vector<1x128xf32>
    %c0_36 = arith.constant 0 : index
    %c0_37 = arith.constant 0 : index
    %c0_38 = arith.constant 0 : index
    %67 = vector.load %arg14[%c0_36, %c0_37, %c0_38] : memref<2x1x128xf32, #tpu.memory_space<vmem>>, vector<1x1x128xf32>
    %68 = vector.shape_cast %67 : vector<1x1x128xf32> to vector<1x128xf32>
    %69 = vector.shape_cast %46 : vector<1x24x128xf32> to vector<24x128xf32>
    %70 = arith.truncf %69 : vector<24x128xf32> to vector<24x128xbf16>
    %cst = arith.constant dense<0.000000e+00> : vector<24x384xf32>
    %71 = tpu.matmul %70, %48, %cst {dimension_numbers = #tpu.dot_dimension_numbers<[1], [0], [0], [1], [0, 0, 1, 1], [], []>} : vector<24x128xbf16>, vector<128x384xbf16>, vector<24x384xf32> -> vector<24x384xf32>
    %72 = vector.shape_cast %71 : vector<24x384xf32> to vector<1x24x384xf32>
    %73 = vector.extract_strided_slice %72 {offsets = [0, 0, 0], sizes = [1, 24, 32], strides = [1, 1, 1]} : vector<1x24x384xf32> to vector<1x24x32xf32>
    %74 = vector.extract_strided_slice %72 {offsets = [0, 0, 32], sizes = [1, 24, 32], strides = [1, 1, 1]} : vector<1x24x384xf32> to vector<1x24x32xf32>
    %75 = vector.extract_strided_slice %72 {offsets = [0, 0, 64], sizes = [1, 24, 32], strides = [1, 1, 1]} : vector<1x24x384xf32> to vector<1x24x32xf32>
    %76 = vector.extract_strided_slice %72 {offsets = [0, 0, 96], sizes = [1, 24, 32], strides = [1, 1, 1]} : vector<1x24x384xf32> to vector<1x24x32xf32>
    %77 = tpu.concatenate %73, %74, %75, %76 in 0 : vector<1x24x32xf32>, vector<1x24x32xf32>, vector<1x24x32xf32>, vector<1x24x32xf32> -> vector<4x24x32xf32>
    %78 = vector.extract_strided_slice %72 {offsets = [0, 0, 128], sizes = [1, 24, 32], strides = [1, 1, 1]} : vector<1x24x384xf32> to vector<1x24x32xf32>
    %79 = vector.extract_strided_slice %72 {offsets = [0, 0, 160], sizes = [1, 24, 32], strides = [1, 1, 1]} : vector<1x24x384xf32> to vector<1x24x32xf32>
    %80 = vector.extract_strided_slice %72 {offsets = [0, 0, 192], sizes = [1, 24, 32], strides = [1, 1, 1]} : vector<1x24x384xf32> to vector<1x24x32xf32>
    %81 = vector.extract_strided_slice %72 {offsets = [0, 0, 224], sizes = [1, 24, 32], strides = [1, 1, 1]} : vector<1x24x384xf32> to vector<1x24x32xf32>
    %82 = tpu.concatenate %78, %79, %80, %81 in 0 : vector<1x24x32xf32>, vector<1x24x32xf32>, vector<1x24x32xf32>, vector<1x24x32xf32> -> vector<4x24x32xf32>
    %83 = vector.extract_strided_slice %72 {offsets = [0, 0, 256], sizes = [1, 24, 32], strides = [1, 1, 1]} : vector<1x24x384xf32> to vector<1x24x32xf32>
    %84 = vector.extract_strided_slice %72 {offsets = [0, 0, 288], sizes = [1, 24, 32], strides = [1, 1, 1]} : vector<1x24x384xf32> to vector<1x24x32xf32>
    %85 = vector.extract_strided_slice %72 {offsets = [0, 0, 320], sizes = [1, 24, 32], strides = [1, 1, 1]} : vector<1x24x384xf32> to vector<1x24x32xf32>
    %86 = vector.extract_strided_slice %72 {offsets = [0, 0, 352], sizes = [1, 24, 32], strides = [1, 1, 1]} : vector<1x24x384xf32> to vector<1x24x32xf32>
    %87 = tpu.concatenate %83, %84, %85, %86 in 0 : vector<1x24x32xf32>, vector<1x24x32xf32>, vector<1x24x32xf32>, vector<1x24x32xf32> -> vector<4x24x32xf32>
    "tpu.trace_start"() <{level = 10 : i32, message = "xnd,xmd->xnm"}> : () -> ()
    %cst_39 = arith.constant dense<0.000000e+00> : vector<4x24x24xf32>
    %88 = tpu.matmul %77, %82, %cst_39 {dimension_numbers = #tpu.dot_dimension_numbers<[2], [2], [1], [1], [0, 0, 0, 1, 1, 1], [0], [0]>} : vector<4x24x32xf32>, vector<4x24x32xf32>, vector<4x24x24xf32> -> vector<4x24x24xf32>
    "tpu.trace_stop"() : () -> ()
    %cst_40 = arith.constant 0.176776692 : f32
    %89 = vector.broadcast %cst_40 : f32 to vector<4x24x24xf32>
    %90 = arith.mulf %88, %89 : vector<4x24x24xf32>
    %cst_41 = arith.constant dense<0xFF800000> : vector<4x24xf32>
    %91 = vector.multi_reduction <maximumf>, %90, %cst_41 [2] : vector<4x24x24xf32> to vector<4x24xf32>
    %92 = vector.shape_cast %91 : vector<4x24xf32> to vector<4x24x1xf32>
    %93 = vector.broadcast %92 : vector<4x24x1xf32> to vector<4x24x24xf32>
    %94 = arith.subf %90, %93 : vector<4x24x24xf32>
    %95 = math.exp %94 : vector<4x24x24xf32>
    %cst_42 = arith.constant dense<0.000000e+00> : vector<4x24xf32>
    %96 = vector.multi_reduction <add>, %95, %cst_42 [2] : vector<4x24x24xf32> to vector<4x24xf32>
    %97 = vector.shape_cast %96 : vector<4x24xf32> to vector<4x24x1xf32>
    %98 = tpu.reciprocal %97 {approx = true} : vector<4x24x1xf32> -> vector<4x24x1xf32>
    %99 = vector.broadcast %98 : vector<4x24x1xf32> to vector<4x24x24xf32>
    %100 = arith.mulf %95, %99 : vector<4x24x24xf32>
    "tpu.trace_start"() <{level = 10 : i32, message = "xnm,xmd->xnd"}> : () -> ()
    %cst_43 = arith.constant dense<0.000000e+00> : vector<4x24x32xf32>
    %101 = tpu.matmul %100, %87, %cst_43 {dimension_numbers = #tpu.dot_dimension_numbers<[2], [1], [1], [2], [0, 0, 0, 1, 1, 2], [0], [0]>} : vector<4x24x24xf32>, vector<4x24x32xf32>, vector<4x24x32xf32> -> vector<4x24x32xf32>
    "tpu.trace_stop"() : () -> ()
    %102 = vector.extract_strided_slice %101 {offsets = [0, 0, 0], sizes = [1, 24, 32], strides = [1, 1, 1]} : vector<4x24x32xf32> to vector<1x24x32xf32>
    %103 = vector.extract_strided_slice %101 {offsets = [1, 0, 0], sizes = [1, 24, 32], strides = [1, 1, 1]} : vector<4x24x32xf32> to vector<1x24x32xf32>
    %104 = vector.extract_strided_slice %101 {offsets = [2, 0, 0], sizes = [1, 24, 32], strides = [1, 1, 1]} : vector<4x24x32xf32> to vector<1x24x32xf32>
    %105 = vector.extract_strided_slice %101 {offsets = [3, 0, 0], sizes = [1, 24, 32], strides = [1, 1, 1]} : vector<4x24x32xf32> to vector<1x24x32xf32>
    %106 = tpu.concatenate %102, %103, %104, %105 in 2 : vector<1x24x32xf32>, vector<1x24x32xf32>, vector<1x24x32xf32>, vector<1x24x32xf32> -> vector<1x24x128xf32>
    %107 = vector.shape_cast %106 : vector<1x24x128xf32> to vector<24x128xf32>
    %108 = arith.truncf %107 : vector<24x128xf32> to vector<24x128xbf16>
    %cst_44 = arith.constant dense<0.000000e+00> : vector<24x128xf32>
    %109 = tpu.matmul %108, %50, %cst_44 {dimension_numbers = #tpu.dot_dimension_numbers<[1], [0], [0], [1], [0, 0, 1, 1], [], []>} : vector<24x128xbf16>, vector<128x128xbf16>, vector<24x128xf32> -> vector<24x128xf32>
    %110 = vector.broadcast %52 : vector<1x128xf32> to vector<24x128xf32>
    %111 = arith.addf %109, %110 : vector<24x128xf32>
    %112 = vector.shape_cast %111 : vector<24x128xf32> to vector<1x24x128xf32>
    %113 = arith.addf %46, %112 : vector<1x24x128xf32>
    %cst_45 = arith.constant dense<0.000000e+00> : vector<1x128xf32>
    %114 = vector.multi_reduction <add>, %113, %cst_45 [1] : vector<1x24x128xf32> to vector<1x128xf32>
    %115 = vector.shape_cast %114 : vector<1x128xf32> to vector<1x1x128xf32>
    %cst_46 = arith.constant 2.400000e+01 : f32
    %116 = vector.broadcast %cst_46 : f32 to vector<1x1x128xf32>
    %117 = arith.divf %115, %116 : vector<1x1x128xf32>
    %118 = vector.broadcast %117 : vector<1x1x128xf32> to vector<1x24x128xf32>
    %119 = arith.subf %113, %118 : vector<1x24x128xf32>
    %120 = arith.mulf %119, %119 : vector<1x24x128xf32>
    %cst_47 = arith.constant dense<0.000000e+00> : vector<1x128xf32>
    %121 = vector.multi_reduction <add>, %120, %cst_47 [1] : vector<1x24x128xf32> to vector<1x128xf32>
    %122 = vector.shape_cast %121 : vector<1x128xf32> to vector<1x1x128xf32>
    %cst_48 = arith.constant 2.400000e+01 : f32
    %123 = vector.broadcast %cst_48 : f32 to vector<1x1x128xf32>
    %124 = arith.divf %122, %123 : vector<1x1x128xf32>
    %125 = vector.broadcast %117 : vector<1x1x128xf32> to vector<1x24x128xf32>
    %126 = arith.subf %113, %125 : vector<1x24x128xf32>
    %cst_49 = arith.constant 9.99999974E-6 : f32
    %127 = vector.broadcast %cst_49 : f32 to vector<1x1x128xf32>
    %128 = arith.addf %124, %127 : vector<1x1x128xf32>
    %129 = math.rsqrt %128 : vector<1x1x128xf32>
    %130 = vector.broadcast %129 : vector<1x1x128xf32> to vector<1x24x128xf32>
    %131 = arith.mulf %126, %130 : vector<1x24x128xf32>
    %132 = vector.shape_cast %54 : vector<1x128xf32> to vector<1x1x128xf32>
    %133 = vector.broadcast %132 : vector<1x1x128xf32> to vector<1x24x128xf32>
    %134 = arith.mulf %131, %133 : vector<1x24x128xf32>
    %135 = vector.shape_cast %56 : vector<1x128xf32> to vector<1x1x128xf32>
    %136 = vector.broadcast %135 : vector<1x1x128xf32> to vector<1x24x128xf32>
    %137 = arith.addf %134, %136 : vector<1x24x128xf32>
    %138 = vector.shape_cast %137 : vector<1x24x128xf32> to vector<24x128xf32>
    %139 = arith.truncf %138 : vector<24x128xf32> to vector<24x128xbf16>
    %cst_50 = arith.constant dense<0.000000e+00> : vector<24x256xf32>
    %140 = tpu.matmul %139, %58, %cst_50 {dimension_numbers = #tpu.dot_dimension_numbers<[1], [0], [0], [1], [0, 0, 1, 1], [], []>} : vector<24x128xbf16>, vector<128x256xbf16>, vector<24x256xf32> -> vector<24x256xf32>
    %141 = vector.broadcast %60 : vector<1x256xf32> to vector<24x256xf32>
    %142 = arith.addf %140, %141 : vector<24x256xf32>
    %cst_51 = arith.constant 0.000000e+00 : f32
    %143 = vector.broadcast %cst_51 : f32 to vector<24x256xf32>
    %144 = arith.maximumf %142, %143 : vector<24x256xf32>
    %145 = arith.truncf %144 : vector<24x256xf32> to vector<24x256xbf16>
    %cst_52 = arith.constant dense<0.000000e+00> : vector<24x128xf32>
    %146 = tpu.matmul %145, %62, %cst_52 {dimension_numbers = #tpu.dot_dimension_numbers<[1], [0], [0], [1], [0, 0, 1, 1], [], []>} : vector<24x256xbf16>, vector<256x128xbf16>, vector<24x128xf32> -> vector<24x128xf32>
    %147 = vector.broadcast %64 : vector<1x128xf32> to vector<24x128xf32>
    %148 = arith.addf %146, %147 : vector<24x128xf32>
    %149 = vector.shape_cast %148 : vector<24x128xf32> to vector<1x24x128xf32>
    %150 = arith.addf %137, %149 : vector<1x24x128xf32>
    %cst_53 = arith.constant dense<0.000000e+00> : vector<1x128xf32>
    %151 = vector.multi_reduction <add>, %150, %cst_53 [1] : vector<1x24x128xf32> to vector<1x128xf32>
    %152 = vector.shape_cast %151 : vector<1x128xf32> to vector<1x1x128xf32>
    %cst_54 = arith.constant 2.400000e+01 : f32
    %153 = vector.broadcast %cst_54 : f32 to vector<1x1x128xf32>
    %154 = arith.divf %152, %153 : vector<1x1x128xf32>
    %155 = vector.broadcast %154 : vector<1x1x128xf32> to vector<1x24x128xf32>
    %156 = arith.subf %150, %155 : vector<1x24x128xf32>
    %157 = arith.mulf %156, %156 : vector<1x24x128xf32>
    %cst_55 = arith.constant dense<0.000000e+00> : vector<1x128xf32>
    %158 = vector.multi_reduction <add>, %157, %cst_55 [1] : vector<1x24x128xf32> to vector<1x128xf32>
    %159 = vector.shape_cast %158 : vector<1x128xf32> to vector<1x1x128xf32>
    %cst_56 = arith.constant 2.400000e+01 : f32
    %160 = vector.broadcast %cst_56 : f32 to vector<1x1x128xf32>
    %161 = arith.divf %159, %160 : vector<1x1x128xf32>
    %162 = vector.broadcast %154 : vector<1x1x128xf32> to vector<1x24x128xf32>
    %163 = arith.subf %150, %162 : vector<1x24x128xf32>
    %cst_57 = arith.constant 9.99999974E-6 : f32
    %164 = vector.broadcast %cst_57 : f32 to vector<1x1x128xf32>
    %165 = arith.addf %161, %164 : vector<1x1x128xf32>
    %166 = math.rsqrt %165 : vector<1x1x128xf32>
    %167 = vector.broadcast %166 : vector<1x1x128xf32> to vector<1x24x128xf32>
    %168 = arith.mulf %163, %167 : vector<1x24x128xf32>
    %169 = vector.shape_cast %66 : vector<1x128xf32> to vector<1x1x128xf32>
    %170 = vector.broadcast %169 : vector<1x1x128xf32> to vector<1x24x128xf32>
    %171 = arith.mulf %168, %170 : vector<1x24x128xf32>
    %172 = vector.shape_cast %68 : vector<1x128xf32> to vector<1x1x128xf32>
    %173 = vector.broadcast %172 : vector<1x1x128xf32> to vector<1x24x128xf32>
    %174 = arith.addf %171, %173 : vector<1x24x128xf32>
    %c1 = arith.constant 1 : index
    %c0_58 = arith.constant 0 : index
    %c0_59 = arith.constant 0 : index
    %175 = vector.load %arg4[%c1, %c0_58, %c0_59] : memref<2x128x384xbf16, #tpu.memory_space<vmem>>, vector<1x128x384xbf16>
    %176 = vector.shape_cast %175 : vector<1x128x384xbf16> to vector<128x384xbf16>
    %c1_60 = arith.constant 1 : index
    %c0_61 = arith.constant 0 : index
    %c0_62 = arith.constant 0 : index
    %177 = vector.load %arg5[%c1_60, %c0_61, %c0_62] : memref<2x128x128xbf16, #tpu.memory_space<vmem>>, vector<1x128x128xbf16>
    %178 = vector.shape_cast %177 : vector<1x128x128xbf16> to vector<128x128xbf16>
    %c1_63 = arith.constant 1 : index
    %c0_64 = arith.constant 0 : index
    %c0_65 = arith.constant 0 : index
    %179 = vector.load %arg6[%c1_63, %c0_64, %c0_65] : memref<2x1x128xf32, #tpu.memory_space<vmem>>, vector<1x1x128xf32>
    %180 = vector.shape_cast %179 : vector<1x1x128xf32> to vector<1x128xf32>
    %c1_66 = arith.constant 1 : index
    %c0_67 = arith.constant 0 : index
    %c0_68 = arith.constant 0 : index
    %181 = vector.load %arg7[%c1_66, %c0_67, %c0_68] : memref<2x1x128xf32, #tpu.memory_space<vmem>>, vector<1x1x128xf32>
    %182 = vector.shape_cast %181 : vector<1x1x128xf32> to vector<1x128xf32>
    %c1_69 = arith.constant 1 : index
    %c0_70 = arith.constant 0 : index
    %c0_71 = arith.constant 0 : index
    %183 = vector.load %arg8[%c1_69, %c0_70, %c0_71] : memref<2x1x128xf32, #tpu.memory_space<vmem>>, vector<1x1x128xf32>
    %184 = vector.shape_cast %183 : vector<1x1x128xf32> to vector<1x128xf32>
    %c1_72 = arith.constant 1 : index
    %c0_73 = arith.constant 0 : index
    %c0_74 = arith.constant 0 : index
    %185 = vector.load %arg9[%c1_72, %c0_73, %c0_74] : memref<2x128x256xbf16, #tpu.memory_space<vmem>>, vector<1x128x256xbf16>
    %186 = vector.shape_cast %185 : vector<1x128x256xbf16> to vector<128x256xbf16>
    %c1_75 = arith.constant 1 : index
    %c0_76 = arith.constant 0 : index
    %c0_77 = arith.constant 0 : index
    %187 = vector.load %arg10[%c1_75, %c0_76, %c0_77] : memref<2x1x256xf32, #tpu.memory_space<vmem>>, vector<1x1x256xf32>
    %188 = vector.shape_cast %187 : vector<1x1x256xf32> to vector<1x256xf32>
    %c1_78 = arith.constant 1 : index
    %c0_79 = arith.constant 0 : index
    %c0_80 = arith.constant 0 : index
    %189 = vector.load %arg11[%c1_78, %c0_79, %c0_80] : memref<2x256x128xbf16, #tpu.memory_space<vmem>>, vector<1x256x128xbf16>
    %190 = vector.shape_cast %189 : vector<1x256x128xbf16> to vector<256x128xbf16>
    %c1_81 = arith.constant 1 : index
    %c0_82 = arith.constant 0 : index
    %c0_83 = arith.constant 0 : index
    %191 = vector.load %arg12[%c1_81, %c0_82, %c0_83] : memref<2x1x128xf32, #tpu.memory_space<vmem>>, vector<1x1x128xf32>
    %192 = vector.shape_cast %191 : vector<1x1x128xf32> to vector<1x128xf32>
    %c1_84 = arith.constant 1 : index
    %c0_85 = arith.constant 0 : index
    %c0_86 = arith.constant 0 : index
    %193 = vector.load %arg13[%c1_84, %c0_85, %c0_86] : memref<2x1x128xf32, #tpu.memory_space<vmem>>, vector<1x1x128xf32>
    %194 = vector.shape_cast %193 : vector<1x1x128xf32> to vector<1x128xf32>
    %c1_87 = arith.constant 1 : index
    %c0_88 = arith.constant 0 : index
    %c0_89 = arith.constant 0 : index
    %195 = vector.load %arg14[%c1_87, %c0_88, %c0_89] : memref<2x1x128xf32, #tpu.memory_space<vmem>>, vector<1x1x128xf32>
    %196 = vector.shape_cast %195 : vector<1x1x128xf32> to vector<1x128xf32>
    %197 = vector.shape_cast %174 : vector<1x24x128xf32> to vector<24x128xf32>
    %198 = arith.truncf %197 : vector<24x128xf32> to vector<24x128xbf16>
    %cst_90 = arith.constant dense<0.000000e+00> : vector<24x384xf32>
    %199 = tpu.matmul %198, %176, %cst_90 {dimension_numbers = #tpu.dot_dimension_numbers<[1], [0], [0], [1], [0, 0, 1, 1], [], []>} : vector<24x128xbf16>, vector<128x384xbf16>, vector<24x384xf32> -> vector<24x384xf32>
    %200 = vector.shape_cast %199 : vector<24x384xf32> to vector<1x24x384xf32>
    %201 = vector.extract_strided_slice %200 {offsets = [0, 0, 0], sizes = [1, 24, 32], strides = [1, 1, 1]} : vector<1x24x384xf32> to vector<1x24x32xf32>
    %202 = vector.extract_strided_slice %200 {offsets = [0, 0, 32], sizes = [1, 24, 32], strides = [1, 1, 1]} : vector<1x24x384xf32> to vector<1x24x32xf32>
    %203 = vector.extract_strided_slice %200 {offsets = [0, 0, 64], sizes = [1, 24, 32], strides = [1, 1, 1]} : vector<1x24x384xf32> to vector<1x24x32xf32>
    %204 = vector.extract_strided_slice %200 {offsets = [0, 0, 96], sizes = [1, 24, 32], strides = [1, 1, 1]} : vector<1x24x384xf32> to vector<1x24x32xf32>
    %205 = tpu.concatenate %201, %202, %203, %204 in 0 : vector<1x24x32xf32>, vector<1x24x32xf32>, vector<1x24x32xf32>, vector<1x24x32xf32> -> vector<4x24x32xf32>
    %206 = vector.extract_strided_slice %200 {offsets = [0, 0, 128], sizes = [1, 24, 32], strides = [1, 1, 1]} : vector<1x24x384xf32> to vector<1x24x32xf32>
    %207 = vector.extract_strided_slice %200 {offsets = [0, 0, 160], sizes = [1, 24, 32], strides = [1, 1, 1]} : vector<1x24x384xf32> to vector<1x24x32xf32>
    %208 = vector.extract_strided_slice %200 {offsets = [0, 0, 192], sizes = [1, 24, 32], strides = [1, 1, 1]} : vector<1x24x384xf32> to vector<1x24x32xf32>
    %209 = vector.extract_strided_slice %200 {offsets = [0, 0, 224], sizes = [1, 24, 32], strides = [1, 1, 1]} : vector<1x24x384xf32> to vector<1x24x32xf32>
    %210 = tpu.concatenate %206, %207, %208, %209 in 0 : vector<1x24x32xf32>, vector<1x24x32xf32>, vector<1x24x32xf32>, vector<1x24x32xf32> -> vector<4x24x32xf32>
    %211 = vector.extract_strided_slice %200 {offsets = [0, 0, 256], sizes = [1, 24, 32], strides = [1, 1, 1]} : vector<1x24x384xf32> to vector<1x24x32xf32>
    %212 = vector.extract_strided_slice %200 {offsets = [0, 0, 288], sizes = [1, 24, 32], strides = [1, 1, 1]} : vector<1x24x384xf32> to vector<1x24x32xf32>
    %213 = vector.extract_strided_slice %200 {offsets = [0, 0, 320], sizes = [1, 24, 32], strides = [1, 1, 1]} : vector<1x24x384xf32> to vector<1x24x32xf32>
    %214 = vector.extract_strided_slice %200 {offsets = [0, 0, 352], sizes = [1, 24, 32], strides = [1, 1, 1]} : vector<1x24x384xf32> to vector<1x24x32xf32>
    %215 = tpu.concatenate %211, %212, %213, %214 in 0 : vector<1x24x32xf32>, vector<1x24x32xf32>, vector<1x24x32xf32>, vector<1x24x32xf32> -> vector<4x24x32xf32>
    "tpu.trace_start"() <{level = 10 : i32, message = "xnd,xmd->xnm"}> : () -> ()
    %cst_91 = arith.constant dense<0.000000e+00> : vector<4x24x24xf32>
    %216 = tpu.matmul %205, %210, %cst_91 {dimension_numbers = #tpu.dot_dimension_numbers<[2], [2], [1], [1], [0, 0, 0, 1, 1, 1], [0], [0]>} : vector<4x24x32xf32>, vector<4x24x32xf32>, vector<4x24x24xf32> -> vector<4x24x24xf32>
    "tpu.trace_stop"() : () -> ()
    %cst_92 = arith.constant 0.176776692 : f32
    %217 = vector.broadcast %cst_92 : f32 to vector<4x24x24xf32>
    %218 = arith.mulf %216, %217 : vector<4x24x24xf32>
    %cst_93 = arith.constant dense<0xFF800000> : vector<4x24xf32>
    %219 = vector.multi_reduction <maximumf>, %218, %cst_93 [2] : vector<4x24x24xf32> to vector<4x24xf32>
    %220 = vector.shape_cast %219 : vector<4x24xf32> to vector<4x24x1xf32>
    %221 = vector.broadcast %220 : vector<4x24x1xf32> to vector<4x24x24xf32>
    %222 = arith.subf %218, %221 : vector<4x24x24xf32>
    %223 = math.exp %222 : vector<4x24x24xf32>
    %cst_94 = arith.constant dense<0.000000e+00> : vector<4x24xf32>
    %224 = vector.multi_reduction <add>, %223, %cst_94 [2] : vector<4x24x24xf32> to vector<4x24xf32>
    %225 = vector.shape_cast %224 : vector<4x24xf32> to vector<4x24x1xf32>
    %226 = tpu.reciprocal %225 {approx = true} : vector<4x24x1xf32> -> vector<4x24x1xf32>
    %227 = vector.broadcast %226 : vector<4x24x1xf32> to vector<4x24x24xf32>
    %228 = arith.mulf %223, %227 : vector<4x24x24xf32>
    "tpu.trace_start"() <{level = 10 : i32, message = "xnm,xmd->xnd"}> : () -> ()
    %cst_95 = arith.constant dense<0.000000e+00> : vector<4x24x32xf32>
    %229 = tpu.matmul %228, %215, %cst_95 {dimension_numbers = #tpu.dot_dimension_numbers<[2], [1], [1], [2], [0, 0, 0, 1, 1, 2], [0], [0]>} : vector<4x24x24xf32>, vector<4x24x32xf32>, vector<4x24x32xf32> -> vector<4x24x32xf32>
    "tpu.trace_stop"() : () -> ()
    %230 = vector.extract_strided_slice %229 {offsets = [0, 0, 0], sizes = [1, 24, 32], strides = [1, 1, 1]} : vector<4x24x32xf32> to vector<1x24x32xf32>
    %231 = vector.extract_strided_slice %229 {offsets = [1, 0, 0], sizes = [1, 24, 32], strides = [1, 1, 1]} : vector<4x24x32xf32> to vector<1x24x32xf32>
    %232 = vector.extract_strided_slice %229 {offsets = [2, 0, 0], sizes = [1, 24, 32], strides = [1, 1, 1]} : vector<4x24x32xf32> to vector<1x24x32xf32>
    %233 = vector.extract_strided_slice %229 {offsets = [3, 0, 0], sizes = [1, 24, 32], strides = [1, 1, 1]} : vector<4x24x32xf32> to vector<1x24x32xf32>
    %234 = tpu.concatenate %230, %231, %232, %233 in 2 : vector<1x24x32xf32>, vector<1x24x32xf32>, vector<1x24x32xf32>, vector<1x24x32xf32> -> vector<1x24x128xf32>
    %235 = vector.shape_cast %234 : vector<1x24x128xf32> to vector<24x128xf32>
    %236 = arith.truncf %235 : vector<24x128xf32> to vector<24x128xbf16>
    %cst_96 = arith.constant dense<0.000000e+00> : vector<24x128xf32>
    %237 = tpu.matmul %236, %178, %cst_96 {dimension_numbers = #tpu.dot_dimension_numbers<[1], [0], [0], [1], [0, 0, 1, 1], [], []>} : vector<24x128xbf16>, vector<128x128xbf16>, vector<24x128xf32> -> vector<24x128xf32>
    %238 = vector.broadcast %180 : vector<1x128xf32> to vector<24x128xf32>
    %239 = arith.addf %237, %238 : vector<24x128xf32>
    %240 = vector.shape_cast %239 : vector<24x128xf32> to vector<1x24x128xf32>
    %241 = arith.addf %174, %240 : vector<1x24x128xf32>
    %cst_97 = arith.constant dense<0.000000e+00> : vector<1x128xf32>
    %242 = vector.multi_reduction <add>, %241, %cst_97 [1] : vector<1x24x128xf32> to vector<1x128xf32>
    %243 = vector.shape_cast %242 : vector<1x128xf32> to vector<1x1x128xf32>
    %cst_98 = arith.constant 2.400000e+01 : f32
    %244 = vector.broadcast %cst_98 : f32 to vector<1x1x128xf32>
    %245 = arith.divf %243, %244 : vector<1x1x128xf32>
    %246 = vector.broadcast %245 : vector<1x1x128xf32> to vector<1x24x128xf32>
    %247 = arith.subf %241, %246 : vector<1x24x128xf32>
    %248 = arith.mulf %247, %247 : vector<1x24x128xf32>
    %cst_99 = arith.constant dense<0.000000e+00> : vector<1x128xf32>
    %249 = vector.multi_reduction <add>, %248, %cst_99 [1] : vector<1x24x128xf32> to vector<1x128xf32>
    %250 = vector.shape_cast %249 : vector<1x128xf32> to vector<1x1x128xf32>
    %cst_100 = arith.constant 2.400000e+01 : f32
    %251 = vector.broadcast %cst_100 : f32 to vector<1x1x128xf32>
    %252 = arith.divf %250, %251 : vector<1x1x128xf32>
    %253 = vector.broadcast %245 : vector<1x1x128xf32> to vector<1x24x128xf32>
    %254 = arith.subf %241, %253 : vector<1x24x128xf32>
    %cst_101 = arith.constant 9.99999974E-6 : f32
    %255 = vector.broadcast %cst_101 : f32 to vector<1x1x128xf32>
    %256 = arith.addf %252, %255 : vector<1x1x128xf32>
    %257 = math.rsqrt %256 : vector<1x1x128xf32>
    %258 = vector.broadcast %257 : vector<1x1x128xf32> to vector<1x24x128xf32>
    %259 = arith.mulf %254, %258 : vector<1x24x128xf32>
    %260 = vector.shape_cast %182 : vector<1x128xf32> to vector<1x1x128xf32>
    %261 = vector.broadcast %260 : vector<1x1x128xf32> to vector<1x24x128xf32>
    %262 = arith.mulf %259, %261 : vector<1x24x128xf32>
    %263 = vector.shape_cast %184 : vector<1x128xf32> to vector<1x1x128xf32>
    %264 = vector.broadcast %263 : vector<1x1x128xf32> to vector<1x24x128xf32>
    %265 = arith.addf %262, %264 : vector<1x24x128xf32>
    %266 = vector.shape_cast %265 : vector<1x24x128xf32> to vector<24x128xf32>
    %267 = arith.truncf %266 : vector<24x128xf32> to vector<24x128xbf16>
    %cst_102 = arith.constant dense<0.000000e+00> : vector<24x256xf32>
    %268 = tpu.matmul %267, %186, %cst_102 {dimension_numbers = #tpu.dot_dimension_numbers<[1], [0], [0], [1], [0, 0, 1, 1], [], []>} : vector<24x128xbf16>, vector<128x256xbf16>, vector<24x256xf32> -> vector<24x256xf32>
    %269 = vector.broadcast %188 : vector<1x256xf32> to vector<24x256xf32>
    %270 = arith.addf %268, %269 : vector<24x256xf32>
    %cst_103 = arith.constant 0.000000e+00 : f32
    %271 = vector.broadcast %cst_103 : f32 to vector<24x256xf32>
    %272 = arith.maximumf %270, %271 : vector<24x256xf32>
    %273 = arith.truncf %272 : vector<24x256xf32> to vector<24x256xbf16>
    %cst_104 = arith.constant dense<0.000000e+00> : vector<24x128xf32>
    %274 = tpu.matmul %273, %190, %cst_104 {dimension_numbers = #tpu.dot_dimension_numbers<[1], [0], [0], [1], [0, 0, 1, 1], [], []>} : vector<24x256xbf16>, vector<256x128xbf16>, vector<24x128xf32> -> vector<24x128xf32>
    %275 = vector.broadcast %192 : vector<1x128xf32> to vector<24x128xf32>
    %276 = arith.addf %274, %275 : vector<24x128xf32>
    %277 = vector.shape_cast %276 : vector<24x128xf32> to vector<1x24x128xf32>
    %278 = arith.addf %265, %277 : vector<1x24x128xf32>
    %cst_105 = arith.constant dense<0.000000e+00> : vector<1x128xf32>
    %279 = vector.multi_reduction <add>, %278, %cst_105 [1] : vector<1x24x128xf32> to vector<1x128xf32>
    %280 = vector.shape_cast %279 : vector<1x128xf32> to vector<1x1x128xf32>
    %cst_106 = arith.constant 2.400000e+01 : f32
    %281 = vector.broadcast %cst_106 : f32 to vector<1x1x128xf32>
    %282 = arith.divf %280, %281 : vector<1x1x128xf32>
    %283 = vector.broadcast %282 : vector<1x1x128xf32> to vector<1x24x128xf32>
    %284 = arith.subf %278, %283 : vector<1x24x128xf32>
    %285 = arith.mulf %284, %284 : vector<1x24x128xf32>
    %cst_107 = arith.constant dense<0.000000e+00> : vector<1x128xf32>
    %286 = vector.multi_reduction <add>, %285, %cst_107 [1] : vector<1x24x128xf32> to vector<1x128xf32>
    %287 = vector.shape_cast %286 : vector<1x128xf32> to vector<1x1x128xf32>
    %cst_108 = arith.constant 2.400000e+01 : f32
    %288 = vector.broadcast %cst_108 : f32 to vector<1x1x128xf32>
    %289 = arith.divf %287, %288 : vector<1x1x128xf32>
    %290 = vector.broadcast %282 : vector<1x1x128xf32> to vector<1x24x128xf32>
    %291 = arith.subf %278, %290 : vector<1x24x128xf32>
    %cst_109 = arith.constant 9.99999974E-6 : f32
    %292 = vector.broadcast %cst_109 : f32 to vector<1x1x128xf32>
    %293 = arith.addf %289, %292 : vector<1x1x128xf32>
    %294 = math.rsqrt %293 : vector<1x1x128xf32>
    %295 = vector.broadcast %294 : vector<1x1x128xf32> to vector<1x24x128xf32>
    %296 = arith.mulf %291, %295 : vector<1x24x128xf32>
    %297 = vector.shape_cast %194 : vector<1x128xf32> to vector<1x1x128xf32>
    %298 = vector.broadcast %297 : vector<1x1x128xf32> to vector<1x24x128xf32>
    %299 = arith.mulf %296, %298 : vector<1x24x128xf32>
    %300 = vector.shape_cast %196 : vector<1x128xf32> to vector<1x1x128xf32>
    %301 = vector.broadcast %300 : vector<1x1x128xf32> to vector<1x24x128xf32>
    %302 = arith.addf %299, %301 : vector<1x24x128xf32>
    %c0_110 = arith.constant 0 : index
    %c0_111 = arith.constant 0 : index
    %c0_112 = arith.constant 0 : index
    %303 = vector.load %arg15[%c0_110, %c0_111, %c0_112] : memref<1x24x128xf32, #tpu.memory_space<vmem>>, vector<1x24x128xf32>
    tpu.vector_store %arg15[%c0_110, %c0_111, %c0_112], %302 {strides = array<i32>} : memref<1x24x128xf32, #tpu.memory_space<vmem>>, vector<1x24x128xf32>,
    return
  }
  func.func @transform_0(%arg0: i32) -> (i32, i32, i32) {
    %c0_i32 = arith.constant 0 : i32
    %c0_i32_0 = arith.constant 0 : i32
    %c0_i32_1 = arith.constant 0 : i32
    return %arg0, %c0_i32, %c0_i32_0 : i32, i32, i32
  }
  func.func @transform_1(%arg0: i32) -> (i32, i32) {
    %c0_i32 = arith.constant 0 : i32
    %c0_i32_0 = arith.constant 0 : i32
    %c0_i32_1 = arith.constant 0 : i32
    return %c0_i32, %c0_i32_0 : i32, i32
  }
  func.func @transform_2(%arg0: i32) -> (i32, i32) {
    %c0_i32 = arith.constant 0 : i32
    %c0_i32_0 = arith.constant 0 : i32
    %c0_i32_1 = arith.constant 0 : i32
    return %c0_i32, %c0_i32_0 : i32, i32
  }
  func.func @transform_3(%arg0: i32) -> (i32, i32, i32) {
    %c0_i32 = arith.constant 0 : i32
    %c0_i32_0 = arith.constant 0 : i32
    %c0_i32_1 = arith.constant 0 : i32
    %c0_i32_2 = arith.constant 0 : i32
    return %c0_i32, %c0_i32_0, %c0_i32_1 : i32, i32, i32
  }
  func.func @transform_4(%arg0: i32) -> (i32, i32, i32) {
    %c0_i32 = arith.constant 0 : i32
    %c0_i32_0 = arith.constant 0 : i32
    %c0_i32_1 = arith.constant 0 : i32
    %c0_i32_2 = arith.constant 0 : i32
    return %c0_i32, %c0_i32_0, %c0_i32_1 : i32, i32, i32
  }
  func.func @transform_5(%arg0: i32) -> (i32, i32, i32) {
    %c0_i32 = arith.constant 0 : i32
    %c0_i32_0 = arith.constant 0 : i32
    %c0_i32_1 = arith.constant 0 : i32
    %c0_i32_2 = arith.constant 0 : i32
    return %c0_i32, %c0_i32_0, %c0_i32_1 : i32, i32, i32
  }
  func.func @transform_6(%arg0: i32) -> (i32, i32, i32) {
    %c0_i32 = arith.constant 0 : i32
    %c0_i32_0 = arith.constant 0 : i32
    %c0_i32_1 = arith.constant 0 : i32
    %c0_i32_2 = arith.constant 0 : i32
    return %c0_i32, %c0_i32_0, %c0_i32_1 : i32, i32, i32
  }
  func.func @transform_7(%arg0: i32) -> (i32, i32, i32) {
    %c0_i32 = arith.constant 0 : i32
    %c0_i32_0 = arith.constant 0 : i32
    %c0_i32_1 = arith.constant 0 : i32
    %c0_i32_2 = arith.constant 0 : i32
    return %c0_i32, %c0_i32_0, %c0_i32_1 : i32, i32, i32
  }
  func.func @transform_8(%arg0: i32) -> (i32, i32, i32) {
    %c0_i32 = arith.constant 0 : i32
    %c0_i32_0 = arith.constant 0 : i32
    %c0_i32_1 = arith.constant 0 : i32
    %c0_i32_2 = arith.constant 0 : i32
    return %c0_i32, %c0_i32_0, %c0_i32_1 : i32, i32, i32
  }
  func.func @transform_9(%arg0: i32) -> (i32, i32, i32) {
    %c0_i32 = arith.constant 0 : i32
    %c0_i32_0 = arith.constant 0 : i32
    %c0_i32_1 = arith.constant 0 : i32
    %c0_i32_2 = arith.constant 0 : i32
    return %c0_i32, %c0_i32_0, %c0_i32_1 : i32, i32, i32
  }
  func.func @transform_10(%arg0: i32) -> (i32, i32, i32) {
    %c0_i32 = arith.constant 0 : i32
    %c0_i32_0 = arith.constant 0 : i32
    %c0_i32_1 = arith.constant 0 : i32
    %c0_i32_2 = arith.constant 0 : i32
    return %c0_i32, %c0_i32_0, %c0_i32_1 : i32, i32, i32
  }
  func.func @transform_11(%arg0: i32) -> (i32, i32, i32) {
    %c0_i32 = arith.constant 0 : i32
    %c0_i32_0 = arith.constant 0 : i32
    %c0_i32_1 = arith.constant 0 : i32
    %c0_i32_2 = arith.constant 0 : i32
    return %c0_i32, %c0_i32_0, %c0_i32_1 : i32, i32, i32
  }
  func.func @transform_12(%arg0: i32) -> (i32, i32, i32) {
    %c0_i32 = arith.constant 0 : i32
    %c0_i32_0 = arith.constant 0 : i32
    %c0_i32_1 = arith.constant 0 : i32
    %c0_i32_2 = arith.constant 0 : i32
    return %c0_i32, %c0_i32_0, %c0_i32_1 : i32, i32, i32
  }
  func.func @transform_13(%arg0: i32) -> (i32, i32, i32) {
    %c0_i32 = arith.constant 0 : i32
    %c0_i32_0 = arith.constant 0 : i32
    %c0_i32_1 = arith.constant 0 : i32
    %c0_i32_2 = arith.constant 0 : i32
    return %c0_i32, %c0_i32_0, %c0_i32_1 : i32, i32, i32
  }
  func.func @transform_14(%arg0: i32) -> (i32, i32, i32) {
    %c0_i32 = arith.constant 0 : i32
    %c0_i32_0 = arith.constant 0 : i32
    %c0_i32_1 = arith.constant 0 : i32
    return %arg0, %c0_i32, %c0_i32_0 : i32, i32, i32
  }
}

</mosaic_0001>

<bundles_post_ra>
// kernel: tpu_custom_call.1
= control target key start
LH: loop header
LB: loop body
LE: loop exit
PB: predicated region body
PF: predicated region fallthrough
CT: control target
= control target key end

     0   :  { %19 = vsyncpa [#allocation3], 0  ;;  %s6815_s0 = inlined_call_operand.vmem [shape: f32[2,24,6], index: 0, kind: input, shape index: {}]   ;;  %s6816_s1 = inlined_call_operand.vmem [shape: f32[6,128], index: 1, kind: input, shape index: {}]   ;;  %s6817_s2 = inlined_call_operand.vmem [shape: f32[1,128], index: 2, kind: input, shape index: {}]   ;;  %s6818_s3 = inlined_call_operand.hbm [shape: bf16[2,128,384], index: 3, kind: input, shape index: {}]   ;;  %s6819_s4 = inlined_call_operand.hbm [shape: bf16[2,128,128], index: 4, kind: input, shape index: {}]   ;;  %s6820_s5 = inlined_call_operand.vmem [shape: f32[2,1,128], index: 5, kind: input, shape index: {}]   ;;  %s6821_s6 = inlined_call_operand.vmem [shape: f32[2,1,128], index: 6, kind: input, shape index: {}]   ;;  %s6822_s7 = inlined_call_operand.vmem [shape: f32[2,1,128], index: 7, kind: input, shape index: {}]   ;;  %s6823_s8 = inlined_call_operand.hbm [shape: bf16[2,128,256], index: 8, kind: input, shape index: {}]   ;;  %s6824_s9 = inlined_call_operand.vmem [shape: f32[2,1,256], index: 9, kind: input, shape index: {}]   ;;  %s6825_s10 = inlined_call_operand.hbm [shape: bf16[2,256,128], index: 10, kind: input, shape index: {}]   ;;  %s6826_s11 = inlined_call_operand.vmem [shape: f32[2,1,128], index: 11, kind: input, shape index: {}]   ;;  %s6827_s12 = inlined_call_operand.vmem [shape: f32[2,1,128], index: 12, kind: input, shape index: {}]   ;;  %s6828_s13 = inlined_call_operand.vmem [shape: f32[2,1,128], index: 13, kind: input, shape index: {}]   ;;  %s6829_s14 = inlined_call_operand.hbm [shape: f32[2,24,128], index: 14, kind: output, shape index: {}]  }
   0x1   :  { %20 = vsyncpa [#allocation6], 0 }
   0x2   :  { %21 = vsyncpa [#allocation9], 0 }
   0x3   :  { %22 = vsyncpa [#allocation4], 0 }
   0x4   :  { %24 = vsyncpa [#allocation4 + $0x1], 0  ;;  %s5902_s29 = smov 0   ;;  %s5904_s30 = smov 0  }
   0x5   :  { %s5906_s15 = smov 0   ;;  %s5908_s16 = smov 0  }
   0x6 LB: > { %6837 = sst [smem:[#allocation15_spill]] %s5789_s29  ;;  %s5923_s17 = sadd.s32 4294967295, %s5801_s16   ;;  %s5801_s16 = sphi %s5908_s16, %s6851_s16   ;;  %s5797_s15 = sphi %s5906_s15, %s6853_s15   ;;  %s5793_s30 = sphi %s5904_s30, %s6855_s30   ;;  %s5789_s29 = sphi %s5902_s29, %s6854_s29  }
   0x7   : > { %6838 = sst [smem:[#allocation16_spill]] %s5797_s15  ;;  %s4458_s18 = sadd.s32 4294967294, %s5801_s16  }
   0x8   : > { %6839 = sst [smem:[#allocation17_spill]] %s5801_s16  ;;  %s5927_s19 = sadd.s32 1, %s5801_s16  }
   0x9   : > { %6840 = sst [smem:[#allocation18_spill]] %s5927_s19  ;;  %s336_s20 = sadd.s32 1, %s5797_s15 }
   0xa   : > { %s333_s21 = ssub.s32 %s5801_s16, %s5927_s19  ;;  %p346_p0 = scmp.ne.s32.totalorder %s5797_s15, %s5793_s30 }
   0xb   : > { %p334_p1 = scmp.eq.s32.totalorder %s333_s21, 0  ;;  %p347_p2 = scmp.eq.s32.totalorder %s5923_s17, 1 }
   0xc   : > { %p352_p3 = scmp.ne.s32.totalorder %s5793_s30, %s5789_s29  ;;  %p353_p4 = scmp.eq.s32.totalorder %s4458_s18, 1 }
   0xd   : > { %s5938_s22 = scalar_select %p334_p1, %s5797_s15, %s336_s20  }
   0xe   : > { %p5940_p5 = por %p347_p2, %p346_p0  ;;  %p5944_p6 = por %p353_p4, %p352_p3 }
   0xf   : > { %6841 = sst [smem:[#allocation19_spill]] %s5938_s22  ;;  %p4459_p7 = scmp.ge.s32.totalorder %s5801_s16, 1 }
  0x10   : > { %s6843_s24 = scalar_select %p5944_p6, 1, 0 }
  0x11   : > { %p360_p8 = scmp.lt.s32.totalorder %s5801_s16, 3  ;;  %p5250_p9 = scmp.eq.s32.totalorder %s5923_s17, 0 }
  0x12   : > { %6844 = sst [smem:[#allocation20_spill]] %s6843_s24  ;;  %s5803_s26 = smov [#allocation5]  }
  0x13   : > { %p5951_p10 = pnand %p4459_p7, %p360_p8  ;;  %s391_s27 = sshll.u32 %s5803_s26, 4  ;;  %s392_s27 = int_to_ptr.vmem [resolvable:$true] %s391_s27 }
  0x14   : > { %s5804_s18 = smov [#allocation2]   ;;  %s5636_s21 = scalar_lea.vmem %s392_s27, 2048 }
  0x15   : > { %p5233_p11 = pneg %p5951_p10  ;;  %s378_s20 = sshll.u32 %s5804_s18, 4  ;;  %s379_s20 = int_to_ptr.vmem [resolvable:$true] %s378_s20 }
  0x16   : > { %p5637_p0 = scmp.ne.s32.totalorder %s392_s27, %s5636_s21  ;;  %p5644_p3 = scmp.lt.s32.totalorder %s392_s27, %s392_s27 }
  0x17   : > { %p5959_p12 = pnand %p5250_p9, %p5233_p11  ;;  %p5645_p4 = scmp.lt.s32.totalorder %s5636_s21, %s5636_s21 }
  0x19   : > { %p5627_p13 = pneg %p5959_p12  ;;  %p5646_p7 = por %p5645_p4, %p5644_p3 }
  0x1b   : > { %p5639_p1 = pnand %p5637_p0, %p5627_p13 }
  0x1d   : > { %p5640_p2 = pneg %p5639_p1 }
  0x1f   : > { %p5647_p8 = pnand %p5646_p7, %p5640_p2 }
  0x21   : > { %5650 = shalt.err (!%p5647_p8)
}
  0x22   : > { %s6836_s26 = smov 64   ;;  %s5806_s22 = smov 4  }
  0x23   : > { %5239 = dma.hbm_to_vmem [thread:$0]  (!%p5959_p12), %s6819_s4, 2048, %s392_s27, [#allocation6], %s6836_s26, %s6836_s26, %s5806_s22  }
  0x24   : > { %s5662_s19 = scalar_lea.vmem %s379_s20, 6144  ;;  %p5670_p2 = scmp.lt.s32.totalorder %s379_s20, %s379_s20 }
  0x25   : > { %p5663_p11 = scmp.ne.s32.totalorder %s379_s20, %s5662_s19  ;;  %p5671_p3 = scmp.lt.s32.totalorder %s5662_s19, %s5662_s19 }
  0x27   : > { %p5665_p0 = pnand %p5663_p11, %p5627_p13  ;;  %p5672_p4 = por %p5671_p3, %p5670_p2 }
  0x29   : > { %p5666_p1 = pneg %p5665_p0 }
  0x2b   : > { %p5673_p7 = pnand %p5672_p4, %p5666_p1 }
  0x2d   : > { %5676 = shalt.err (!%p5673_p7)
}
  0x2e   : > { %s5807_s21 = smov 192   ;;  %s5808_s24 = smov 12  }
  0x2f   : > { %5236 = dma.hbm_to_vmem [thread:$0]  (!%p5959_p12), %s6818_s3, 6144, %s379_s20, [#allocation3], %s5807_s21, %s5807_s21, %s5808_s24  }
  0x30   : > { %s5809_s15 = smov [#allocation7]  }
  0x31   : > { %s413_s27 = sshll.u32 %s5809_s15, 4  ;;  %s414_s27 = int_to_ptr.vmem [resolvable:$true] %s413_s27 }
  0x32   : > { %s5688_s18 = scalar_lea.vmem %s414_s27, 4096  ;;  %p5696_p1 = scmp.lt.s32.totalorder %s414_s27, %s414_s27 }
  0x33   : > { %p5689_p8 = scmp.ne.s32.totalorder %s414_s27, %s5688_s18  ;;  %p5697_p2 = scmp.lt.s32.totalorder %s5688_s18, %s5688_s18 }
  0x35   : > { %p5691_p11 = pnand %p5689_p8, %p5627_p13  ;;  %p5698_p3 = por %p5697_p2, %p5696_p1 }
  0x37   : > { %p5692_p0 = pneg %p5691_p11 }
  0x39   : > { %p5699_p4 = pnand %p5698_p3, %p5692_p0 }
  0x3b   : > { %5702 = shalt.err (!%p5699_p4)
}
  0x3c   : > { %s5810_s19 = smov 128   ;;  %s5811_s26 = smov 8  }
  0x3d   : > { %5242 = dma.hbm_to_vmem [thread:$0]  (!%p5959_p12), %s6823_s8, 4096, %s414_s27, [#allocation6], %s5810_s19, %s5810_s19, %s5811_s26  }
  0x3e   : > { %s5812_s24 = smov [#allocation8]  }
  0x3f   : > { %s429_s20 = sshll.u32 %s5812_s24, 4  ;;  %s430_s20 = int_to_ptr.vmem [resolvable:$true] %s429_s20 }
  0x40   : > { %s5714_s21 = scalar_lea.vmem %s430_s20, 4096  ;;  %p5722_p0 = scmp.lt.s32.totalorder %s430_s20, %s430_s20 }
  0x41   : > { %p5715_p7 = scmp.ne.s32.totalorder %s430_s20, %s5714_s21  ;;  %p5723_p1 = scmp.lt.s32.totalorder %s5714_s21, %s5714_s21 }
  0x43   : > { %p5717_p8 = pnand %p5715_p7, %p5627_p13  ;;  %p5724_p2 = por %p5723_p1, %p5722_p0 }
  0x45   : > { %p5718_p11 = pneg %p5717_p8 }
  0x47   : > { %p5725_p3 = pnand %p5724_p2, %p5718_p11 }
  0x49   : > { %5728 = shalt.err (!%p5725_p3)
}
  0x4a   : > { %s6847_s15 = smov 64   ;;  %462 = sbr.rel (%p5951_p10) target bundleno = 4218 (0x107a), region = 76 }
  0x4b   : > { %5245 = dma.hbm_to_vmem [thread:$0]  (!%p5959_p12), %s6825_s10, 4096, %s430_s20, [#allocation9], %s6847_s15, %s6847_s15, %s5806_s22  }
  0x4f   : > { %5772 = dma.done.wait (%p5250_p9), [#allocation3], 6144  }
  0x50   : > { %5774 = vsyncadd (%p5250_p9), [#allocation3], 4294961152 }
  0x51   : > { %5776 = dma.done.wait (%p5250_p9), [#allocation6], 6144  }
  0x52   : > { %5778 = vsyncadd (%p5250_p9), [#allocation6], 4294961152 }
  0x53   : > { %5780 = dma.done.wait (%p5250_p9), [#allocation9], 4096  }
  0x54   : > { %5782 = vsyncadd (%p5250_p9), [#allocation9], 4294963200  ;;  %p520_p10 = scmp.lt.s32.totalorder %s5923_s17, 1  ;;  %v5813_v0 = vmov 1   ;;  %v5814_v1 = vmov 0   ;;  %v5815_v8 = vmov 2   ;;  %v546_v36 = vlaneseq }
  0x55   : > { %5315 = vset.pattern.permute.xlu1 %v5813_v0  ;;  %5314 = vset.pattern.permute.xlu0 %v5814_v1  ;;  %v5361_v4 = vld [vmem:[#allocation2 + $0xac] ss:$12 sps:$4 sm:$0xff]   ;;  %v5363_v5 = vld [vmem:[#allocation2 + $0xa8] ss:$12 sps:$4 sm:$0xff]   ;;  %v5366_v7 = vld [vmem:[#allocation2 + $0x90] ss:$12 sps:$4 sm:$0xff]  }
  0x56   : > { %s521_s22 = scalar_select %p520_p10, %s5923_s17, 1  ;;  %937 = vmatprep.mubr.bf16.mxu0 %v5814_v1  ;;  %905 = vmatprep.subr.bf16.mxu0 %v5361_v4  ;;  %v5364_v6 = vld [vmem:[#allocation2 + $0x94] ss:$12 sps:$4 sm:$0xff]   ;;  %v5367_v9 = vld [vmem:[#allocation2 + $0x7c] ss:$12 sps:$4 sm:$0xff]   ;;  %v5816_v11 = vmov 3  }
  0x57   : > { %906 = vmatpush1.bf16.msra.mxu0 %v5363_v5  ;;  %v5369_v10 = vld [vmem:[#allocation2 + $0x78] ss:$12 sps:$4 sm:$0xff]   ;;  %v5372_v14 = vld [vmem:[#allocation2 + $0x60] ss:$12 sps:$4 sm:$0xff]   ;;  %v5373_v15 = vld [vmem:[#allocation2 + $0xb0] ss:$12 sps:$4 sm:$0xff]  }
  0x58   : > { %s5213_s25 = smul.u32 24, %s521_s22  ;;  %907 = vmatprep.subr.bf16.mxu0 %v5364_v6  ;;  %v5370_v13 = vld [vmem:[#allocation2 + $0x64] ss:$12 sps:$4 sm:$0xff]   ;;  %v5817_v16 = vmov 4   ;;  %v5374_v17 = vld [vmem:[#allocation2 + $0x4c] ss:$12 sps:$4 sm:$0xff]   ;;  %4886 = vmatprep.subr.bf16.mxu1 %v5373_v15 }
  0x59   : > { %v5376_v18 = vld [vmem:[#allocation2 + $0x48] ss:$12 sps:$4 sm:$0xff]   ;;  %4887 = vmatpush3.bf16.msra.mxu1 %v5373_v15  ;;  %v5377_v19 = vld [vmem:[#allocation2 + $0x98] ss:$12 sps:$4 sm:$0xff]   ;;  %v5818_v21 = vmov 5   ;;  %v547_v38 = vshrl.u32 %v546_v36, 7 }
  0x5a   : > { %s524_s19 = scalar_lea.vmem %s6815_s0, %s5213_s25  ;;  %v5378_v20 = vld [vmem:[#allocation2 + $0x34] ss:$12 sps:$4 sm:$0xff]   ;;  %4888 = vmatprep.subr.bf16.mxu1 %v5377_v19  ;;  %v5380_v23 = vld [vmem:[#allocation2 + $0x30] ss:$12 sps:$4 sm:$0xff]   ;;  %v5384_v26 = vld [vmem:[#allocation2 + $0x18] ss:$12 sps:$4 sm:$0xff]  }
  0x5b   : > { %v6025_v2 = vld [vmem:[%s524_s19] sm:$0xff]  ;;  %v527_v3 = vld [vmem:[%s524_s19 + $0x8] sm:$0xff]  ;;  %908 = vmatpush1.bf16.msra.mxu0 %v5366_v7  ;;  %v6035_v12 = vld [vmem:[%s524_s19 + $0x10] sm:$0xff]  ;;  %v6049_v41 = vsub.s32 0, %v547_v38  ;;  %v6055_v46 = vsub.s32 1, %v547_v38  ;;  %v598_v48 = vsub.s32 2, %v547_v38 }
  0x5c   : > { %563 = vperm.xlu1 %5315, %v6025_v2   ;;  %533 = vperm.xlu0 %5314, %v6025_v2   ;;  %v5381_v22 = vld [vmem:[#allocation2 + $0x80] ss:$12 sps:$4 sm:$0xff]   ;;  %v5382_v24 = vld [vmem:[#allocation2 + $0x1c] ss:$12 sps:$4 sm:$0xff]   ;;  %v5386_v27 = vld [vmem:[#allocation2 + $0x4] ss:$12 sps:$4 sm:$0xff]  }
  0x5d   : > { %909 = vmatprep.subr.bf16.mxu0 %v5367_v9  ;;  %4889 = vmatpush3.bf16.msra.mxu1 %v5377_v19  ;;  %v5385_v25 = vld [vmem:[#allocation2 + $0x68] ss:$12 sps:$4 sm:$0xff]   ;;  %v5388_v28 = vld [vmem:[#allocation2] ss:$12 sps:$4 sm:$0xff]   ;;  %v5389_v29 = vld [vmem:[#allocation2 + $0x50] ss:$12 sps:$4 sm:$0xff]  }
  0x5e   : > { %4890 = vmatprep.subr.bf16.mxu1 %v5381_v22  ;;  %v5390_v30 = vld [vmem:[#allocation2 + $0x38] ss:$12 sps:$4 sm:$0xff]   ;;  %v5391_v31 = vld [vmem:[#allocation2 + $0x20] ss:$12 sps:$4 sm:$0xff]   ;;  %v5392_v32 = vld [vmem:[#allocation2 + $0x8] ss:$12 sps:$4 sm:$0xff]  }
  0x5f   : > { %910 = vmatpush1.bf16.msra.mxu0 %v5369_v10  ;;  %v529_v42 = vld [vmem:[%s6816_s1] sm:$0x3f]  ;;  %v620_v51 = vsub.s32 3, %v547_v38  ;;  %v642_v53 = vsub.s32 4, %v547_v38  ;;  %v664_v62 = vsub.s32 5, %v547_v38  ;;  %vm5820_vm0 = vmmov 0  }
  0x60   : > { %567 = vperm.xlu1 %5315, %v527_v3   ;;  %538 = vperm.xlu0 %5314, %v527_v3   ;;  %v549_v44 = vrot.slane %v529_v42, %v6049_v41  ;;  %v4471_v52 = vld [vmem:[%s6817_s2] ss:$0 sm:$0xff]  ;;  %v577_v54 = vrot.slane %v529_v42, %v6055_v46  ;;  %v599_v56 = vrot.slane %v529_v42, %v598_v48  ;;  %s5821_s21 = smov 96   ;;  %vm1076_vm1 = vcmask 261120   ;;  %s5822_s15 = smov 32  }
  0x61   : > { %911 = vmatprep.subr.bf16.mxu0 %v5370_v13  ;;  %4891 = vmatpush3.bf16.msra.mxu1 %v5381_v22  ;;  %v621_v61 = vrot.slane %v529_v42, %v620_v51  ;;  %v643_v63 = vrot.slane %v529_v42, %v642_v53  ;;  %s5823_s26 = smov 64   ;;  %vm1457_vm2 = vcmask 195584   ;;  %vm1985_vm3 = vcmask 523264   ;;  %s517_s22 = sand.u32 1, %s5793_s30  }
  0x62   : > { %4892 = vmatprep.subr.bf16.mxu1 %v5385_v25  ;;  %vm1989_vm4 = vcmask 785408   ;;  %s5212_s25 = smul.u32 24, %s517_s22 }
  0x63   : > { %912 = vmatpush1.bf16.msra.mxu0 %v5372_v14 }
  0x64   : > { %5317 = vset.pattern.permute.xlu1 %v5815_v8  ;;  %5316 = vset.pattern.permute.xlu0 %v5815_v8 }
  0x65   : > { %589 = vperm.xlu1 %5317, %v527_v3   ;;  %585 = vperm.xlu0 %5316, %v6025_v2  }
  0x66   : > { %913 = vmatprep.subr.bf16.mxu0 %v5374_v17  ;;  %4893 = vmatpush3.bf16.msra.mxu1 %v5385_v25 }
  0x67   : > { %914 = vmatpush1.bf16.msra.mxu0 %v5376_v18  ;;  %4894 = vmatprep.subr.bf16.mxu1 %v5389_v29 }
  0x68   : > { %915 = vmatprep.subr.bf16.mxu0 %v5378_v20 }
  0x69   : > { %5318 = vset.pattern.permute.xlu1 %v5816_v11  ;;  %5319 = vset.pattern.permute.xlu0 %v5816_v11 }
  0x6a   : > { %607 = vperm.xlu1 %5318, %v6025_v2   ;;  %611 = vperm.xlu0 %5319, %v527_v3  }
  0x6b   : > { %916 = vmatpush1.bf16.msra.mxu0 %v5380_v23  ;;  %4895 = vmatpush3.bf16.msra.mxu1 %v5389_v29 }
  0x6c   : > { %917 = vmatprep.subr.bf16.mxu0 %v5382_v24  ;;  %4896 = vmatprep.subr.bf16.mxu1 %v5390_v30 }
  0x6e   : > { %5320 = vset.pattern.permute.xlu1 %v5814_v1  ;;  %5322 = vset.pattern.permute.xlu0 %v5817_v16 }
  0x6f   : > { %543 = vperm.xlu1 %5320, %v6035_v12   ;;  %633 = vperm.xlu0 %5322, %v527_v3  }
  0x70   : > { %918 = vmatpush1.bf16.msra.mxu0 %v5384_v26  ;;  %4897 = vmatpush3.bf16.msra.mxu1 %v5390_v30 }
  0x71   : > { %919 = vmatprep.subr.bf16.mxu0 %v5386_v27  ;;  %4898 = vmatprep.subr.bf16.mxu1 %v5391_v31 }
  0x73   : > { %5321 = vset.pattern.permute.xlu1 %v5817_v16  ;;  %5325 = vset.pattern.permute.xlu0 %v5818_v21 }
  0x74   : > { %629 = vperm.xlu1 %5321, %v6025_v2   ;;  %655 = vperm.xlu0 %5325, %v527_v3  }
  0x75   : > { %920 = vmatpush1.bf16.msra.mxu0 %v5388_v28  ;;  %4899 = vmatpush3.bf16.msra.mxu1 %v5391_v31 }
  0x76   : > { %4900 = vmatprep.subr.bf16.mxu1 %v5392_v32 }
  0x78   : > { %5323 = vset.pattern.permute.xlu1 %v5813_v0  ;;  %5328 = vset.pattern.permute.xlu0 %v5817_v16 }
  0x79   : > { %571 = vperm.xlu1 %5323, %v6035_v12   ;;  %637 = vperm.xlu0 %5328, %v6035_v12  }
  0x7a   : > { %4901 = vmatpush3.bf16.msra.mxu1 %v5392_v32 }
  0x7d   : > { %5324 = vset.pattern.permute.xlu1 %v5818_v21  ;;  %5360 = vset.pattern.permute.xlu0 %v5818_v21 }
  0x7e   : > { %651 = vperm.xlu1 %5324, %v6025_v2  }
  0x82   : > { %5326 = vset.pattern.permute.xlu1 %v5815_v8  ;;  %v665_v8 = vrot.slane %v529_v42, %v664_v62 }
  0x83   : > { %593 = vperm.xlu1 %5326, %v6035_v12  }
  0x87   : > { %5327 = vset.pattern.permute.xlu1 %v5816_v11 }
  0x88   : > { %615 = vperm.xlu1 %5327, %v6035_v12  }
  0x8c   : > { %5329 = vset.pattern.permute.xlu1 %v5818_v21 }
  0x8d   : > { %659 = vperm.xlu1 %5329, %v6035_v12  }
  0xd7   : > { %v564_v33 = vpop.permute.xlu1 %563  ;;  %v534_v34 = vpop.permute.xlu0 %533 }
  0xd8   : > { %v550_v50 = vmul.f32 %v549_v44, %v534_v34  ;;  %v578_v0 = vmul.f32 %v577_v54, %v564_v33 }
  0xda   : > { %v559_v59 = vadd.f32 %v4471_v52, %v550_v50 }
  0xdb   : > { %v568_v35 = vpop.permute.xlu1 %567  ;;  %v539_v37 = vpop.permute.xlu0 %538 }
  0xdc   : > { %v551_v47 = vmul.f32 %v549_v44, %v539_v37  ;;  %v579_v60 = vmul.f32 %v577_v54, %v568_v35  ;;  %v581_v5 = vadd.f32 %v578_v0, %v559_v59 }
  0xde   : > { %v560_v55 = vadd.f32 %v4471_v52, %v551_v47 }
  0xe0   : > { %v590_v39 = vpop.permute.xlu1 %589  ;;  %v586_v40 = vpop.permute.xlu0 %585  ;;  %v582_v2 = vadd.f32 %v579_v60, %v560_v55 }
  0xe1   : > { %v601_v3 = vmul.f32 %v599_v56, %v590_v39  ;;  %v600_v4 = vmul.f32 %v599_v56, %v586_v40 }
  0xe3   : > { %v604_v11 = vadd.f32 %v601_v3, %v582_v2  ;;  %v603_v12 = vadd.f32 %v600_v4, %v581_v5 }
  0xe5   : > { %v608_v43 = vpop.permute.xlu1 %607  ;;  %v612_v45 = vpop.permute.xlu0 %611 }
  0xe6   : > { %v622_v6 = vmul.f32 %v621_v61, %v608_v43  ;;  %v623_v7 = vmul.f32 %v621_v61, %v612_v45  ;;  %v5819_v43 = vmov 0.0  }
  0xe7   : > { %4906 = vmatprep.subr.mxu1 %v5819_v43  ;;  %4951 = vmatprep.subr.mxu0 %v5819_v43 }
  0xe8   : > { %v625_v15 = vadd.f32 %v622_v6, %v603_v12  ;;  %v626_v16 = vadd.f32 %v623_v7, %v604_v11 }
  0xea   : > { %v544_v49 = vpop.permute.xlu1 %543  ;;  %v634_v57 = vpop.permute.xlu0 %633 }
  0xeb   : > { %v645_v13 = vmul.f32 %v643_v63, %v634_v57  ;;  %v552_v22 = vmul.f32 %v549_v44, %v544_v49 }
  0xed   : > { %v648_v19 = vadd.f32 %v645_v13, %v626_v16  ;;  %v561_v28 = vadd.f32 %v4471_v52, %v552_v22 }
  0xef   : > { %v630_v58 = vpop.permute.xlu1 %629  ;;  %v656_v10 = vpop.permute.xlu0 %655 }
  0xf0   : > { %v644_v14 = vmul.f32 %v643_v63, %v630_v58  ;;  %v667_v17 = vmul.f32 %v665_v8, %v656_v10 }
  0xf2   : > { %v647_v20 = vadd.f32 %v644_v14, %v625_v15  ;;  %v6061_v23 = vadd.f32 %v667_v17, %v648_v19 }
  0xf4   : > { %v572_v9 = vpop.permute.xlu1 %571  ;;  %v638_v30 = vpop.permute.xlu0 %637 }
  0xf5   : > { %v580_v25 = vmul.f32 %v577_v54, %v572_v9  ;;  %v646_v35 = vmul.f32 %v643_v63, %v638_v30 }
  0xf7   : > { %v583_v31 = vadd.f32 %v580_v25, %v561_v28 }
  0xf9   : > { %v652_v18 = vpop.permute.xlu1 %651 }
  0xfa   : > { %v666_v21 = vmul.f32 %v665_v8, %v652_v18 }
  0xfc   : > { %v6063_v24 = vadd.f32 %v666_v21, %v647_v20 }
  0xfe   : > { %v594_v26 = vpop.permute.xlu1 %593  ;;  %v775_v27 = vpack.c.bf16 %v6061_v23, %v6063_v24 }
  0xff   : > { %v602_v29 = vmul.f32 %v599_v56, %v594_v26 }
 0x100   : > { %938 = vmatmul.mubr.bf16.vlgmr.msra.gmra.mxu0 %v775_v27  ;;  %4902 = vmatprep.mubr.bf16.mxu1 %v775_v27 }
 0x101   : > { %947 = vmatprep.mubr.bf16.mxu0 %v5814_v1  ;;  %v605_v33 = vadd.f32 %v602_v29, %v583_v31 }
 0x103   : > { %v616_v32 = vpop.permute.xlu1 %615 }
 0x104   : > { %v624_v34 = vmul.f32 %v621_v61, %v616_v32 }
 0x106   : > { %v627_v36 = vadd.f32 %v624_v34, %v605_v33 }
 0x108   : > { %v649_v37 = vadd.f32 %v646_v35, %v627_v36  ;;  %v660_v38 = vpop.permute.xlu1 %659 }
 0x109   : > { %v668_v39 = vmul.f32 %v665_v8, %v660_v38 }
 0x10b   : > { %v6068_v40 = vadd.f32 %v668_v39, %v649_v37 }
 0x10d   : > { %v776_v42 = vpack.c.bf16 %v6068_v40, %v6068_v40 }
 0x10f   : > { %948 = vmatmul.mubr.bf16.gmra.mxu0 %v776_v42  ;;  %4903 = vmatmul.mubr.bf16.vlgmr.msra.gmra.mxu1 %v776_v42 }
 0x110   : > { %4912 = vmatprep.mubr.msk.f32.mxu1 %vm5820_vm0, %v5819_v43  ;;  %4957 = vmatprep.mubr.msk.f32.mxu0 %vm5820_vm0, %v5819_v43 }
 0x1c0   : > { %v939_v44 = vpop.f32.mrf.mxu0 }
 0x1c2   : > { %v941_v45 = vpop.f32.mrf.mxu0 }
 0x1c4   : > { %v943_v47 = vpop.f32.mrf.mxu0 }
 0x1c6   : > { %v945_v48 = vpop.f32.mrf.mxu0 }
 0x1c7   : > { %1030 = vrot.lane.b32.xlu0 %v945_v48, %s5821_s21 }
 0x1cb   : > { %1007 = vrot.lane.b32.xlu0 %v939_v44, %s5821_s21 }
 0x1cf   : > { %1009 = vrot.lane.b32.xlu0 %v943_v47, %s5821_s21  ;;  %v949_v49 = vpop.f32.mrf.mxu0  ;;  %v6081_v50 = vpop.f32.mrf.mxu1 }
 0x1d1   : > { %v951_v51 = vpop.f32.mrf.mxu0  ;;  %v6083_v52 = vpop.f32.mrf.mxu1 }
 0x1d2   : > { %1032 = vrot.lane.b32.xlu1 %v951_v51, %s5821_s21  ;;  %4907 = vmatpush3.xpose.msk.msra.mxu1 %vm1076_vm1, %v951_v51 }
 0x1d3   : > { %v4905_v53 = vpop.f32.mrf.mxu1  ;;  %1044 = vrot.lane.b32.xlu0 %v951_v51, %s5822_s15  ;;  %v953_v54 = vpop.f32.mrf.mxu0  ;;  %4908 = vmatprep.subr.mxu1 %v5819_v43 }
 0x1d5   : > { %v954_v55 = vpop.f32.mrf.mxu0  ;;  %v6167_v11 = vpop.f32.mrf.mxu1 }
 0x1d6   : > { %1028 = vrot.lane.b32.xlu1 %v941_v45, %s5821_s21  ;;  %4909 = vmatpush3.xpose.msk.msra.mxu1 %vm1076_vm1, %v945_v48 }
 0x1d7   : > { %1034 = vrot.lane.b32.xlu0 %v941_v45, %s5823_s26  ;;  %4910 = vmatprep.subr.mxu1 %v5819_v43 }
 0x1da   : > { %1036 = vrot.lane.b32.xlu1 %v945_v48, %s5823_s26  ;;  %4911 = vmatpush3.xpose.msk.msra.mxu1 %vm1076_vm1, %v941_v45 }
 0x1db   : > { %1013 = vrot.lane.b32.xlu0 %v939_v44, %s5823_s26  ;;  %4921 = vmatprep.subr.mxu1 %v5819_v43 }
 0x1dd   : > { %4913 = vmatmul.mubr.msk.f32.vlgmr.msra.gmra.mxu1 %vm1076_vm1, %v939_v44 }
 0x1de   : > { %1038 = vrot.lane.b32.xlu1 %v951_v51, %s5823_s26  ;;  %4915 = vmatprep.mubr.msk.f32.mxu1 %vm5820_vm0, %v5819_v43 }
 0x1df   : > { %1015 = vrot.lane.b32.xlu0 %v943_v47, %s5823_s26 }
 0x1e1   : > { %4916 = vmatmul.mubr.msk.f32.gmra.mxu1 %vm1076_vm1, %v943_v47 }
 0x1e2   : > { %1011 = vrot.lane.b32.xlu1 %v949_v49, %s5821_s21  ;;  %4918 = vmatprep.mubr.msk.f32.mxu1 %vm5820_vm0, %v5819_v43 }
 0x1e3   : > { %1017 = vrot.lane.b32.xlu0 %v949_v49, %s5823_s26 }
 0x1e5   : > { %4919 = vmatmul.mubr.msk.f32.gmra.mxu1 %vm1076_vm1, %v949_v49 }
 0x1e6   : > { %1042 = vrot.lane.b32.xlu1 %v945_v48, %s5822_s15  ;;  %4927 = vmatprep.mubr.msk.f32.mxu1 %vm5820_vm0, %v5819_v43 }
 0x1e7   : > { %1023 = vrot.lane.b32.xlu0 %v949_v49, %s5822_s15 }
 0x1ea   : > { %1040 = vrot.lane.b32.xlu1 %v941_v45, %s5822_s15 }
 0x1ee   : > { %1019 = vrot.lane.b32.xlu1 %v939_v44, %s5822_s15 }
 0x1f2   : > { %1021 = vrot.lane.b32.xlu1 %v943_v47, %s5822_s15 }
 0x239   : > { %v1031_v56 = vpop.permute.xlu0 %1030 }
 0x23d   : > { %v1008_v57 = vpop.permute.xlu0 %1007 }
 0x241   : > { %v1010_v58 = vpop.permute.xlu0 %1009 }
 0x244   : > { %v1033_v59 = vpop.permute.xlu1 %1032 }
 0x245   : > { %4922 = vmatpush3.xpose.msk.msra.mxu1 %vm1076_vm1, %v1033_v59  ;;  %v1045_v60 = vpop.permute.xlu0 %1044 }
 0x246   : > { %4952 = vmatpush3.xpose.msk.msra.mxu0 %vm1076_vm1, %v1045_v60  ;;  %4923 = vmatprep.subr.mxu1 %v5819_v43 }
 0x247   : > { %4953 = vmatprep.subr.mxu0 %v5819_v43 }
 0x248   : > { %v1029_v61 = vpop.permute.xlu1 %1028 }
 0x249   : > { %4924 = vmatpush3.xpose.msk.msra.mxu1 %vm1076_vm1, %v1031_v56  ;;  %v1035_v63 = vpop.permute.xlu0 %1034 }
 0x24a   : > { %4925 = vmatprep.subr.mxu1 %v5819_v43 }
 0x24c   : > { %v1037_v62 = vpop.permute.xlu1 %1036 }
 0x24d   : > { %4926 = vmatpush3.xpose.msk.msra.mxu1 %vm1076_vm1, %v1029_v61  ;;  %v1014_v3 = vpop.permute.xlu0 %1013 }
 0x24e   : > { %4936 = vmatprep.subr.mxu1 %v5819_v43 }
 0x250   : > { %v1039_v0 = vpop.permute.xlu1 %1038  ;;  %4928 = vmatmul.mubr.msk.f32.vlgmr.msra.gmra.mxu1 %vm1076_vm1, %v1008_v57 }
 0x251   : > { %4937 = vmatpush3.xpose.msk.msra.mxu1 %vm1076_vm1, %v1039_v0  ;;  %4930 = vmatprep.mubr.msk.f32.mxu1 %vm5820_vm0, %v5819_v43  ;;  %v1016_v5 = vpop.permute.xlu0 %1015 }
 0x252   : > { %4938 = vmatprep.subr.mxu1 %v5819_v43 }
 0x254   : > { %v1012_v2 = vpop.permute.xlu1 %1011  ;;  %4931 = vmatmul.mubr.msk.f32.gmra.mxu1 %vm1076_vm1, %v1010_v58 }
 0x255   : > { %4939 = vmatpush3.xpose.msk.msra.mxu1 %vm1076_vm1, %v1037_v62  ;;  %4933 = vmatprep.mubr.msk.f32.mxu1 %vm5820_vm0, %v5819_v43  ;;  %v1018_v8 = vpop.permute.xlu0 %1017 }
 0x256   : > { %4940 = vmatprep.subr.mxu1 %v5819_v43 }
 0x258   : > { %v1043_v4 = vpop.permute.xlu1 %1042  ;;  %4934 = vmatmul.mubr.msk.f32.gmra.mxu1 %vm1076_vm1, %v1012_v2 }
 0x259   : > { %4941 = vmatpush3.xpose.msk.msra.mxu1 %vm1076_vm1, %v1035_v63  ;;  %4954 = vmatpush3.xpose.msk.msra.mxu0 %vm1076_vm1, %v1043_v4  ;;  %v1024_v10 = vpop.permute.xlu0 %1023 }
 0x25a   : > { %4942 = vmatprep.mubr.msk.f32.mxu1 %vm5820_vm0, %v5819_v43  ;;  %5206 = vmatprep.subr.mxu1 %v5819_v43 }
 0x25b   : > { %4955 = vmatprep.subr.mxu0 %v5819_v43 }
 0x25c   : > { %v1041_v6 = vpop.permute.xlu1 %1040  ;;  %4943 = vmatmul.mubr.msk.f32.vlgmr.msra.gmra.mxu1 %vm1076_vm1, %v1014_v3 }
 0x25d   : > { %5209 = vmatpush3.xpose.msk.msra.mxu1 %vm1076_vm1, %v1045_v60  ;;  %4956 = vmatpush3.xpose.msk.msra.mxu0 %vm1076_vm1, %v1041_v6 }
 0x25e   : > { %4945 = vmatprep.mubr.msk.f32.mxu1 %vm5820_vm0, %v5819_v43  ;;  %5207 = vmatprep.subr.mxu1 %v5819_v43 }
 0x25f   : > { %4981 = vmatprep.subr.mxu0 %v5819_v43 }
 0x260   : > { %v1020_v7 = vpop.permute.xlu1 %1019  ;;  %4946 = vmatmul.mubr.msk.f32.gmra.mxu1 %vm1076_vm1, %v1016_v5 }
 0x261   : > { %5210 = vmatpush3.xpose.msk.msra.mxu1 %vm1076_vm1, %v1043_v4  ;;  %4958 = vmatmul.mubr.msk.f32.vlgmr.msra.gmra.mxu0 %vm1076_vm1, %v1020_v7 }
 0x262   : > { %4948 = vmatprep.mubr.msk.f32.mxu1 %vm5820_vm0, %v5819_v43  ;;  %5208 = vmatprep.subr.mxu1 %v5819_v43 }
 0x263   : > { %4960 = vmatprep.mubr.msk.f32.mxu0 %vm5820_vm0, %v5819_v43 }
 0x264   : > { %v1022_v9 = vpop.permute.xlu1 %1021  ;;  %4949 = vmatmul.mubr.msk.f32.gmra.mxu1 %vm1076_vm1, %v1018_v8 }
 0x265   : > { %5211 = vmatpush3.xpose.msk.msra.mxu1 %vm1076_vm1, %v1041_v6  ;;  %4961 = vmatmul.mubr.msk.f32.gmra.mxu0 %vm1076_vm1, %v1022_v9 }
 0x266   : > { %4963 = vmatprep.mubr.msk.f32.mxu1 %vm5820_vm0, %v5819_v43  ;;  %4966 = vmatprep.subr.mxu1 %v5819_v43 }
 0x267   : > { %4987 = vmatprep.mubr.msk.f32.mxu0 %vm5820_vm0, %v5819_v43 }
 0x268   : > { %4964 = vmatmul.mubr.msk.f32.vlgmr.msra.gmra.mxu1 %vm1076_vm1, %v1024_v10 }
 0x269   : > { %4967 = vmatpush3.msra.mxu1 %v6081_v50  ;;  %4972 = vmatprep.mubr.msk.f32.mxu1 %vm5820_vm0, %v5819_v43 }
 0x26a   : > { %4968 = vmatprep.subr.mxu1 %v5819_v43 }
 0x26b   : > { %4969 = vmatpush3.msra.mxu1 %v6167_v11 }
 0x26c   : > { %4970 = vmatprep.subr.mxu1 %v5819_v43 }
 0x26d   : > { %4971 = vmatpush3.msra.mxu1 %v6083_v52 }
 0x26e   : > { %4996 = vmatprep.subr.mxu1 %v5819_v43 }
 0x29d   : > { %v1155_v12 = vpop.f32.mrf.mxu1 }
 0x29e   : > { %v6174_v13 = vmul.f32 0.17677669, %v1155_v12 }
 0x29f   : > { %v4914_v14 = vpop.f32.mrf.mxu1 }
 0x2a0   : > { %v1458_v15 = vsel %vm1457_vm2, %v6174_v13, -inf }
 0x2a1   : > { %1459 = vmax.xlane.f32.xlu1 %v1458_v15  ;;  %v1160_v16 = vpop.f32.mrf.mxu1 }
 0x2a2   : > { %v6178_v17 = vmul.f32 0.17677669, %v1160_v16 }
 0x2a3   : > { %v4917_v18 = vpop.f32.mrf.mxu1 }
 0x2a4   : > { %v1461_v19 = vsel %vm1457_vm2, %v6178_v17, -inf }
 0x2a5   : > { %1462 = vmax.xlane.f32.xlu0 %v1461_v19  ;;  %v1165_v20 = vpop.f32.mrf.mxu1 }
 0x2a6   : > { %v6182_v21 = vmul.f32 0.17677669, %v1165_v20 }
 0x2a7   : > { %v4920_v22 = vpop.f32.mrf.mxu1 }
 0x2a8   : > { %v1464_v25 = vsel %vm1457_vm2, %v6182_v21, -inf }
 0x2a9   : > { %1465 = vmax.xlane.f32.xlu0 %v1464_v25 }
 0x2b2   : > { %1051 = vrot.lane.b32.xlu1 %v6167_v11, %s5821_s21 }
 0x2b6   : > { %1049 = vrot.lane.b32.xlu1 %v6083_v52, %s5821_s21 }
 0x310   : > { %v1247_v26 = vpop.f32.mrf.mxu1 }
 0x311   : > { %v6190_v27 = vmul.f32 0.17677669, %v1247_v26 }
 0x312   : > { %v4929_v28 = vpop.f32.mrf.mxu1 }
 0x313   : > { %v1467_v29 = vsel %vm1457_vm2, %v6190_v27, -inf }
 0x314   : > { %1468 = vmax.xlane.f32.xlu0 %v1467_v29  ;;  %v1252_v30 = vpop.f32.mrf.mxu1 }
 0x315   : > { %v6196_v44 = vmul.f32 0.17677669, %v1252_v30 }
 0x316   : > { %v4932_v31 = vpop.f32.mrf.mxu1 }
 0x317   : > { %v1470_v55 = vsel %vm1457_vm2, %v6196_v44, -inf }
 0x318   : > { %v1257_v32 = vpop.f32.mrf.mxu1 }
 0x319   : > { %v6206_v57 = vmul.f32 0.17677669, %v1257_v32 }
 0x31a   : > { %v4935_v33 = vpop.f32.mrf.mxu1 }
 0x31b   : > { %v1473_v59 = vsel %vm1457_vm2, %v6206_v57, -inf }
 0x31c   : > { %v1339_v34 = vpop.f32.mrf.mxu1 }
 0x31d   : > { %v6214_v60 = vmul.f32 0.17677669, %v1339_v34 }
 0x31e   : > { %v4944_v35 = vpop.f32.mrf.mxu1 }
 0x31f   : > { %v1476_v62 = vsel %vm1457_vm2, %v6214_v60, -inf }
 0x320   : > { %v1344_v36 = vpop.f32.mrf.mxu1 }
 0x321   : > { %v1431_v37 = vpop.f32.mrf.mxu0  ;;  %v6216_v61 = vmul.f32 0.17677669, %v1344_v36 }
 0x322   : > { %v6194_v38 = vmul.f32 0.17677669, %v1431_v37  ;;  %v4947_v39 = vpop.f32.mrf.mxu1 }
 0x323   : > { %v4959_v42 = vpop.f32.mrf.mxu0  ;;  %v1479_v0 = vsel %vm1457_vm2, %v6216_v61, -inf }
 0x324   : > { %v1349_v45 = vpop.f32.mrf.mxu1  ;;  %v1485_v47 = vsel %vm1457_vm2, %v6194_v38, -inf }
 0x325   : > { %1486 = vmax.xlane.f32.xlu1 %v1485_v47  ;;  %v1436_v48 = vpop.f32.mrf.mxu0  ;;  %v6220_v63 = vmul.f32 0.17677669, %v1349_v45 }
 0x326   : > { %v4950_v49 = vpop.f32.mrf.mxu1  ;;  %v6200_v53 = vmul.f32 0.17677669, %v1436_v48 }
 0x327   : > { %v4962_v51 = vpop.f32.mrf.mxu0  ;;  %v1482_v2 = vsel %vm1457_vm2, %v6220_v63, -inf }
 0x328   : > { %v1441_v54 = vpop.f32.mrf.mxu1  ;;  %v1488_v58 = vsel %vm1457_vm2, %v6200_v53, -inf }
 0x329   : > { %1471 = vmax.xlane.f32.xlu1 %v1470_v55  ;;  %v6226_v3 = vmul.f32 0.17677669, %v1441_v54 }
 0x32a   : > { %1053 = vrot.lane.b32.xlu0 %v6081_v50, %s5821_s21  ;;  %v4965_v56 = vpop.f32.mrf.mxu1  ;;  %v1460_v5 = vpop.xlane.xlu1 %1459 }
 0x32b   : > { %v1491_v4 = vsel %vm1457_vm2, %v6226_v3, -inf  ;;  %v1494_v7 = vsub.f32 %v6174_v13, %v1460_v5 }
 0x32d   : > { %1489 = vmax.xlane.f32.xlu1 %v1488_v58  ;;  %v1506_v8 = vmul.f32 1.442695, %v1494_v7 }
 0x32e   : > { %v1463_v6 = vpop.xlane.xlu0 %1462 }
 0x32f   : > { %v1495_v9 = vsub.f32 %v6178_v17, %v1463_v6  ;;  %5521 = vpow2.f32 %v1506_v8 }
 0x331   : > { %1474 = vmax.xlane.f32.xlu1 %v1473_v59  ;;  %v1508_v12 = vmul.f32 1.442695, %v1495_v9 }
 0x332   : > { %v1466_v10 = vpop.xlane.xlu0 %1465 }
 0x333   : > { %v1496_v14 = vsub.f32 %v6182_v21, %v1466_v10  ;;  %5523 = vpow2.f32 %v1508_v12  ;;  %v1052_v21 = vpop.permute.xlu1 %1051 }
 0x337   : > { %v1050_v26 = vpop.permute.xlu1 %1049 }
 0x33c   : > { %v6239_v15 = vpop.eup %5521 }
 0x33d   : > { %v1530_v16 = vsel %vm1457_vm2, %v6239_v15, 0.0 }
 0x340   : > { %v6243_v13 = vpop.eup %5523 }
 0x341   : > { %v1533_v17 = vsel %vm1457_vm2, %v6243_v13, 0.0 }
 0x342   : > { %1071 = vrot.lane.b32.xlu1 %v6081_v50, %s5822_s15 }
 0x349   : > { %1477 = vmax.xlane.f32.xlu0 %v1476_v62 }
 0x34d   : > { %1480 = vmax.xlane.f32.xlu0 %v1479_v0 }
 0x351   : > { %1483 = vmax.xlane.f32.xlu0 %v1482_v2 }
 0x366   : > { %1492 = vmax.xlane.f32.xlu1 %v1491_v4 }
 0x367   : > { %1062 = vrot.lane.b32.xlu0 %v6081_v50, %s5823_s26  ;;  %v1510_v50 = vmul.f32 1.442695, %v1496_v14 }
 0x369   : > { %5525 = vpow2.f32 %v1510_v50 }
 0x36b   : > { %1060 = vrot.lane.b32.xlu0 %v6167_v11, %s5823_s26 }
 0x376   : > { %v6247_v18 = vpop.eup %5525 }
 0x377   : > { %1069 = vrot.lane.b32.xlu1 %v6167_v11, %s5822_s15  ;;  %v1536_v11 = vsel %vm1457_vm2, %v6247_v18, 0.0 }
 0x38a   : > { %1531 = vadd.xlane.f32.xlu0 %v1530_v16 }
 0x38e   : > { %1534 = vadd.xlane.f32.xlu0 %v1533_v17 }
 0x392   : > { %1537 = vadd.xlane.f32.xlu0 %v1536_v11 }
 0x39d   : > { %v1469_v19 = vpop.xlane.xlu0 %1468 }
 0x39e   : > { %v1497_v20 = vsub.f32 %v6190_v27, %v1469_v19 }
 0x3a0   : > { %v1512_v22 = vmul.f32 1.442695, %v1497_v20 }
 0x3a1   : > { %v1054_v25 = vpop.permute.xlu0 %1053 }
 0x3a2   : > { %5527 = vpow2.f32 %v1512_v22  ;;  %4982 = vmatpush3.msra.mxu0 %v1054_v25 }
 0x3a3   : > { %4983 = vmatprep.subr.mxu0 %v5819_v43 }
 0x3a4   : > { %4984 = vmatpush3.msra.mxu0 %v1052_v21 }
 0x3a5   : > { %4985 = vmatprep.subr.mxu0 %v5819_v43 }
 0x3a6   : > { %4986 = vmatpush3.msra.mxu0 %v1050_v26 }
 0x3a7   : > { %5011 = vmatprep.subr.mxu0 %v5819_v43 }
 0x3ae   : > { %v1487_v28 = vpop.xlane.xlu1 %1486 }
 0x3af   : > { %v6255_v29 = vpop.eup %5527  ;;  %v1503_v30 = vsub.f32 %v6194_v38, %v1487_v28 }
 0x3b0   : > { %v1539_v27 = vsel %vm1457_vm2, %v6255_v29, 0.0 }
 0x3b1   : > { %v1524_v31 = vmul.f32 1.442695, %v1503_v30  ;;  %1540 = vadd.xlane.f32.xlu1 %v1539_v27 }
 0x3b2   : > { %v1472_v32 = vpop.xlane.xlu1 %1471 }
 0x3b3   : > { %5529 = vpow2.f32 %v1524_v31  ;;  %v1498_v33 = vsub.f32 %v6196_v44, %v1472_v32 }
 0x3b5   : > { %v1514_v34 = vmul.f32 1.442695, %v1498_v33 }
 0x3b6   : > { %v1490_v35 = vpop.xlane.xlu1 %1489 }
 0x3b7   : > { %5531 = vpow2.f32 %v1514_v34  ;;  %v1504_v36 = vsub.f32 %v6200_v53, %v1490_v35 }
 0x3b9   : > { %v1526_v37 = vmul.f32 1.442695, %v1504_v36 }
 0x3ba   : > { %v1475_v39 = vpop.xlane.xlu1 %1474 }
 0x3bb   : > { %5533 = vpow2.f32 %v1526_v37  ;;  %v1499_v42 = vsub.f32 %v6206_v57, %v1475_v39 }
 0x3bd   : > { %v1516_v38 = vmul.f32 1.442695, %v1499_v42 }
 0x3bf   : > { %5535 = vpow2.f32 %v1516_v38 }
 0x3c0   : > { %v6263_v45 = vpop.eup %5529 }
 0x3c1   : > { %v1557_v47 = vsel %vm1457_vm2, %v6263_v45, 0.0 }
 0x3c2   : > { %1558 = vadd.xlane.f32.xlu1 %v1557_v47 }
 0x3c4   : > { %v6267_v48 = vpop.eup %5531 }
 0x3c5   : > { %v1542_v44 = vsel %vm1457_vm2, %v6267_v48, 0.0 }
 0x3c6   : > { %1543 = vadd.xlane.f32.xlu1 %v1542_v44 }
 0x3c8   : > { %v6271_v49 = vpop.eup %5533 }
 0x3c9   : > { %v1560_v51 = vsel %vm1457_vm2, %v6271_v49, 0.0 }
 0x3ca   : > { %1561 = vadd.xlane.f32.xlu1 %v1560_v51 }
 0x3cc   : > { %v6275_v53 = vpop.eup %5535 }
 0x3cd   : > { %v1545_v54 = vsel %vm1457_vm2, %v6275_v53, 0.0 }
 0x3ce   : > { %1546 = vadd.xlane.f32.xlu1 %v1545_v54 }
 0x3d2   : > { %v1478_v55 = vpop.xlane.xlu0 %1477 }
 0x3d3   : > { %v1500_v56 = vsub.f32 %v6214_v60, %v1478_v55 }
 0x3d5   : > { %v1518_v57 = vmul.f32 1.442695, %v1500_v56 }
 0x3d6   : > { %v1481_v58 = vpop.xlane.xlu0 %1480 }
 0x3d7   : > { %5537 = vpow2.f32 %v1518_v57  ;;  %v1501_v59 = vsub.f32 %v6216_v61, %v1481_v58  ;;  %v1072_v61 = vpop.permute.xlu1 %1071 }
 0x3d9   : > { %v1520_v62 = vmul.f32 1.442695, %v1501_v59 }
 0x3da   : > { %v1484_v0 = vpop.xlane.xlu0 %1483 }
 0x3db   : > { %5539 = vpow2.f32 %v1520_v62  ;;  %v1502_v2 = vsub.f32 %v6220_v63, %v1484_v0 }
 0x3dd   : > { %v1522_v4 = vmul.f32 1.442695, %v1502_v2 }
 0x3de   : > { %v1063_v16 = vpop.permute.xlu0 %1062 }
 0x3df   : > { %5541 = vpow2.f32 %v1522_v4 }
 0x3e2   : > { %v1061_v17 = vpop.permute.xlu0 %1060 }
 0x3e4   : > { %v6282_v5 = vpop.eup %5537 }
 0x3e5   : > { %v1548_v6 = vsel %vm1457_vm2, %v6282_v5, 0.0 }
 0x3e6   : > { %1549 = vadd.xlane.f32.xlu0 %v1548_v6 }
 0x3e8   : > { %v6286_v7 = vpop.eup %5539 }
 0x3e9   : > { %v1551_v60 = vsel %vm1457_vm2, %v6286_v7, 0.0 }
 0x3ea   : > { %1552 = vadd.xlane.f32.xlu0 %v1551_v60 }
 0x3ec   : > { %v6290_v8 = vpop.eup %5541 }
 0x3ed   : > { %v1554_v63 = vsel %vm1457_vm2, %v6290_v8, 0.0 }
 0x3ee   : > { %1555 = vadd.xlane.f32.xlu0 %v1554_v63 }
 0x3ef   : > { %v1493_v9 = vpop.xlane.xlu1 %1492 }
 0x3f0   : > { %v1505_v10 = vsub.f32 %v6226_v3, %v1493_v9 }
 0x3f2   : > { %v1528_v12 = vmul.f32 1.442695, %v1505_v10 }
 0x3f3   : > { %v1070_v26 = vpop.permute.xlu1 %1069 }
 0x3f4   : > { %5543 = vpow2.f32 %v1528_v12 }
 0x401   : > { %v6295_v14 = vpop.eup %5543 }
 0x402   : > { %v1563_v50 = vsel %vm1457_vm2, %v6295_v14, 0.0 }
 0x403   : > { %1564 = vadd.xlane.f32.xlu1 %v1563_v50  ;;  %v5395_v50 = vld [vmem:[#allocation5 + $0x28] sm:$0xff]  }
 0x404   : > { %1058 = vrot.lane.b32.xlu0 %v6083_v52, %s5823_s26 }
 0x413   : > { %v1532_v11 = vpop.xlane.xlu0 %1531 }
 0x414   : > { %5545 = vrcp.f32 %v1532_v11  ;;  %1067 = vrot.lane.b32.xlu1 %v6083_v52, %s5822_s15 }
 0x417   : > { %v1535_v19 = vpop.xlane.xlu0 %1534 }
 0x418   : > { %5547 = vrcp.f32 %v1535_v19 }
 0x41b   : > { %v1538_v3 = vpop.xlane.xlu0 %1537 }
 0x41c   : > { %5549 = vrcp.f32 %v1538_v3  ;;  %v5398_v3 = vld [vmem:[#allocation5 + $0x10] sm:$0xff]  }
 0x421   : > { %v5546_v20 = vpop.eup %5545 }
 0x422   : > { %v1578_v21 = vmul.f32 %v5546_v20, %v6239_v15 }
 0x424   : > { %4973 = vmatmul.mubr.msk.f32.vlgmr.msra.gmra.mxu1 %vm1457_vm2, %v1578_v21 }
 0x425   : > { %v5548_v22 = vpop.eup %5547  ;;  %4997 = vmatpush3.msra.mxu1 %v1063_v16  ;;  %4975 = vmatprep.mubr.msk.f32.mxu1 %vm5820_vm0, %v5819_v43  ;;  %v5396_v16 = vld [vmem:[#allocation5 + $0x20] sm:$0xff]  }
 0x426   : > { %4998 = vmatprep.subr.mxu1 %v5819_v43  ;;  %v1579_v25 = vmul.f32 %v5548_v22, %v6243_v13 }
 0x427   : > { %4999 = vmatpush3.msra.mxu1 %v1061_v17  ;;  %v5397_v17 = vld [vmem:[#allocation5 + $0x18] sm:$0xff]  }
 0x428   : > { %4976 = vmatmul.mubr.msk.f32.gmra.mxu1 %vm1457_vm2, %v1579_v25  ;;  %5000 = vmatprep.subr.mxu1 %v5819_v43 }
 0x429   : > { %v5550_v52 = vpop.eup %5549  ;;  %4978 = vmatprep.mubr.msk.f32.mxu1 %vm5820_vm0, %v5819_v43 }
 0x42a   : > { %v1580_v15 = vmul.f32 %v5550_v52, %v6247_v18 }
 0x42c   : > { %4979 = vmatmul.mubr.msk.f32.gmra.mxu1 %vm1457_vm2, %v1580_v15  ;;  %v5399_v15 = vld [vmem:[#allocation5 + $0x8] sm:$0xff]  }
 0x42d   : > { %5002 = vmatprep.mubr.msk.f32.mxu1 %vm5820_vm0, %v5819_v43 }
 0x43a   : > { %v1541_v28 = vpop.xlane.xlu1 %1540 }
 0x43b   : > { %5551 = vrcp.f32 %v1541_v28 }
 0x448   : > { %v5552_v13 = vpop.eup %5551 }
 0x449   : > { %v1581_v30 = vmul.f32 %v5552_v13, %v6255_v29 }
 0x44b   : > { %v1559_v27 = vpop.xlane.xlu1 %1558  ;;  %4988 = vmatmul.mubr.msk.f32.vlgmr.msra.gmra.mxu0 %vm1457_vm2, %v1581_v30 }
 0x44c   : > { %5012 = vmatpush3.msra.mxu0 %v1072_v61  ;;  %4990 = vmatprep.mubr.msk.f32.mxu0 %vm5820_vm0, %v5819_v43  ;;  %v5393_v61 = vld [vmem:[#allocation5 + $0x38] sm:$0xff]  }
 0x44d   : > { %5013 = vmatprep.subr.mxu0 %v5819_v43 }
 0x44e   : > { %5014 = vmatpush3.msra.mxu0 %v1070_v26  ;;  %v5400_v26 = vld [vmem:[#allocation5] sm:$0xff]  }
 0x44f   : > { %v1544_v18 = vpop.xlane.xlu1 %1543  ;;  %5015 = vmatprep.subr.mxu0 %v5819_v43 }
 0x450   : > { %5553 = vrcp.f32 %v1544_v18 }
 0x453   : > { %v1562_v31 = vpop.xlane.xlu1 %1561 }
 0x457   : > { %v1547_v32 = vpop.xlane.xlu1 %1546 }
 0x458   : > { %5555 = vrcp.f32 %v1547_v32 }
 0x45d   : > { %v5554_v33 = vpop.eup %5553 }
 0x45e   : > { %v1582_v29 = vmul.f32 %v5554_v33, %v6267_v48 }
 0x460   : > { %4991 = vmatmul.mubr.msk.f32.gmra.mxu0 %vm1457_vm2, %v1582_v29 }
 0x461   : > { %4993 = vmatprep.mubr.msk.f32.mxu0 %vm5820_vm0, %v5819_v43 }
 0x465   : > { %v5556_v34 = vpop.eup %5555 }
 0x466   : > { %v1583_v35 = vmul.f32 %v5556_v34, %v6275_v53 }
 0x468   : > { %4994 = vmatmul.mubr.msk.f32.gmra.mxu0 %vm1457_vm2, %v1583_v35 }
 0x469   : > { %5017 = vmatprep.mubr.msk.f32.mxu0 %vm5820_vm0, %v5819_v43 }
 0x46f   : > { %v1550_v36 = vpop.xlane.xlu0 %1549 }
 0x470   : > { %5557 = vrcp.f32 %v1550_v36 }
 0x473   : > { %v1553_v37 = vpop.xlane.xlu0 %1552 }
 0x474   : > { %5559 = vrcp.f32 %v1553_v37 }
 0x477   : > { %v1556_v39 = vpop.xlane.xlu0 %1555 }
 0x478   : > { %5561 = vrcp.f32 %v1556_v39 }
 0x479   : > { %5563 = vrcp.f32 %v1559_v27 }
 0x47a   : > { %5565 = vrcp.f32 %v1562_v31 }
 0x47b   : > { %v1059_v42 = vpop.permute.xlu0 %1058 }
 0x47c   : > { %5001 = vmatpush3.msra.mxu1 %v1059_v42 }
 0x47d   : > { %v5558_v38 = vpop.eup %5557  ;;  %5026 = vmatprep.subr.bf16.mxu1 %v5393_v61 }
 0x47e   : > { %v1584_v47 = vmul.f32 %v5558_v38, %v6282_v5 }
 0x480   : > { %5003 = vmatmul.mubr.msk.f32.vlgmr.msra.gmra.mxu1 %vm1457_vm2, %v1584_v47 }
 0x481   : > { %v5560_v48 = vpop.eup %5559  ;;  %5005 = vmatprep.mubr.msk.f32.mxu1 %vm5820_vm0, %v5819_v43  ;;  %5027 = vmatpush3.bf16.msra.mxu1 %v5393_v61  ;;  %v5410_v61 = vld [vmem:[#allocation7 + $0x40] ss:$8 sps:$4 sm:$0xff]  }
 0x482   : > { %v1585_v44 = vmul.f32 %v5560_v48, %v6286_v7 }
 0x484   : > { %5006 = vmatmul.mubr.msk.f32.gmra.mxu1 %vm1457_vm2, %v1585_v44 }
 0x485   : > { %v5562_v51 = vpop.eup %5561  ;;  %5008 = vmatprep.mubr.msk.f32.mxu1 %vm5820_vm0, %v5819_v43 }
 0x486   : > { %v1586_v53 = vmul.f32 %v5562_v51, %v6290_v8  ;;  %v5564_v55 = vpop.eup %5563  ;;  %v5394_v8 = vld [vmem:[#allocation5 + $0x30] sm:$0xff]  }
 0x487   : > { %v1587_v56 = vmul.f32 %v5564_v55, %v6263_v45  ;;  %v5566_v58 = vpop.eup %5565  ;;  %5028 = vmatprep.subr.bf16.mxu1 %v5394_v8 }
 0x488   : > { %5009 = vmatmul.mubr.msk.f32.gmra.mxu1 %vm1457_vm2, %v1586_v53  ;;  %v1588_v59 = vmul.f32 %v5566_v58, %v6271_v49 }
 0x489   : > { %5029 = vmatpush3.bf16.msra.mxu1 %v5394_v8  ;;  %v5415_v8 = vld [vmem:[#allocation7 + $0x34] ss:$8 sps:$4 sm:$0xff]  }
 0x48a   : > { %5030 = vmatprep.subr.bf16.mxu1 %v5395_v50 }
 0x48c   : > { %v1565_v54 = vpop.xlane.xlu1 %1564 }
 0x48d   : > { %5567 = vrcp.f32 %v1565_v54  ;;  %5031 = vmatpush3.bf16.msra.mxu1 %v5395_v50  ;;  %v5424_v50 = vld [vmem:[#allocation7 + $0x4] ss:$8 sps:$4 sm:$0xff]  }
 0x48e   : > { %5032 = vmatprep.subr.bf16.mxu1 %v5396_v16 }
 0x490   : > { %v1068_v57 = vpop.permute.xlu1 %1067 }
 0x491   : > { %5016 = vmatpush3.msra.mxu0 %v1068_v57  ;;  %5033 = vmatpush3.bf16.msra.mxu1 %v5396_v16  ;;  %v5422_v16 = vld [vmem:[#allocation7] ss:$8 sps:$4 sm:$0xff]  }
 0x492   : > { %5018 = vmatmul.mubr.msk.f32.vlgmr.msra.gmra.mxu0 %vm1457_vm2, %v1587_v56  ;;  %5034 = vmatprep.subr.bf16.mxu1 %v5397_v17 }
 0x493   : > { %5020 = vmatprep.mubr.msk.f32.mxu0 %vm5820_vm0, %v5819_v43 }
 0x495   : > { %5035 = vmatpush3.bf16.msra.mxu1 %v5397_v17  ;;  %v5425_v17 = vld [vmem:[#allocation8 + $0x78] sm:$0xff]  }
 0x496   : > { %5021 = vmatmul.mubr.msk.f32.gmra.mxu0 %vm1457_vm2, %v1588_v59  ;;  %5036 = vmatprep.subr.bf16.mxu1 %v5398_v3 }
 0x497   : > { %5023 = vmatprep.mubr.msk.f32.mxu0 %vm5820_vm0, %v5819_v43 }
 0x499   : > { %5037 = vmatpush3.bf16.msra.mxu1 %v5398_v3  ;;  %v5428_v3 = vld [vmem:[#allocation8 + $0x30] sm:$0xff]  }
 0x49a   : > { %v5568_v62 = vpop.eup %5567  ;;  %5038 = vmatprep.subr.bf16.mxu1 %v5399_v15 }
 0x49b   : > { %v1589_v0 = vmul.f32 %v5568_v62, %v6295_v14 }
 0x49d   : > { %5024 = vmatmul.mubr.msk.f32.gmra.mxu0 %vm1457_vm2, %v1589_v0  ;;  %5039 = vmatpush3.bf16.msra.mxu1 %v5399_v15  ;;  %v5434_v15 = vld [vmem:[#allocation8 + $0x18] sm:$0xff]  }
 0x49e   : > { %2273 = vmatprep.mubr.bf16.mxu0 %v5814_v1  ;;  %5040 = vmatprep.subr.bf16.mxu1 %v5400_v26 }
 0x4a1   : > { %5041 = vmatpush3.bf16.msra.mxu1 %v5400_v26 }
 0x4a2   : > { %4762 = vmatprep.subr.bf16.mxu1 %v5425_v17  ;;  %v5435_v17 = vld [vmem:[#allocation8 + $0x50] sm:$0xff]  }
 0x4e4   : > { %v6352_v45 = vpop.f32.mrf.mxu1 }
 0x4e6   : > { %v4974_v2 = vpop.f32.mrf.mxu1 }
 0x4e7   : > { %v5403_v2 = vld [vmem:[#allocation7 + $0x74] ss:$8 sps:$4 sm:$0xff]  }
 0x4e8   : > { %v6354_v4 = vpop.f32.mrf.mxu1  ;;  %2241 = vmatprep.subr.bf16.mxu0 %v5403_v2 }
 0x4ea   : > { %v4977_v5 = vpop.f32.mrf.mxu1 }
 0x4eb   : > { %v5406_v5 = vld [vmem:[#allocation7 + $0x64] ss:$8 sps:$4 sm:$0xff]  }
 0x4ec   : > { %v6356_v6 = vpop.f32.mrf.mxu1 }
 0x4ee   : > { %v4980_v49 = vpop.f32.mrf.mxu1 }
 0x4ef   : > { %v5404_v49 = vld [vmem:[#allocation7 + $0x60] ss:$8 sps:$4 sm:$0xff]  }
 0x50b   : > { %v1754_v7 = vpop.f32.mrf.mxu0 }
 0x50d   : > { %v4989_v60 = vpop.f32.mrf.mxu0 }
 0x50e   : > { %v5407_v60 = vld [vmem:[#allocation7 + $0x50] ss:$8 sps:$4 sm:$0xff]  }
 0x520   : > { %v1759_v63 = vpop.f32.mrf.mxu0 }
 0x521   : > { %v5330_v9 = vpack.i.bf16 %v1759_v63, %v1754_v7  ;;  %v5409_v7 = vld [vmem:[#allocation7 + $0x54] ss:$8 sps:$4 sm:$0xff]   ;;  %v5413_v63 = vld [vmem:[#allocation7 + $0x30] ss:$8 sps:$4 sm:$0xff]  }
 0x522   : > { %v4992_v10 = vpop.f32.mrf.mxu0 }
 0x523   : > { %5331 = vrot.lane.b32.xlu0 %v5330_v9, %s5822_s15  ;;  %v5418_v9 = vld [vmem:[#allocation7 + $0x24] ss:$8 sps:$4 sm:$0xff]   ;;  %v5416_v10 = vld [vmem:[#allocation7 + $0x20] ss:$8 sps:$4 sm:$0xff]  }
 0x528   : > { %v1764_v12 = vpop.f32.mrf.mxu0 }
 0x529   : > { %1953 = vrot.lane.b32.xlu1 %v1764_v12, %s5822_s15  ;;  %v5421_v12 = vld [vmem:[#allocation7 + $0x14] ss:$8 sps:$4 sm:$0xff]  }
 0x52a   : > { %v4995_v14 = vpop.f32.mrf.mxu0 }
 0x52b   : > { %v5419_v14 = vld [vmem:[#allocation7 + $0x10] ss:$8 sps:$4 sm:$0xff]  }
 0x540   : > { %v1843_v11 = vpop.f32.mrf.mxu1 }
 0x542   : > { %v5004_v19 = vpop.f32.mrf.mxu1 }
 0x543   : > { %v5427_v19 = vld [vmem:[#allocation8 + $0x70] sm:$0xff]  }
 0x544   : > { %v1848_v20 = vpop.f32.mrf.mxu1 }
 0x545   : > { %v5335_v21 = vpack.i.bf16 %v1848_v20, %v1843_v11  ;;  %v5426_v11 = vld [vmem:[#allocation8 + $0x38] sm:$0xff]   ;;  %v5429_v20 = vld [vmem:[#allocation8 + $0x68] sm:$0xff]  }
 0x546   : > { %v5007_v22 = vpop.f32.mrf.mxu1 }
 0x547   : > { %5336 = vrot.lane.b32.xlu0 %v5335_v21, %s5823_s26  ;;  %v5430_v21 = vld [vmem:[#allocation8 + $0x28] sm:$0xff]   ;;  %v5431_v22 = vld [vmem:[#allocation8 + $0x60] sm:$0xff]  }
 0x548   : > { %v1853_v25 = vpop.f32.mrf.mxu1 }
 0x549   : > { %1965 = vrot.lane.b32.xlu1 %v1853_v25, %s5823_s26  ;;  %v5432_v25 = vld [vmem:[#allocation8 + $0x20] sm:$0xff]  }
 0x54a   : > { %v5010_v52 = vpop.f32.mrf.mxu1 }
 0x54b   : > { %v5433_v52 = vld [vmem:[#allocation8 + $0x58] sm:$0xff]  }
 0x552   : > { %v1932_v28 = vpop.f32.mrf.mxu0 }
 0x554   : > { %v5019_v13 = vpop.f32.mrf.mxu0 }
 0x555   : > { %v4532_v13 = vld [vmem:[%s6820_s5] ss:$0 sm:$0xff] }
 0x556   : > { %v1937_v30 = vpop.f32.mrf.mxu0 }
 0x557   : > { %v5340_v27 = vpack.i.bf16 %v1937_v30, %v1932_v28 }
 0x558   : > { %v5022_v18 = vpop.f32.mrf.mxu0 }
 0x559   : > { %5341 = vrot.lane.b32.xlu0 %v5340_v27, %s5821_s21 }
 0x55d   : > { %v1942_v31 = vpop.f32.mrf.mxu0 }
 0x55e   : > { %1977 = vrot.lane.b32.xlu1 %v1942_v31, %s5821_s21 }
 0x55f   : > { %v5025_v32 = vpop.f32.mrf.mxu0 }
 0x595   : > { %v5332_v33 = vpop.permute.xlu0 %5331 }
 0x596   : > { %v5334_v34 = vunpack.i.h.bf16 %v5332_v33  ;;  %v5333_v35 = vunpack.i.l.bf16 %v5332_v33 }
 0x598   : > { %v1983_v38 = vsel %vm1076_vm1, %v6354_v4, %v5334_v34  ;;  %v1982_v47 = vsel %vm1076_vm1, %v6352_v45, %v5333_v35  ;;  %v5401_v4 = vld [vmem:[#allocation7 + $0x70] ss:$8 sps:$4 sm:$0xff]  }
 0x599   : > { %2242 = vmatpush1.bf16.msra.mxu0 %v5401_v4 }
 0x59a   : > { %2243 = vmatprep.subr.bf16.mxu0 %v5406_v5 }
 0x59b   : > { %v1954_v36 = vpop.permute.xlu1 %1953 }
 0x59c   : > { %v1984_v57 = vsel %vm1076_vm1, %v6356_v6, %v1954_v36  ;;  %v5412_v6 = vld [vmem:[#allocation7 + $0x44] ss:$8 sps:$4 sm:$0xff]  }
 0x59d   : > { %2244 = vmatpush1.bf16.msra.mxu0 %v5404_v49  ;;  %v4541_v49 = vld [vmem:[%s6821_s6] ss:$0 sm:$0xff] }
 0x59e   : > { %2245 = vmatprep.subr.bf16.mxu0 %v5409_v7 }
 0x5a1   : > { %2246 = vmatpush1.bf16.msra.mxu0 %v5407_v60 }
 0x5a2   : > { %2247 = vmatprep.subr.bf16.mxu0 %v5412_v6  ;;  %v4542_v6 = vld [vmem:[%s6822_s7] ss:$0 sm:$0xff] }
 0x5a5   : > { %2248 = vmatpush1.bf16.msra.mxu0 %v5410_v61 }
 0x5a6   : > { %2249 = vmatprep.subr.bf16.mxu0 %v5415_v8 }
 0x5a9   : > { %2250 = vmatpush1.bf16.msra.mxu0 %v5413_v63 }
 0x5aa   : > { %2251 = vmatprep.subr.bf16.mxu0 %v5418_v9 }
 0x5ad   : > { %2252 = vmatpush1.bf16.msra.mxu0 %v5416_v10 }
 0x5ae   : > { %2253 = vmatprep.subr.bf16.mxu0 %v5421_v12 }
 0x5b1   : > { %2254 = vmatpush1.bf16.msra.mxu0 %v5419_v14 }
 0x5b2   : > { %2255 = vmatprep.subr.bf16.mxu0 %v5424_v50 }
 0x5b5   : > { %2256 = vmatpush1.bf16.msra.mxu0 %v5422_v16 }
 0x5b9   : > { %v5337_v29 = vpop.permute.xlu0 %5336 }
 0x5ba   : > { %v5339_v37 = vunpack.i.h.bf16 %v5337_v29  ;;  %v5338_v39 = vunpack.i.l.bf16 %v5337_v29 }
 0x5bb   : > { %v1966_v48 = vpop.permute.xlu1 %1965 }
 0x5bc   : > { %v1986_v53 = vsel %vm1985_vm3, %v1982_v47, %v5338_v39  ;;  %v1987_v54 = vsel %vm1985_vm3, %v1983_v38, %v5339_v37  ;;  %v1988_v59 = vsel %vm1985_vm3, %v1984_v57, %v1966_v48 }
 0x5cb   : > { %v5342_v42 = vpop.permute.xlu0 %5341 }
 0x5cc   : > { %v5344_v44 = vunpack.i.h.bf16 %v5342_v42  ;;  %v5343_v51 = vunpack.i.l.bf16 %v5342_v42 }
 0x5ce   : > { %v1990_v55 = vsel %vm1989_vm4, %v1986_v53, %v5343_v51  ;;  %v1991_v56 = vsel %vm1989_vm4, %v1987_v54, %v5344_v44 }
 0x5cf   : > { %v1993_v58 = vpack.c.bf16 %v1991_v56, %v1990_v55 }
 0x5d0   : > { %v1978_v62 = vpop.permute.xlu1 %1977 }
 0x5d1   : > { %v1992_v0 = vsel %vm1989_vm4, %v1988_v59, %v1978_v62  ;;  %5042 = vmatprep.mubr.bf16.mxu1 %v1993_v58 }
 0x5d2   : > { %v1994_v45 = vpack.c.bf16 %v1992_v0, %v1992_v0 }
 0x5d4   : > { %5043 = vmatmul.mubr.bf16.vlgmr.msra.gmra.mxu1 %v1994_v45 }
 0x5d5   : > { %4763 = vmatpush3.bf16.msra.mxu1 %v5426_v11  ;;  %v5436_v11 = vld [vmem:[#allocation8 + $0x10] sm:$0xff]  }
 0x5d6   : > { %4764 = vmatprep.subr.bf16.mxu1 %v5427_v19  ;;  %v5437_v19 = vld [vmem:[#allocation8 + $0x48] sm:$0xff]  }
 0x5d9   : > { %4765 = vmatpush3.bf16.msra.mxu1 %v5428_v3  ;;  %v5438_v3 = vld [vmem:[#allocation8 + $0x8] sm:$0xff]  }
 0x5da   : > { %4766 = vmatprep.subr.bf16.mxu1 %v5429_v20  ;;  %v5439_v20 = vld [vmem:[#allocation8 + $0x40] sm:$0xff]  }
 0x5dd   : > { %4767 = vmatpush3.bf16.msra.mxu1 %v5430_v21  ;;  %v5440_v21 = vld [vmem:[#allocation8] sm:$0xff]  }
 0x5de   : > { %4768 = vmatprep.subr.bf16.mxu1 %v5431_v22  ;;  %v739_v22 = vld [vmem:[%s6824_s9] sm:$0x3] }
 0x5e1   : > { %4769 = vmatpush3.bf16.msra.mxu1 %v5432_v25 }
 0x5e2   : > { %4770 = vmatprep.subr.bf16.mxu1 %v5433_v52  ;;  %v2158_v52 = vrot.slane %v739_v22, %v6055_v46 }
 0x5e5   : > { %4771 = vmatpush3.bf16.msra.mxu1 %v5434_v15  ;;  %v2154_v15 = vrot.slane %v739_v22, %v6049_v41 }
 0x5e6   : > { %4772 = vmatprep.subr.bf16.mxu1 %v5435_v17 }
 0x5e9   : > { %4773 = vmatpush3.bf16.msra.mxu1 %v5436_v11 }
 0x5ea   : > { %4774 = vmatprep.subr.bf16.mxu1 %v5437_v19 }
 0x5ed   : > { %4775 = vmatpush3.bf16.msra.mxu1 %v5438_v3 }
 0x5ee   : > { %4776 = vmatprep.subr.bf16.mxu1 %v5439_v20  ;;  %v4559_v20 = vld [vmem:[%s6826_s11] ss:$0 sm:$0xff] }
 0x5f1   : > { %4777 = vmatpush3.bf16.msra.mxu1 %v5440_v21 }
 0x694   : > { %v5044_v26 = vpop.f32.mrf.mxu1 }
 0x695   : > { %v2092_v31 = vadd.f32 %v5044_v26, %v4532_v13 }
 0x696   : > { %v2083_v28 = vpop.f32.mrf.mxu1 }
 0x697   : > { %v2084_v27 = vadd.f32 %v4532_v13, %v2083_v28  ;;  %v2099_v34 = vadd.f32 %v2092_v31, %v6068_v40 }
 0x698   : > { %v5045_v30 = vpop.f32.mrf.mxu1 }
 0x699   : > { %v2097_v33 = vadd.f32 %v2084_v27, %v6063_v24 }
 0x69a   : > { %v2086_v18 = vpop.f32.mrf.mxu1 }
 0x69b   : > { %v2087_v32 = vadd.f32 %v4532_v13, %v2086_v18 }
 0x69d   : > { %v2098_v29 = vadd.f32 %v2087_v32, %v6061_v23 }
 0x69f   : > { %v2100_v35 = vadd.f32 %v2098_v29, %v2097_v33 }
 0x6a1   : > { %v2101_v36 = vadd.f32 %v2100_v35, %v2099_v34 }
 0x6a3   : > { %v2102_v37 = vrot.slane %v2101_v36, 4 }
 0x6a5   : > { %v2103_v39 = vadd.f32 %v2102_v37, %v2101_v36 }
 0x6a7   : > { %v2104_v42 = vrot.slane %v2103_v39, 2 }
 0x6a9   : > { %v2105_v38 = vadd.f32 %v2104_v42, %v2103_v39 }
 0x6ab   : > { %v2106_v47 = vrot.slane %v2105_v38, 1 }
 0x6ad   : > { %v2107_v48 = vadd.f32 %v2106_v47, %v2105_v38 }
 0x6af   : > { %v2109_v44 = vmul.f32 0.041666668, %v2107_v48 }
 0x6b1   : > { %v2110_v51 = vsub.f32 %v2097_v33, %v2109_v44  ;;  %v2111_v53 = vsub.f32 %v2098_v29, %v2109_v44  ;;  %v2112_v54 = vsub.f32 %v2099_v34, %v2109_v44 }
 0x6b3   : > { %v2113_v55 = vmul.f32 %v2110_v51, %v2110_v51  ;;  %v2114_v56 = vmul.f32 %v2111_v53, %v2111_v53  ;;  %v2115_v57 = vmul.f32 %v2112_v54, %v2112_v54 }
 0x6b5   : > { %v2116_v24 = vadd.f32 %v2114_v56, %v2113_v55  ;;  %v5443_v55 = vld [vmem:[#allocation2 + $0x16c] ss:$12 sps:$4 sm:$0xff]   ;;  %v5441_v56 = vld [vmem:[#allocation2 + $0x168] ss:$12 sps:$4 sm:$0xff]  }
 0x6b6   : > { %2746 = vmatprep.subr.bf16.mxu0 %v5443_v55 }
 0x6b7   : > { %v2117_v58 = vadd.f32 %v2116_v24, %v2115_v57  ;;  %v5444_v57 = vld [vmem:[#allocation2 + $0x170] ss:$12 sps:$4 sm:$0xff]   ;;  %v5447_v24 = vld [vmem:[#allocation2 + $0x154] ss:$12 sps:$4 sm:$0xff]  }
 0x6b8   : > { %5046 = vmatprep.subr.bf16.mxu1 %v5444_v57 }
 0x6b9   : > { %v2118_v23 = vrot.slane %v2117_v58, 4 }
 0x6bb   : > { %v2119_v59 = vadd.f32 %v2118_v23, %v2117_v58  ;;  %v5445_v58 = vld [vmem:[#allocation2 + $0x150] ss:$12 sps:$4 sm:$0xff]   ;;  %v5448_v23 = vld [vmem:[#allocation2 + $0x158] ss:$12 sps:$4 sm:$0xff]  }
 0x6bd   : > { %v2120_v40 = vrot.slane %v2119_v59, 2 }
 0x6bf   : > { %v2121_v62 = vadd.f32 %v2120_v40, %v2119_v59  ;;  %v5451_v59 = vld [vmem:[#allocation2 + $0x13c] ss:$12 sps:$4 sm:$0xff]   ;;  %v5449_v40 = vld [vmem:[#allocation2 + $0x138] ss:$12 sps:$4 sm:$0xff]  }
 0x6c1   : > { %v2122_v0 = vrot.slane %v2121_v62, 1 }
 0x6c3   : > { %v2123_v45 = vadd.f32 %v2122_v0, %v2121_v62  ;;  %v5452_v62 = vld [vmem:[#allocation2 + $0x140] ss:$12 sps:$4 sm:$0xff]   ;;  %v5455_v0 = vld [vmem:[#allocation2 + $0x124] ss:$12 sps:$4 sm:$0xff]  }
 0x6c5   : > { %v2124_v2 = vmul.f32 0.041666668, %v2123_v45  ;;  %v5453_v45 = vld [vmem:[#allocation2 + $0x120] ss:$12 sps:$4 sm:$0xff]  }
 0x6c7   : > { %v2125_v4 = vadd.f32 1e-05, %v2124_v2  ;;  %v5456_v2 = vld [vmem:[#allocation2 + $0x128] ss:$12 sps:$4 sm:$0xff]  }
 0x6c9   : > { %5569 = vrsqrt.f32 %v2125_v4  ;;  %v5459_v4 = vld [vmem:[#allocation2 + $0x10c] ss:$12 sps:$4 sm:$0xff]  }
 0x6d6   : > { %v5570_v5 = vpop.eup %5569 }
 0x6d7   : > { %v2127_v7 = vmul.f32 %v5570_v5, %v2110_v51  ;;  %v2128_v60 = vmul.f32 %v5570_v5, %v2111_v53  ;;  %v2129_v63 = vmul.f32 %v5570_v5, %v2112_v54  ;;  %v5457_v5 = vld [vmem:[#allocation2 + $0x108] ss:$12 sps:$4 sm:$0xff]  }
 0x6d9   : > { %v2136_v61 = vmul.f32 %v4541_v49, %v2127_v7  ;;  %v2137_v8 = vmul.f32 %v4541_v49, %v2128_v60  ;;  %v2138_v14 = vmul.f32 %v4541_v49, %v2129_v63  ;;  %v5460_v49 = vld [vmem:[#allocation2 + $0x110] ss:$12 sps:$4 sm:$0xff]   ;;  %v5463_v7 = vld [vmem:[#allocation2 + $0xf4] ss:$12 sps:$4 sm:$0xff]  }
 0x6da   : > { %v5461_v60 = vld [vmem:[#allocation2 + $0xf0] ss:$12 sps:$4 sm:$0xff]   ;;  %v5468_v63 = vld [vmem:[#allocation2 + $0xe0] ss:$12 sps:$4 sm:$0xff]  }
 0x6db   : > { %v6388_v9 = vadd.f32 %v4542_v6, %v2137_v8  ;;  %v6390_v10 = vadd.f32 %v4542_v6, %v2136_v61  ;;  %v6395_v50 = vadd.f32 %v4542_v6, %v2138_v14  ;;  %v5464_v6 = vld [vmem:[#allocation2 + $0xf8] ss:$12 sps:$4 sm:$0xff]   ;;  %v5467_v61 = vld [vmem:[#allocation2 + $0xdc] ss:$12 sps:$4 sm:$0xff]   ;;  %v5469_v14 = vld [vmem:[#allocation2 + $0xc0] ss:$12 sps:$4 sm:$0xff]  }
 0x6dc   : > { %v5465_v8 = vld [vmem:[#allocation2 + $0xd8] ss:$12 sps:$4 sm:$0xff]  }
 0x6dd   : > { %v2148_v12 = vpack.c.bf16 %v6388_v9, %v6390_v10  ;;  %v2149_v16 = vpack.c.bf16 %v6395_v50, %v6395_v50 }
 0x6df   : > { %2274 = vmatmul.mubr.bf16.vlgmr.msra.gmra.mxu0 %v2148_v12  ;;  %v5471_v12 = vld [vmem:[#allocation2 + $0xc4] ss:$12 sps:$4 sm:$0xff]  }
 0x6e0   : > { %2283 = vmatprep.mubr.bf16.mxu0 %v5814_v1  ;;  %2747 = vmatpush1.bf16.msra.mxu0 %v5441_v56 }
 0x6e1   : > { %2748 = vmatprep.subr.bf16.mxu0 %v5447_v24 }
 0x6e4   : > { %2749 = vmatpush1.bf16.msra.mxu0 %v5445_v58 }
 0x6e5   : > { %2750 = vmatprep.subr.bf16.mxu0 %v5451_v59 }
 0x6e7   : > { %2284 = vmatmul.mubr.bf16.gmra.mxu0 %v2149_v16  ;;  %v5472_v16 = vld [vmem:[#allocation2 + $0xc8] ss:$12 sps:$4 sm:$0xff]  }
 0x6e8   : > { %2778 = vmatprep.mubr.bf16.mxu0 %v5814_v1  ;;  %2751 = vmatpush1.bf16.msra.mxu0 %v5449_v40 }
 0x6e9   : > { %2752 = vmatprep.subr.bf16.mxu0 %v5455_v0 }
 0x6ec   : > { %2753 = vmatpush1.bf16.msra.mxu0 %v5453_v45 }
 0x6ed   : > { %2754 = vmatprep.subr.bf16.mxu0 %v5459_v4  ;;  %v4577_v4 = vld [vmem:[%s6828_s13] ss:$0 sm:$0xff] }
 0x6f0   : > { %2755 = vmatpush1.bf16.msra.mxu0 %v5457_v5 }
 0x6f1   : > { %2756 = vmatprep.subr.bf16.mxu0 %v5463_v7 }
 0x6f4   : > { %2757 = vmatpush1.bf16.msra.mxu0 %v5461_v60 }
 0x6f5   : > { %2758 = vmatprep.subr.bf16.mxu0 %v5467_v61 }
 0x6f8   : > { %2759 = vmatpush1.bf16.msra.mxu0 %v5465_v8 }
 0x6f9   : > { %2760 = vmatprep.subr.bf16.mxu0 %v5471_v12 }
 0x6fc   : > { %2761 = vmatpush1.bf16.msra.mxu0 %v5469_v14 }
 0x6fd   : > { %5066 = vmatprep.subr.mxu0 %v5819_v43 }
 0x79f   : > { %v2275_v25 = vpop.f32.mrf.mxu0 }
 0x7a0   : > { %v2276_v27 = vadd.f32 %v2275_v25, %v2154_v15 }
 0x7a1   : > { %v2277_v26 = vpop.f32.mrf.mxu0 }
 0x7a2   : > { %v2278_v13 = vadd.f32 %v2277_v26, %v2158_v52  ;;  %v2292_v35 = vmax.f32 %v2276_v27, 0.0 }
 0x7a3   : > { %v2279_v28 = vpop.f32.mrf.mxu0 }
 0x7a4   : > { %v2280_v30 = vadd.f32 %v2279_v28, %v2154_v15  ;;  %v2293_v29 = vmax.f32 %v2278_v13, 0.0 }
 0x7a5   : > { %v2281_v18 = vpop.f32.mrf.mxu0 }
 0x7a6   : > { %v2282_v31 = vadd.f32 %v2281_v18, %v2158_v52  ;;  %v2294_v32 = vmax.f32 %v2280_v30, 0.0 }
 0x7a7   : > { %v2285_v33 = vpop.f32.mrf.mxu0 }
 0x7a8   : > { %v2295_v34 = vmax.f32 %v2282_v31, 0.0  ;;  %v2298_v42 = vpack.c.bf16 %v2294_v32, %v2292_v35  ;;  %v2286_v38 = vadd.f32 %v2285_v33, %v2154_v15 }
 0x7a9   : > { %v2287_v36 = vpop.f32.mrf.mxu0 }
 0x7aa   : > { %v2299_v37 = vpack.c.bf16 %v2295_v34, %v2293_v29  ;;  %v2288_v39 = vadd.f32 %v2287_v36, %v2158_v52  ;;  %v2296_v53 = vmax.f32 %v2286_v38, 0.0 }
 0x7ab   : > { %v2289_v47 = vpop.f32.mrf.mxu0 }
 0x7ac   : > { %v2297_v48 = vmax.f32 %v2288_v39, 0.0  ;;  %2436 = vmatprep.mubr.bf16.mxu1 %v2299_v37  ;;  %v2300_v54 = vpack.c.bf16 %v2296_v53, %v2296_v53 }
 0x7ad   : > { %v2290_v44 = vpop.f32.mrf.mxu0  ;;  %2437 = vmatmul.mubr.bf16.vlgmr.msra.gmra.mxu1 %v2298_v42 }
 0x7ae   : > { %v2301_v51 = vpack.c.bf16 %v2297_v48, %v2297_v48  ;;  %5047 = vmatpush3.bf16.msra.mxu1 %v5444_v57 }
 0x7af   : > { %5048 = vmatprep.subr.bf16.mxu1 %v5448_v23 }
 0x7b0   : > { %2444 = vmatprep.mubr.bf16.mxu1 %v2301_v51 }
 0x7b2   : > { %5049 = vmatpush3.bf16.msra.mxu1 %v5448_v23 }
 0x7b3   : > { %5050 = vmatprep.subr.bf16.mxu1 %v5452_v62 }
 0x7b5   : > { %2445 = vmatmul.mubr.bf16.gmra.mxu1 %v2300_v54 }
 0x7b6   : > { %5051 = vmatpush3.bf16.msra.mxu1 %v5452_v62  ;;  %v4576_v62 = vld [vmem:[%s6827_s12] ss:$0 sm:$0xff] }
 0x7b7   : > { %5052 = vmatprep.subr.bf16.mxu1 %v5456_v2 }
 0x7ba   : > { %5053 = vmatpush3.bf16.msra.mxu1 %v5456_v2 }
 0x7bb   : > { %5054 = vmatprep.subr.bf16.mxu1 %v5460_v49 }
 0x7be   : > { %5055 = vmatpush3.bf16.msra.mxu1 %v5460_v49 }
 0x7bf   : > { %5056 = vmatprep.subr.bf16.mxu1 %v5464_v6 }
 0x7c2   : > { %5057 = vmatpush3.bf16.msra.mxu1 %v5464_v6 }
 0x7c3   : > { %5058 = vmatprep.subr.bf16.mxu1 %v5468_v63 }
 0x7c6   : > { %5059 = vmatpush3.bf16.msra.mxu1 %v5468_v63 }
 0x7c7   : > { %5060 = vmatprep.subr.bf16.mxu1 %v5472_v16 }
 0x7ca   : > { %5061 = vmatpush3.bf16.msra.mxu1 %v5472_v16 }
 0x7cb   : > { %5111 = vmatprep.subr.mxu1 %v5819_v43 }
 0x86d   : > { %v4778_v17 = vpop.f32.mrf.mxu1 }
 0x86f   : > { %v4779_v11 = vpop.f32.mrf.mxu1 }
 0x870   : > { %v4780_v3 = vadd.f32 %v4779_v11, %v4778_v17 }
 0x871   : > { %v4781_v19 = vpop.f32.mrf.mxu1 }
 0x872   : > { %v2439_v52 = vadd.f32 %v4780_v3, %v4559_v20 }
 0x873   : > { %v4782_v21 = vpop.f32.mrf.mxu1 }
 0x874   : > { %v4783_v22 = vadd.f32 %v4782_v21, %v4781_v19  ;;  %v2452_v27 = vadd.f32 %v2439_v52, %v6390_v10 }
 0x875   : > { %v4784_v25 = vpop.f32.mrf.mxu1 }
 0x876   : > { %v2442_v15 = vadd.f32 %v4783_v22, %v4559_v20 }
 0x877   : > { %v4785_v26 = vpop.f32.mrf.mxu1 }
 0x878   : > { %v2453_v28 = vadd.f32 %v2442_v15, %v6388_v9  ;;  %v4786_v13 = vadd.f32 %v4785_v26, %v4784_v25 }
 0x879   : > { %v4787_v30 = vpop.f32.mrf.mxu1 }
 0x87a   : > { %v2447_v18 = vadd.f32 %v4786_v13, %v4559_v20  ;;  %v2455_v32 = vadd.f32 %v2453_v28, %v2452_v27 }
 0x87b   : > { %v4788_v31 = vpop.f32.mrf.mxu1 }
 0x87c   : > { %v2454_v33 = vadd.f32 %v2447_v18, %v6395_v50 }
 0x87e   : > { %v2456_v29 = vadd.f32 %v2455_v32, %v2454_v33 }
 0x880   : > { %v2457_v34 = vrot.slane %v2456_v29, 4 }
 0x882   : > { %v2458_v35 = vadd.f32 %v2457_v34, %v2456_v29 }
 0x884   : > { %v2459_v36 = vrot.slane %v2458_v35, 2 }
 0x886   : > { %v2460_v37 = vadd.f32 %v2459_v36, %v2458_v35 }
 0x888   : > { %v2461_v39 = vrot.slane %v2460_v37, 1 }
 0x88a   : > { %v2462_v42 = vadd.f32 %v2461_v39, %v2460_v37 }
 0x88c   : > { %v2463_v38 = vmul.f32 0.041666668, %v2462_v42 }
 0x88e   : > { %v2464_v47 = vsub.f32 %v2452_v27, %v2463_v38  ;;  %v2465_v48 = vsub.f32 %v2453_v28, %v2463_v38  ;;  %v2466_v9 = vsub.f32 %v2454_v33, %v2463_v38 }
 0x890   : > { %v2467_v44 = vmul.f32 %v2464_v47, %v2464_v47  ;;  %v2468_v51 = vmul.f32 %v2465_v48, %v2465_v48  ;;  %v2469_v53 = vmul.f32 %v2466_v9, %v2466_v9 }
 0x892   : > { %v2470_v10 = vadd.f32 %v2468_v51, %v2467_v44 }
 0x894   : > { %v2471_v54 = vadd.f32 %v2470_v10, %v2469_v53 }
 0x896   : > { %v2472_v55 = vrot.slane %v2471_v54, 4 }
 0x898   : > { %v2473_v56 = vadd.f32 %v2472_v55, %v2471_v54 }
 0x89a   : > { %v2474_v57 = vrot.slane %v2473_v56, 2 }
 0x89c   : > { %v2475_v50 = vadd.f32 %v2474_v57, %v2473_v56 }
 0x89e   : > { %v2476_v24 = vrot.slane %v2475_v50, 1 }
 0x8a0   : > { %v2477_v58 = vadd.f32 %v2476_v24, %v2475_v50 }
 0x8a2   : > { %v2478_v23 = vmul.f32 0.041666668, %v2477_v58 }
 0x8a4   : > { %v2479_v59 = vadd.f32 1e-05, %v2478_v23 }
 0x8a6   : > { %5571 = vrsqrt.f32 %v2479_v59 }
 0x8b3   : > { %v5572_v40 = vpop.eup %5571 }
 0x8b4   : > { %v2481_v0 = vmul.f32 %v5572_v40, %v2464_v47  ;;  %v2482_v45 = vmul.f32 %v5572_v40, %v2465_v48  ;;  %v2483_v2 = vmul.f32 %v5572_v40, %v2466_v9 }
 0x8b6   : > { %v2490_v5 = vmul.f32 %v4576_v62, %v2481_v0  ;;  %v2491_v49 = vmul.f32 %v4576_v62, %v2482_v45  ;;  %v2492_v7 = vmul.f32 %v4576_v62, %v2483_v2 }
 0x8b8   : > { %v6419_v60 = vadd.f32 %v4577_v4, %v2492_v7  ;;  %v6421_v6 = vadd.f32 %v4577_v4, %v2490_v5  ;;  %v6423_v61 = vadd.f32 %v4577_v4, %v2491_v49 }
 0x8ba   : > { %v2616_v8 = vpack.c.bf16 %v6423_v61, %v6421_v6  ;;  %v2617_v63 = vpack.c.bf16 %v6419_v60, %v6419_v60 }
 0x8bc   : > { %2779 = vmatmul.mubr.bf16.vlgmr.msra.gmra.mxu0 %v2616_v8  ;;  %5062 = vmatprep.mubr.bf16.mxu1 %v2616_v8 }
 0x8bd   : > { %5063 = vmatmul.mubr.bf16.vlgmr.msra.gmra.mxu1 %v2617_v63  ;;  %2788 = vmatprep.mubr.bf16.mxu0 %v5814_v1 }
 0x8be   : > { %5117 = vmatprep.mubr.msk.f32.mxu1 %vm5820_vm0, %v5819_v43 }
 0x8c4   : > { %2789 = vmatmul.mubr.bf16.gmra.mxu0 %v2617_v63 }
 0x8c5   : > { %5072 = vmatprep.mubr.msk.f32.mxu0 %vm5820_vm0, %v5819_v43 }
 0x97c   : > { %v2780_v12 = vpop.f32.mrf.mxu0 }
 0x97d   : > { %v6434_v14 = vpop.f32.mrf.mxu1 }
 0x97e   : > { %v2782_v16 = vpop.f32.mrf.mxu0 }
 0x97f   : > { %v6436_v17 = vpop.f32.mrf.mxu1 }
 0x980   : > { %v2784_v11 = vpop.f32.mrf.mxu0 }
 0x981   : > { %v5065_v19 = vpop.f32.mrf.mxu1 }
 0x982   : > { %v2786_v3 = vpop.f32.mrf.mxu0 }
 0x983   : > { %2871 = vrot.lane.b32.xlu1 %v2786_v3, %s5821_s21  ;;  %v6507_v37 = vpop.f32.mrf.mxu1 }
 0x984   : > { %v2790_v20 = vpop.f32.mrf.mxu0 }
 0x986   : > { %v2792_v21 = vpop.f32.mrf.mxu0 }
 0x987   : > { %2848 = vrot.lane.b32.xlu1 %v2780_v12, %s5821_s21  ;;  %2873 = vrot.lane.b32.xlu0 %v2792_v21, %s5821_s21 }
 0x988   : > { %5067 = vmatpush3.xpose.msk.msra.mxu0 %vm1076_vm1, %v2792_v21  ;;  %v2794_v22 = vpop.f32.mrf.mxu0 }
 0x989   : > { %5068 = vmatprep.subr.mxu0 %v5819_v43 }
 0x98a   : > { %v2795_v25 = vpop.f32.mrf.mxu0 }
 0x98b   : > { %2877 = vrot.lane.b32.xlu1 %v2786_v3, %s5823_s26  ;;  %2869 = vrot.lane.b32.xlu0 %v2782_v16, %s5821_s21 }
 0x98c   : > { %5069 = vmatpush3.xpose.msk.msra.mxu0 %vm1076_vm1, %v2786_v3 }
 0x98d   : > { %5070 = vmatprep.subr.mxu0 %v5819_v43 }
 0x98f   : > { %2885 = vrot.lane.b32.xlu1 %v2792_v21, %s5822_s15  ;;  %2850 = vrot.lane.b32.xlu0 %v2784_v11, %s5821_s21 }
 0x990   : > { %5071 = vmatpush3.xpose.msk.msra.mxu0 %vm1076_vm1, %v2782_v16 }
 0x991   : > { %5081 = vmatprep.subr.mxu0 %v5819_v43 }
 0x993   : > { %5073 = vmatmul.mubr.msk.f32.vlgmr.msra.gmra.mxu0 %vm1076_vm1, %v2780_v12  ;;  %2852 = vrot.lane.b32.xlu1 %v2790_v20, %s5821_s21 }
 0x994   : > { %2879 = vrot.lane.b32.xlu0 %v2792_v21, %s5823_s26  ;;  %5075 = vmatprep.mubr.msk.f32.mxu0 %vm5820_vm0, %v5819_v43 }
 0x997   : > { %5076 = vmatmul.mubr.msk.f32.gmra.mxu0 %vm1076_vm1, %v2784_v11  ;;  %2881 = vrot.lane.b32.xlu1 %v2782_v16, %s5822_s15 }
 0x998   : > { %2883 = vrot.lane.b32.xlu0 %v2786_v3, %s5822_s15  ;;  %5078 = vmatprep.mubr.msk.f32.mxu0 %vm5820_vm0, %v5819_v43 }
 0x99b   : > { %5079 = vmatmul.mubr.msk.f32.gmra.mxu0 %vm1076_vm1, %v2790_v20  ;;  %2860 = vrot.lane.b32.xlu1 %v2780_v12, %s5822_s15 }
 0x99c   : > { %2875 = vrot.lane.b32.xlu0 %v2782_v16, %s5823_s26  ;;  %5087 = vmatprep.mubr.msk.f32.mxu0 %vm5820_vm0, %v5819_v43 }
 0x99f   : > { %2862 = vrot.lane.b32.xlu1 %v2784_v11, %s5822_s15 }
 0x9a0   : > { %2854 = vrot.lane.b32.xlu0 %v2780_v12, %s5823_s26 }
 0x9a3   : > { %2864 = vrot.lane.b32.xlu1 %v2790_v20, %s5822_s15 }
 0x9a4   : > { %2856 = vrot.lane.b32.xlu0 %v2784_v11, %s5823_s26 }
 0x9a7   : > { %2894 = vrot.lane.b32.xlu1 %v6434_v14, %s5821_s21 }
 0x9a8   : > { %2858 = vrot.lane.b32.xlu0 %v2790_v20, %s5823_s26 }
 0x9f5   : > { %v2872_v52 = vpop.permute.xlu1 %2871 }
 0x9f9   : > { %v2849_v15 = vpop.permute.xlu1 %2848  ;;  %v2874_v26 = vpop.permute.xlu0 %2873 }
 0x9fa   : > { %5082 = vmatpush3.xpose.msk.msra.mxu0 %vm1076_vm1, %v2874_v26 }
 0x9fb   : > { %5083 = vmatprep.subr.mxu0 %v5819_v43 }
 0x9fd   : > { %v2878_v28 = vpop.permute.xlu1 %2877  ;;  %v2870_v13 = vpop.permute.xlu0 %2869 }
 0x9fe   : > { %5084 = vmatpush3.xpose.msk.msra.mxu0 %vm1076_vm1, %v2872_v52 }
 0x9ff   : > { %5085 = vmatprep.subr.mxu0 %v5819_v43 }
 0xa01   : > { %v2886_v30 = vpop.permute.xlu1 %2885  ;;  %v2851_v27 = vpop.permute.xlu0 %2850 }
 0xa02   : > { %5086 = vmatpush3.xpose.msk.msra.mxu0 %vm1076_vm1, %v2870_v13  ;;  %5112 = vmatpush3.xpose.msk.msra.mxu1 %vm1076_vm1, %v2886_v30 }
 0xa03   : > { %5096 = vmatprep.subr.mxu0 %v5819_v43  ;;  %5113 = vmatprep.subr.mxu1 %v5819_v43 }
 0xa05   : > { %v2853_v18 = vpop.permute.xlu1 %2852  ;;  %5088 = vmatmul.mubr.msk.f32.vlgmr.msra.gmra.mxu0 %vm1076_vm1, %v2849_v15 }
 0xa06   : > { %v2880_v31 = vpop.permute.xlu0 %2879  ;;  %5090 = vmatprep.mubr.msk.f32.mxu0 %vm5820_vm0, %v5819_v43 }
 0xa07   : > { %5097 = vmatpush3.xpose.msk.msra.mxu0 %vm1076_vm1, %v2880_v31 }
 0xa08   : > { %5098 = vmatprep.subr.mxu0 %v5819_v43 }
 0xa09   : > { %v2882_v32 = vpop.permute.xlu1 %2881  ;;  %5091 = vmatmul.mubr.msk.f32.gmra.mxu0 %vm1076_vm1, %v2851_v27 }
 0xa0a   : > { %v2884_v33 = vpop.permute.xlu0 %2883  ;;  %5093 = vmatprep.mubr.msk.f32.mxu0 %vm5820_vm0, %v5819_v43 }
 0xa0b   : > { %5099 = vmatpush3.xpose.msk.msra.mxu0 %vm1076_vm1, %v2878_v28  ;;  %5114 = vmatpush3.xpose.msk.msra.mxu1 %vm1076_vm1, %v2884_v33 }
 0xa0c   : > { %5115 = vmatprep.subr.mxu1 %v5819_v43  ;;  %5100 = vmatprep.subr.mxu0 %v5819_v43 }
 0xa0d   : > { %v2861_v29 = vpop.permute.xlu1 %2860  ;;  %5094 = vmatmul.mubr.msk.f32.gmra.mxu0 %vm1076_vm1, %v2853_v18 }
 0xa0e   : > { %v2876_v34 = vpop.permute.xlu0 %2875  ;;  %5102 = vmatprep.mubr.msk.f32.mxu0 %vm5820_vm0, %v5819_v43 }
 0xa0f   : > { %5101 = vmatpush3.xpose.msk.msra.mxu0 %vm1076_vm1, %v2876_v34  ;;  %5116 = vmatpush3.xpose.msk.msra.mxu1 %vm1076_vm1, %v2882_v32 }
 0xa10   : > { %5126 = vmatprep.subr.mxu0 %v5819_v43  ;;  %5141 = vmatprep.subr.mxu1 %v5819_v43 }
 0xa11   : > { %v2863_v35 = vpop.permute.xlu1 %2862 }
 0xa12   : > { %5118 = vmatmul.mubr.msk.f32.vlgmr.msra.gmra.mxu1 %vm1076_vm1, %v2861_v29  ;;  %v2855_v36 = vpop.permute.xlu0 %2854 }
 0xa13   : > { %5103 = vmatmul.mubr.msk.f32.vlgmr.msra.gmra.mxu0 %vm1076_vm1, %v2855_v36  ;;  %5120 = vmatprep.mubr.msk.f32.mxu1 %vm5820_vm0, %v5819_v43 }
 0xa14   : > { %5127 = vmatpush3.msra.mxu0 %v6434_v14  ;;  %5105 = vmatprep.mubr.msk.f32.mxu0 %vm5820_vm0, %v5819_v43 }
 0xa15   : > { %5128 = vmatprep.subr.mxu0 %v5819_v43  ;;  %v2865_v39 = vpop.permute.xlu1 %2864 }
 0xa16   : > { %5129 = vmatpush3.msra.mxu0 %v6507_v37  ;;  %5121 = vmatmul.mubr.msk.f32.gmra.mxu1 %vm1076_vm1, %v2863_v35  ;;  %v2857_v42 = vpop.permute.xlu0 %2856 }
 0xa17   : > { %5130 = vmatprep.subr.mxu0 %v5819_v43  ;;  %5106 = vmatmul.mubr.msk.f32.gmra.mxu0 %vm1076_vm1, %v2857_v42 }
 0xa18   : > { %5131 = vmatpush3.msra.mxu0 %v6436_v17  ;;  %5123 = vmatprep.mubr.msk.f32.mxu1 %vm5820_vm0, %v5819_v43 }
 0xa19   : > { %v2895_v38 = vpop.permute.xlu1 %2894  ;;  %5108 = vmatprep.mubr.msk.f32.mxu0 %vm5820_vm0, %v5819_v43  ;;  %5156 = vmatprep.subr.mxu0 %v5819_v43 }
 0xa1a   : > { %5124 = vmatmul.mubr.msk.f32.gmra.mxu1 %vm1076_vm1, %v2865_v39  ;;  %v2859_v47 = vpop.permute.xlu0 %2858 }
 0xa1b   : > { %5109 = vmatmul.mubr.msk.f32.gmra.mxu0 %vm1076_vm1, %v2859_v47  ;;  %5142 = vmatpush3.msra.mxu1 %v2895_v38 }
 0xa1c   : > { %5143 = vmatprep.subr.mxu1 %v5819_v43  ;;  %5132 = vmatprep.mubr.msk.f32.mxu0 %vm5820_vm0, %v5819_v43 }
 0xa1d   : > { %5147 = vmatprep.mubr.msk.f32.mxu1 %vm5820_vm0, %v5819_v43 }
 0xa53   : > { %v2995_v48 = vpop.f32.mrf.mxu0 }
 0xa54   : > { %v6527_v9 = vmul.f32 0.17677669, %v2995_v48 }
 0xa55   : > { %v5074_v44 = vpop.f32.mrf.mxu0 }
 0xa56   : > { %v3297_v51 = vsel %vm1457_vm2, %v6527_v9, -inf }
 0xa57   : > { %3298 = vmax.xlane.f32.xlu0 %v3297_v51  ;;  %v3000_v53 = vpop.f32.mrf.mxu0 }
 0xa58   : > { %v6531_v10 = vmul.f32 0.17677669, %v3000_v53 }
 0xa59   : > { %v5077_v54 = vpop.f32.mrf.mxu0 }
 0xa5a   : > { %v3300_v55 = vsel %vm1457_vm2, %v6531_v10, -inf }
 0xa5b   : > { %3301 = vmax.xlane.f32.xlu0 %v3300_v55  ;;  %v3005_v56 = vpop.f32.mrf.mxu0 }
 0xa5c   : > { %v6535_v57 = vmul.f32 0.17677669, %v3005_v56 }
 0xa5d   : > { %v5080_v50 = vpop.f32.mrf.mxu0 }
 0xa5e   : > { %v3303_v24 = vsel %vm1457_vm2, %v6535_v57, -inf }
 0xa5f   : > { %3304 = vmax.xlane.f32.xlu1 %v3303_v24 }
 0xac5   : > { %v3087_v58 = vpop.f32.mrf.mxu0 }
 0xac6   : > { %v6539_v23 = vmul.f32 0.17677669, %v3087_v58 }
 0xac7   : > { %v5089_v59 = vpop.f32.mrf.mxu0 }
 0xac8   : > { %v3306_v40 = vsel %vm1457_vm2, %v6539_v23, -inf }
 0xac9   : > { %3307 = vmax.xlane.f32.xlu1 %v3306_v40  ;;  %v3092_v62 = vpop.f32.mrf.mxu0 }
 0xaca   : > { %v6545_v8 = vmul.f32 0.17677669, %v3092_v62 }
 0xacb   : > { %v5092_v0 = vpop.f32.mrf.mxu0 }
 0xacc   : > { %v3309_v21 = vsel %vm1457_vm2, %v6545_v8, -inf }
 0xacd   : > { %v3097_v45 = vpop.f32.mrf.mxu0 }
 0xace   : > { %v6555_v15 = vmul.f32 0.17677669, %v3097_v45 }
 0xacf   : > { %v5095_v2 = vpop.f32.mrf.mxu0 }
 0xad0   : > { %v3312_v13 = vsel %vm1457_vm2, %v6555_v15, -inf }
 0xad2   : > { %v3271_v4 = vpop.f32.mrf.mxu1 }
 0xad3   : > { %v6543_v5 = vmul.f32 0.17677669, %v3271_v4  ;;  %v3179_v49 = vpop.f32.mrf.mxu0 }
 0xad4   : > { %v5119_v7 = vpop.f32.mrf.mxu1  ;;  %v6565_v30 = vmul.f32 0.17677669, %v3179_v49 }
 0xad5   : > { %v5104_v63 = vpop.f32.mrf.mxu0  ;;  %v3324_v12 = vsel %vm1457_vm2, %v6543_v5, -inf }
 0xad6   : > { %v3276_v16 = vpop.f32.mrf.mxu1  ;;  %3325 = vmax.xlane.f32.xlu0 %v3324_v12  ;;  %v3315_v18 = vsel %vm1457_vm2, %v6565_v30, -inf }
 0xad7   : > { %v3184_v11 = vpop.f32.mrf.mxu0  ;;  %v6549_v3 = vmul.f32 0.17677669, %v3276_v16 }
 0xad8   : > { %v5122_v19 = vpop.f32.mrf.mxu1  ;;  %v6567_v27 = vmul.f32 0.17677669, %v3184_v11 }
 0xad9   : > { %v5107_v20 = vpop.f32.mrf.mxu0  ;;  %v3327_v28 = vsel %vm1457_vm2, %v6549_v3, -inf }
 0xada   : > { %v3281_v22 = vpop.f32.mrf.mxu1  ;;  %3310 = vmax.xlane.f32.xlu0 %v3309_v21  ;;  %2890 = vrot.lane.b32.xlu1 %v6436_v17, %s5821_s21  ;;  %v3318_v32 = vsel %vm1457_vm2, %v6567_v27, -inf }
 0xadb   : > { %v3189_v25 = vpop.f32.mrf.mxu0  ;;  %v6577_v29 = vmul.f32 0.17677669, %v3281_v22 }
 0xadc   : > { %v5125_v52 = vpop.f32.mrf.mxu1  ;;  %v6571_v31 = vmul.f32 0.17677669, %v3189_v25 }
 0xadd   : > { %v5110_v26 = vpop.f32.mrf.mxu0  ;;  %v3330_v34 = vsel %vm1457_vm2, %v6577_v29, -inf }
 0xade   : > { %3328 = vmax.xlane.f32.xlu0 %v3327_v28  ;;  %2903 = vrot.lane.b32.xlu1 %v6434_v14, %s5823_s26  ;;  %v3321_v33 = vsel %vm1457_vm2, %v6571_v31, -inf }
 0xae0   : > { %v3299_v35 = vpop.xlane.xlu0 %3298 }
 0xae1   : > { %v3333_v36 = vsub.f32 %v6527_v9, %v3299_v35 }
 0xae2   : > { %3313 = vmax.xlane.f32.xlu0 %v3312_v13 }
 0xae3   : > { %v3345_v42 = vmul.f32 1.442695, %v3333_v36 }
 0xae4   : > { %v3302_v39 = vpop.xlane.xlu0 %3301 }
 0xae5   : > { %v3334_v38 = vsub.f32 %v6531_v10, %v3302_v39  ;;  %5573 = vpow2.f32 %v3345_v42 }
 0xae7   : > { %v3347_v48 = vmul.f32 1.442695, %v3334_v38 }
 0xae8   : > { %v3305_v47 = vpop.xlane.xlu1 %3304 }
 0xae9   : > { %v3335_v44 = vsub.f32 %v6535_v57, %v3305_v47  ;;  %5575 = vpow2.f32 %v3347_v48 }
 0xaeb   : > { %v3349_v51 = vmul.f32 1.442695, %v3335_v44 }
 0xaed   : > { %5577 = vpow2.f32 %v3349_v51 }
 0xaf2   : > { %v6590_v53 = vpop.eup %5573 }
 0xaf3   : > { %v3369_v9 = vsel %vm1457_vm2, %v6590_v53, 0.0 }
 0xaf6   : > { %v6594_v10 = vpop.eup %5575 }
 0xaf8   : > { %2892 = vrot.lane.b32.xlu0 %v6507_v37, %s5821_s21 }
 0xafa   : > { %v6598_v54 = vpop.eup %5577 }
 0xb02   : > { %3316 = vmax.xlane.f32.xlu1 %v3315_v18 }
 0xb06   : > { %3319 = vmax.xlane.f32.xlu1 %v3318_v32 }
 0xb0a   : > { %3322 = vmax.xlane.f32.xlu1 %v3321_v33 }
 0xb17   : > { %3331 = vmax.xlane.f32.xlu0 %v3330_v34 }
 0xb1b   : > { %2901 = vrot.lane.b32.xlu1 %v6507_v37, %s5823_s26 }
 0xb2d   : > { %2912 = vrot.lane.b32.xlu0 %v6434_v14, %s5822_s15  ;;  %v3372_v14 = vsel %vm1457_vm2, %v6594_v10, 0.0 }
 0xb31   : > { %2910 = vrot.lane.b32.xlu0 %v6507_v37, %s5822_s15  ;;  %v3375_v37 = vsel %vm1457_vm2, %v6598_v54, 0.0 }
 0xb3f   : > { %3370 = vadd.xlane.f32.xlu1 %v3369_v9 }
 0xb43   : > { %3373 = vadd.xlane.f32.xlu1 %v3372_v14 }
 0xb47   : > { %3376 = vadd.xlane.f32.xlu1 %v3375_v37 }
 0xb52   : > { %v3308_v55 = vpop.xlane.xlu1 %3307 }
 0xb53   : > { %v3336_v56 = vsub.f32 %v6539_v23, %v3308_v55 }
 0xb55   : > { %v3351_v57 = vmul.f32 1.442695, %v3336_v56 }
 0xb57   : > { %5579 = vpow2.f32 %v3351_v57 }
 0xb5f   : > { %v3326_v50 = vpop.xlane.xlu0 %3325 }
 0xb60   : > { %v3342_v24 = vsub.f32 %v6543_v5, %v3326_v50 }
 0xb62   : > { %v3363_v58 = vmul.f32 1.442695, %v3342_v24 }
 0xb63   : > { %v3311_v59 = vpop.xlane.xlu0 %3310 }
 0xb64   : > { %v6604_v40 = vpop.eup %5579  ;;  %5581 = vpow2.f32 %v3363_v58  ;;  %v3337_v62 = vsub.f32 %v6545_v8, %v3311_v59  ;;  %v2891_v8 = vpop.permute.xlu1 %2890 }
 0xb65   : > { %v3378_v0 = vsel %vm1457_vm2, %v6604_v40, 0.0 }
 0xb66   : > { %v3353_v45 = vmul.f32 1.442695, %v3337_v62  ;;  %3379 = vadd.xlane.f32.xlu0 %v3378_v0 }
 0xb67   : > { %v3329_v2 = vpop.xlane.xlu0 %3328 }
 0xb68   : > { %5583 = vpow2.f32 %v3353_v45  ;;  %v3343_v23 = vsub.f32 %v6549_v3, %v3329_v2  ;;  %v2904_v25 = vpop.permute.xlu1 %2903 }
 0xb6a   : > { %v3365_v4 = vmul.f32 1.442695, %v3343_v23 }
 0xb6b   : > { %v3314_v49 = vpop.xlane.xlu0 %3313 }
 0xb6c   : > { %5585 = vpow2.f32 %v3365_v4  ;;  %v3338_v5 = vsub.f32 %v6555_v15, %v3314_v49 }
 0xb6e   : > { %v3355_v7 = vmul.f32 1.442695, %v3338_v5 }
 0xb6f   : > { %v2893_v63 = vpop.permute.xlu0 %2892 }
 0xb70   : > { %5587 = vpow2.f32 %v3355_v7  ;;  %5144 = vmatpush3.msra.mxu1 %v2893_v63 }
 0xb71   : > { %v6611_v12 = vpop.eup %5581  ;;  %5145 = vmatprep.subr.mxu1 %v5819_v43 }
 0xb72   : > { %5146 = vmatpush3.msra.mxu1 %v2891_v8  ;;  %v3396_v16 = vsel %vm1457_vm2, %v6611_v12, 0.0 }
 0xb73   : > { %3397 = vadd.xlane.f32.xlu0 %v3396_v16  ;;  %5171 = vmatprep.subr.mxu1 %v5819_v43 }
 0xb75   : > { %v6617_v11 = vpop.eup %5583 }
 0xb76   : > { %v3381_v19 = vsel %vm1457_vm2, %v6617_v11, 0.0 }
 0xb77   : > { %3382 = vadd.xlane.f32.xlu0 %v3381_v19 }
 0xb79   : > { %v6621_v3 = vpop.eup %5585 }
 0xb7a   : > { %v3399_v20 = vsel %vm1457_vm2, %v6621_v3, 0.0 }
 0xb7b   : > { %3400 = vadd.xlane.f32.xlu0 %v3399_v20 }
 0xb7d   : > { %v6625_v21 = vpop.eup %5587 }
 0xb7e   : > { %v3384_v22 = vsel %vm1457_vm2, %v6625_v21, 0.0 }
 0xb7f   : > { %3385 = vadd.xlane.f32.xlu0 %v3384_v22 }
 0xb8b   : > { %v3317_v52 = vpop.xlane.xlu1 %3316 }
 0xb8c   : > { %v3339_v15 = vsub.f32 %v6565_v30, %v3317_v52 }
 0xb8e   : > { %v3357_v26 = vmul.f32 1.442695, %v3339_v15 }
 0xb8f   : > { %v3320_v28 = vpop.xlane.xlu1 %3319 }
 0xb90   : > { %5589 = vpow2.f32 %v3357_v26  ;;  %v3340_v13 = vsub.f32 %v6567_v27, %v3320_v28 }
 0xb92   : > { %v3359_v18 = vmul.f32 1.442695, %v3340_v13 }
 0xb93   : > { %v3323_v32 = vpop.xlane.xlu1 %3322 }
 0xb94   : > { %5591 = vpow2.f32 %v3359_v18  ;;  %v3341_v33 = vsub.f32 %v6571_v31, %v3323_v32 }
 0xb96   : > { %v3361_v34 = vmul.f32 1.442695, %v3341_v33 }
 0xb98   : > { %5593 = vpow2.f32 %v3361_v34 }
 0xb9d   : > { %v6632_v35 = vpop.eup %5589 }
 0xb9e   : > { %v3387_v36 = vsel %vm1457_vm2, %v6632_v35, 0.0 }
 0xb9f   : > { %3388 = vadd.xlane.f32.xlu1 %v3387_v36 }
 0xba0   : > { %v3332_v39 = vpop.xlane.xlu0 %3331 }
 0xba1   : > { %v6636_v30 = vpop.eup %5591  ;;  %v3344_v42 = vsub.f32 %v6577_v29, %v3332_v39  ;;  %v2902_v29 = vpop.permute.xlu1 %2901 }
 0xba2   : > { %v3390_v27 = vsel %vm1457_vm2, %v6636_v30, 0.0 }
 0xba3   : > { %v3367_v38 = vmul.f32 1.442695, %v3344_v42  ;;  %3391 = vadd.xlane.f32.xlu1 %v3390_v27  ;;  %v5475_v27 = vld [vmem:[#allocation5 + $0x68] sm:$0xff]  }
 0xba4   : > { %v2913_v50 = vpop.permute.xlu0 %2912 }
 0xba5   : > { %v6641_v47 = vpop.eup %5593  ;;  %5595 = vpow2.f32 %v3367_v38 }
 0xba6   : > { %v3393_v31 = vsel %vm1457_vm2, %v6641_v47, 0.0 }
 0xba7   : > { %3394 = vadd.xlane.f32.xlu1 %v3393_v31  ;;  %v5476_v31 = vld [vmem:[#allocation5 + $0x60] sm:$0xff]  }
 0xba8   : > { %v2911_v24 = vpop.permute.xlu0 %2910 }
 0xbb2   : > { %v6645_v48 = vpop.eup %5595 }
 0xbb3   : > { %v3402_v44 = vsel %vm1457_vm2, %v6645_v48, 0.0 }
 0xbb4   : > { %3403 = vadd.xlane.f32.xlu0 %v3402_v44 }
 0xbb8   : > { %2899 = vrot.lane.b32.xlu1 %v6436_v17, %s5823_s26 }
 0xbc8   : > { %v3371_v51 = vpop.xlane.xlu1 %3370 }
 0xbc9   : > { %5597 = vrcp.f32 %v3371_v51  ;;  %v5478_v51 = vld [vmem:[#allocation5 + $0x50] sm:$0xff]  }
 0xbca   : > { %2908 = vrot.lane.b32.xlu0 %v6436_v17, %s5822_s15 }
 0xbcc   : > { %v3374_v9 = vpop.xlane.xlu1 %3373 }
 0xbcd   : > { %5599 = vrcp.f32 %v3374_v9 }
 0xbd0   : > { %v3377_v14 = vpop.xlane.xlu1 %3376 }
 0xbd1   : > { %5601 = vrcp.f32 %v3377_v14 }
 0xbd6   : > { %v5598_v37 = vpop.eup %5597 }
 0xbd7   : > { %v3417_v55 = vmul.f32 %v5598_v37, %v6590_v53  ;;  %v5479_v37 = vld [vmem:[#allocation5 + $0x48] sm:$0xff]  }
 0xbd9   : > { %5133 = vmatmul.mubr.msk.f32.vlgmr.msra.gmra.mxu0 %vm1457_vm2, %v3417_v55 }
 0xbda   : > { %v5600_v56 = vpop.eup %5599  ;;  %5157 = vmatpush3.msra.mxu0 %v2904_v25  ;;  %5135 = vmatprep.mubr.msk.f32.mxu0 %vm5820_vm0, %v5819_v43 }
 0xbdb   : > { %5158 = vmatprep.subr.mxu0 %v5819_v43  ;;  %v3418_v57 = vmul.f32 %v5600_v56, %v6594_v10  ;;  %v5480_v56 = vld [vmem:[#allocation5 + $0x40] sm:$0xff]  }
 0xbdc   : > { %5159 = vmatpush3.msra.mxu0 %v2902_v29  ;;  %v5477_v29 = vld [vmem:[#allocation5 + $0x58] sm:$0xff]  }
 0xbdd   : > { %5136 = vmatmul.mubr.msk.f32.gmra.mxu0 %vm1457_vm2, %v3418_v57  ;;  %5160 = vmatprep.subr.mxu0 %v5819_v43 }
 0xbde   : > { %v5602_v17 = vpop.eup %5601  ;;  %5138 = vmatprep.mubr.msk.f32.mxu0 %vm5820_vm0, %v5819_v43 }
 0xbdf   : > { %v3419_v53 = vmul.f32 %v5602_v17, %v6598_v54 }
 0xbe1   : > { %5139 = vmatmul.mubr.msk.f32.gmra.mxu0 %vm1457_vm2, %v3419_v53 }
 0xbe2   : > { %5162 = vmatprep.mubr.msk.f32.mxu0 %vm5820_vm0, %v5819_v43 }
 0xbef   : > { %v3380_v58 = vpop.xlane.xlu0 %3379 }
 0xbf0   : > { %5603 = vrcp.f32 %v3380_v58 }
 0xbfc   : > { %v3398_v10 = vpop.xlane.xlu0 %3397 }
 0xbfd   : > { %v5604_v59 = vpop.eup %5603 }
 0xbfe   : > { %v3420_v62 = vmul.f32 %v5604_v59, %v6604_v40 }
 0xc00   : > { %v3383_v0 = vpop.xlane.xlu0 %3382  ;;  %5148 = vmatmul.mubr.msk.f32.vlgmr.msra.gmra.mxu1 %vm1457_vm2, %v3420_v62 }
 0xc01   : > { %5605 = vrcp.f32 %v3383_v0  ;;  %5172 = vmatpush3.msra.mxu1 %v2913_v50  ;;  %5150 = vmatprep.mubr.msk.f32.mxu1 %vm5820_vm0, %v5819_v43 }
 0xc02   : > { %5173 = vmatprep.subr.mxu1 %v5819_v43 }
 0xc03   : > { %5174 = vmatpush3.msra.mxu1 %v2911_v24 }
 0xc04   : > { %v3401_v54 = vpop.xlane.xlu0 %3400  ;;  %5175 = vmatprep.subr.mxu1 %v5819_v43 }
 0xc08   : > { %v3386_v45 = vpop.xlane.xlu0 %3385 }
 0xc09   : > { %5607 = vrcp.f32 %v3386_v45 }
 0xc0e   : > { %v5606_v2 = vpop.eup %5605 }
 0xc0f   : > { %v3421_v23 = vmul.f32 %v5606_v2, %v6617_v11 }
 0xc11   : > { %5151 = vmatmul.mubr.msk.f32.gmra.mxu1 %vm1457_vm2, %v3421_v23 }
 0xc12   : > { %5153 = vmatprep.mubr.msk.f32.mxu1 %vm5820_vm0, %v5819_v43 }
 0xc16   : > { %v5608_v40 = vpop.eup %5607 }
 0xc17   : > { %v3422_v4 = vmul.f32 %v5608_v40, %v6625_v21 }
 0xc19   : > { %5154 = vmatmul.mubr.msk.f32.gmra.mxu1 %vm1457_vm2, %v3422_v4 }
 0xc1a   : > { %5177 = vmatprep.mubr.msk.f32.mxu1 %vm5820_vm0, %v5819_v43 }
 0xc28   : > { %v3389_v49 = vpop.xlane.xlu1 %3388 }
 0xc29   : > { %5609 = vrcp.f32 %v3389_v49 }
 0xc2c   : > { %v3392_v5 = vpop.xlane.xlu1 %3391 }
 0xc2d   : > { %5611 = vrcp.f32 %v3392_v5 }
 0xc2e   : > { %5613 = vrcp.f32 %v3398_v10 }
 0xc30   : > { %v3395_v7 = vpop.xlane.xlu1 %3394 }
 0xc31   : > { %5615 = vrcp.f32 %v3395_v7 }
 0xc32   : > { %5617 = vrcp.f32 %v3401_v54 }
 0xc34   : > { %v2900_v63 = vpop.permute.xlu1 %2899 }
 0xc35   : > { %5161 = vmatpush3.msra.mxu0 %v2900_v63 }
 0xc36   : > { %v5610_v8 = vpop.eup %5609 }
 0xc37   : > { %v3423_v16 = vmul.f32 %v5610_v8, %v6632_v35 }
 0xc39   : > { %5163 = vmatmul.mubr.msk.f32.vlgmr.msra.gmra.mxu0 %vm1457_vm2, %v3423_v16 }
 0xc3a   : > { %v5612_v11 = vpop.eup %5611  ;;  %5165 = vmatprep.mubr.msk.f32.mxu0 %vm5820_vm0, %v5819_v43 }
 0xc3b   : > { %v3424_v19 = vmul.f32 %v5612_v11, %v6636_v30  ;;  %v5614_v20 = vpop.eup %5613  ;;  %v5473_v30 = vld [vmem:[#allocation5 + $0x78] sm:$0xff]  }
 0xc3c   : > { %v3426_v52 = vmul.f32 %v5614_v20, %v6611_v12  ;;  %5186 = vmatprep.subr.bf16.mxu0 %v5473_v30 }
 0xc3d   : > { %v3404_v21 = vpop.xlane.xlu0 %3403  ;;  %5166 = vmatmul.mubr.msk.f32.gmra.mxu0 %vm1457_vm2, %v3424_v19 }
 0xc3e   : > { %v5616_v22 = vpop.eup %5615  ;;  %5619 = vrcp.f32 %v3404_v21  ;;  %5168 = vmatprep.mubr.msk.f32.mxu0 %vm5820_vm0, %v5819_v43  ;;  %5187 = vmatpush3.bf16.msra.mxu0 %v5473_v30  ;;  %v5495_v30 = vld [vmem:[#allocation7 + $0xb4] ss:$8 sps:$4 sm:$0xff]  }
 0xc3f   : > { %v3425_v25 = vmul.f32 %v5616_v22, %v6641_v47  ;;  %v5618_v26 = vpop.eup %5617 }
 0xc40   : > { %v3427_v28 = vmul.f32 %v5618_v26, %v6621_v3 }
 0xc41   : > { %v2909_v15 = vpop.permute.xlu0 %2908  ;;  %5169 = vmatmul.mubr.msk.f32.gmra.mxu0 %vm1457_vm2, %v3425_v25 }
 0xc42   : > { %5176 = vmatpush3.msra.mxu1 %v2909_v15 }
 0xc43   : > { %5178 = vmatmul.mubr.msk.f32.vlgmr.msra.gmra.mxu1 %vm1457_vm2, %v3426_v52 }
 0xc44   : > { %5180 = vmatprep.mubr.msk.f32.mxu1 %vm5820_vm0, %v5819_v43 }
 0xc47   : > { %5181 = vmatmul.mubr.msk.f32.gmra.mxu1 %vm1457_vm2, %v3427_v28 }
 0xc48   : > { %5183 = vmatprep.mubr.msk.f32.mxu1 %vm5820_vm0, %v5819_v43  ;;  %v5474_v43 = vld [vmem:[#allocation5 + $0x70] sm:$0xff]  }
 0xc49   : > { %5188 = vmatprep.subr.bf16.mxu0 %v5474_v43 }
 0xc4a   : > { %5189 = vmatpush3.bf16.msra.mxu0 %v5474_v43  ;;  %v5493_v43 = vld [vmem:[#allocation7 + $0xb0] ss:$8 sps:$4 sm:$0xff]  }
 0xc4b   : > { %v5620_v13 = vpop.eup %5619  ;;  %5190 = vmatprep.subr.bf16.mxu0 %v5475_v27 }
 0xc4c   : > { %v3428_v12 = vmul.f32 %v5620_v13, %v6645_v48 }
 0xc4e   : > { %5184 = vmatmul.mubr.msk.f32.gmra.mxu1 %vm1457_vm2, %v3428_v12  ;;  %5191 = vmatpush3.bf16.msra.mxu0 %v5475_v27  ;;  %v5496_v27 = vld [vmem:[#allocation7 + $0xa0] ss:$8 sps:$4 sm:$0xff]  }
 0xc4f   : > { %4109 = vmatprep.mubr.bf16.mxu1 %v5814_v1  ;;  %5192 = vmatprep.subr.bf16.mxu0 %v5476_v31 }
 0xc52   : > { %5193 = vmatpush3.bf16.msra.mxu0 %v5476_v31  ;;  %v5504_v31 = vld [vmem:[#allocation7 + $0x84] ss:$8 sps:$4 sm:$0xff]  }
 0xc53   : > { %5194 = vmatprep.subr.bf16.mxu0 %v5477_v29 }
 0xc56   : > { %5195 = vmatpush3.bf16.msra.mxu0 %v5477_v29  ;;  %v5506_v29 = vld [vmem:[#allocation8 + $0xb8] sm:$0xff]  }
 0xc57   : > { %5196 = vmatprep.subr.bf16.mxu0 %v5478_v51 }
 0xc5a   : > { %5197 = vmatpush3.bf16.msra.mxu0 %v5478_v51  ;;  %v5507_v51 = vld [vmem:[#allocation8 + $0xf0] sm:$0xff]  }
 0xc5b   : > { %5198 = vmatprep.subr.bf16.mxu0 %v5479_v37 }
 0xc5e   : > { %5199 = vmatpush3.bf16.msra.mxu0 %v5479_v37  ;;  %v5510_v37 = vld [vmem:[#allocation8 + $0xa8] sm:$0xff]  }
 0xc5f   : > { %5200 = vmatprep.subr.bf16.mxu0 %v5480_v56 }
 0xc62   : > { %5201 = vmatpush3.bf16.msra.mxu0 %v5480_v56  ;;  %v5512_v56 = vld [vmem:[#allocation8 + $0xa0] sm:$0xff]  }
 0xc99   : > { %v6702_v18 = vpop.f32.mrf.mxu0 }
 0xc9b   : > { %v5134_v32 = vpop.f32.mrf.mxu0 }
 0xc9c   : > { %v5481_v32 = vld [vmem:[#allocation7 + $0xf0] ss:$8 sps:$4 sm:$0xff]  }
 0xc9d   : > { %v6704_v33 = vpop.f32.mrf.mxu0 }
 0xc9f   : > { %v5137_v34 = vpop.f32.mrf.mxu0 }
 0xca0   : > { %v5484_v34 = vld [vmem:[#allocation7 + $0xe0] ss:$8 sps:$4 sm:$0xff]  }
 0xca1   : > { %v6706_v35 = vpop.f32.mrf.mxu0 }
 0xca3   : > { %v5140_v3 = vpop.f32.mrf.mxu0 }
 0xca4   : > { %v5489_v3 = vld [vmem:[#allocation7 + $0xd4] ss:$8 sps:$4 sm:$0xff]  }
 0xcc0   : > { %v3593_v36 = vpop.f32.mrf.mxu1 }
 0xcc2   : > { %v5149_v39 = vpop.f32.mrf.mxu1 }
 0xcc3   : > { %v5490_v39 = vld [vmem:[#allocation7 + $0xc0] ss:$8 sps:$4 sm:$0xff]  }
 0xcd1   : > { %v3598_v42 = vpop.f32.mrf.mxu1 }
 0xcd2   : > { %v5345_v38 = vpack.i.bf16 %v3598_v42, %v3593_v36  ;;  %v5487_v36 = vld [vmem:[#allocation7 + $0xd0] ss:$8 sps:$4 sm:$0xff]   ;;  %v5498_v42 = vld [vmem:[#allocation7 + $0xa4] ss:$8 sps:$4 sm:$0xff]  }
 0xcd3   : > { %v5152_v47 = vpop.f32.mrf.mxu1 }
 0xcd4   : > { %5346 = vrot.lane.b32.xlu1 %v5345_v38, %s5822_s15  ;;  %v5501_v38 = vld [vmem:[#allocation7 + $0x94] ss:$8 sps:$4 sm:$0xff]   ;;  %v5499_v47 = vld [vmem:[#allocation7 + $0x90] ss:$8 sps:$4 sm:$0xff]  }
 0xcd9   : > { %v3603_v48 = vpop.f32.mrf.mxu1 }
 0xcda   : > { %3792 = vrot.lane.b32.xlu0 %v3603_v48, %s5822_s15  ;;  %v5502_v48 = vld [vmem:[#allocation7 + $0x80] ss:$8 sps:$4 sm:$0xff]   ;;  %s5214_s15 = smul.u32 384, %s5923_s17  ;;  %s6775_s17 = scalar_lea.sflag [#allocation4], %s517_s22 }
 0xcdb   : > { %v5155_v44 = vpop.f32.mrf.mxu1 }
 0xcdc   : > { %v5505_v44 = vld [vmem:[#allocation8 + $0xf8] sm:$0xff]   ;;  %s6771_s20 = scalar_lea.hbm %s6829_s14, %s5214_s15 }
 0xcdd   : > { %4858 = vmatprep.subr.bf16.mxu0 %v5505_v44  ;;  %v5516_v44 = vld [vmem:[#allocation8 + $0x90] sm:$0xff]  }
 0xcf9   : > { %v3682_v9 = vpop.f32.mrf.mxu0 }
 0xcfb   : > { %v5164_v14 = vpop.f32.mrf.mxu0 }
 0xcfc   : > { %v5509_v14 = vld [vmem:[#allocation8 + $0xe8] sm:$0xff]  }
 0xcfd   : > { %v3687_v55 = vpop.f32.mrf.mxu0 }
 0xcfe   : > { %v5350_v57 = vpack.i.bf16 %v3687_v55, %v3682_v9  ;;  %v5508_v9 = vld [vmem:[#allocation8 + $0xb0] sm:$0xff]   ;;  %v5511_v55 = vld [vmem:[#allocation8 + $0xe0] sm:$0xff]  }
 0xcff   : > { %v5167_v17 = vpop.f32.mrf.mxu0 }
 0xd00   : > { %5351 = vrot.lane.b32.xlu1 %v5350_v57, %s5823_s26  ;;  %v5513_v57 = vld [vmem:[#allocation8 + $0xd8] sm:$0xff]  }
 0xd01   : > { %v3692_v53 = vpop.f32.mrf.mxu0  ;;  %v5514_v17 = vld [vmem:[#allocation8 + $0x98] sm:$0xff]  }
 0xd02   : > { %3804 = vrot.lane.b32.xlu0 %v3692_v53, %s5823_s26  ;;  %s519_s26 = scalar_lea.vmem [#allocation10], %s5212_s25  ;;  %s5824_s25 = smov [#allocation10]  }
 0xd03   : > { %v3771_v50 = vpop.f32.mrf.mxu1  ;;  %v5170_v24 = vpop.f32.mrf.mxu0  ;;  %s4355_s18 = sshll.u32 %s519_s26, 4  ;;  %s5733_s28 = sshll.u32 %s5824_s25, 4  ;;  %s6773_s18 = int_to_ptr.vmem [resolvable:$true] %s4355_s18  ;;  %s5734_s28 = int_to_ptr.vmem [resolvable:$false] %s5733_s28 }
 0xd04   : > { %v4645_v24 = vld [vmem:[%s6820_s5 + $0x1] ss:$0 sm:$0xff]  ;;  %s5729_s27 = scalar_lea.vmem %s6773_s18, 384  ;;  %p5736_p4 = scmp.lt.s32.totalorder %s6773_s18, %s5734_s28 }
 0xd05   : > { %v5179_v58 = vpop.f32.mrf.mxu1  ;;  %p5730_p9 = scmp.ne.s32.totalorder %s6773_s18, %s5729_s27 }
 0xd07   : > { %v3776_v10 = vpop.f32.mrf.mxu1  ;;  %p5731_p12 = pnand %p5730_p9, %p5940_p5 }
 0xd08   : > { %v5355_v59 = vpack.i.bf16 %v3776_v10, %v3771_v50 }
 0xd09   : > { %v5182_v62 = vpop.f32.mrf.mxu1  ;;  %p5732_p13 = pneg %p5731_p12 }
 0xd0a   : > { %5356 = vrot.lane.b32.xlu1 %v5355_v59, %s5821_s21 }
 0xd0e   : > { %v3781_v0 = vpop.f32.mrf.mxu1 }
 0xd0f   : > { %3816 = vrot.lane.b32.xlu0 %v3781_v0, %s5821_s21  ;;  %s5735_s21 = scalar_lea.vmem %s5734_s28, 768 }
 0xd10   : > { %v5185_v54 = vpop.f32.mrf.mxu1  ;;  %p5737_p7 = scmp.lt.s32.totalorder %s5735_s21, %s5729_s27 }
 0xd12   : > { %p5738_p8 = por %p5737_p7, %p5736_p4 }
 0xd14   : > { %p5739_p11 = pnand %p5738_p8, %p5732_p13 }
 0xd46   : > { %v5347_v45 = vpop.permute.xlu1 %5346 }
 0xd47   : > { %v5349_v23 = vunpack.i.h.bf16 %v5347_v45  ;;  %v5348_v40 = vunpack.i.l.bf16 %v5347_v45 }
 0xd49   : > { %v3821_v63 = vsel %vm1076_vm1, %v6702_v18, %v5348_v40  ;;  %v3822_v8 = vsel %vm1076_vm1, %v6704_v33, %v5349_v23  ;;  %v5483_v18 = vld [vmem:[#allocation7 + $0xf4] ss:$8 sps:$4 sm:$0xff]   ;;  %v5486_v33 = vld [vmem:[#allocation7 + $0xe4] ss:$8 sps:$4 sm:$0xff]  }
 0xd4a   : > { %4077 = vmatprep.subr.bf16.mxu1 %v5483_v18 }
 0xd4b   : > { %4078 = vmatpush1.bf16.msra.mxu1 %v5481_v32 }
 0xd4c   : > { %v3793_v4 = vpop.permute.xlu0 %3792  ;;  %4079 = vmatprep.subr.bf16.mxu1 %v5486_v33  ;;  %v4654_v33 = vld [vmem:[%s6821_s6 + $0x1] ss:$0 sm:$0xff] }
 0xd4d   : > { %v3823_v52 = vsel %vm1076_vm1, %v6706_v35, %v3793_v4  ;;  %v5492_v35 = vld [vmem:[#allocation7 + $0xc4] ss:$8 sps:$4 sm:$0xff]  }
 0xd4f   : > { %4080 = vmatpush1.bf16.msra.mxu1 %v5484_v34 }
 0xd50   : > { %4081 = vmatprep.subr.bf16.mxu1 %v5489_v3 }
 0xd53   : > { %4082 = vmatpush1.bf16.msra.mxu1 %v5487_v36  ;;  %v4655_v36 = vld [vmem:[%s6822_s7 + $0x1] ss:$0 sm:$0xff] }
 0xd54   : > { %4083 = vmatprep.subr.bf16.mxu1 %v5492_v35 }
 0xd57   : > { %4084 = vmatpush1.bf16.msra.mxu1 %v5490_v39 }
 0xd58   : > { %4085 = vmatprep.subr.bf16.mxu1 %v5495_v30 }
 0xd5b   : > { %4086 = vmatpush1.bf16.msra.mxu1 %v5493_v43 }
 0xd5c   : > { %4087 = vmatprep.subr.bf16.mxu1 %v5498_v42 }
 0xd5f   : > { %4088 = vmatpush1.bf16.msra.mxu1 %v5496_v27 }
 0xd60   : > { %4089 = vmatprep.subr.bf16.mxu1 %v5501_v38 }
 0xd63   : > { %4090 = vmatpush1.bf16.msra.mxu1 %v5499_v47 }
 0xd64   : > { %4091 = vmatprep.subr.bf16.mxu1 %v5504_v31 }
 0xd67   : > { %4092 = vmatpush1.bf16.msra.mxu1 %v5502_v48  ;;  %v5515_v48 = vld [vmem:[#allocation8 + $0xd0] sm:$0xff]  }
 0xd72   : > { %v5352_v2 = vpop.permute.xlu1 %5351 }
 0xd73   : > { %v5354_v49 = vunpack.i.h.bf16 %v5352_v2  ;;  %v5353_v5 = vunpack.i.l.bf16 %v5352_v2 }
 0xd74   : > { %v3805_v16 = vpop.permute.xlu0 %3804 }
 0xd75   : > { %v3825_v20 = vsel %vm1985_vm3, %v3822_v8, %v5354_v49  ;;  %v3824_v21 = vsel %vm1985_vm3, %v3821_v63, %v5353_v5  ;;  %v3826_v26 = vsel %vm1985_vm3, %v3823_v52, %v3805_v16 }
 0xd7c   : > { %v5357_v7 = vpop.permute.xlu1 %5356 }
 0xd7d   : > { %v5359_v11 = vunpack.i.h.bf16 %v5357_v7  ;;  %v5358_v19 = vunpack.i.l.bf16 %v5357_v7 }
 0xd7f   : > { %v3827_v22 = vsel %vm1989_vm4, %v3824_v21, %v5358_v19  ;;  %v3828_v25 = vsel %vm1989_vm4, %v3825_v20, %v5359_v11 }
 0xd80   : > { %v3830_v15 = vpack.c.bf16 %v3828_v25, %v3827_v22 }
 0xd81   : > { %v3817_v28 = vpop.permute.xlu0 %3816 }
 0xd82   : > { %v3829_v13 = vsel %vm1989_vm4, %v3826_v26, %v3817_v28  ;;  %5202 = vmatprep.mubr.bf16.mxu0 %v3830_v15 }
 0xd83   : > { %v3831_v12 = vpack.c.bf16 %v3829_v13, %v3829_v13 }
 0xd85   : > { %5203 = vmatmul.mubr.bf16.vlgmr.msra.gmra.mxu0 %v3831_v12 }
 0xd86   : > { %4859 = vmatpush3.bf16.msra.mxu0 %v5506_v29  ;;  %v5517_v29 = vld [vmem:[#allocation8 + $0xc8] sm:$0xff]  }
 0xd87   : > { %4860 = vmatprep.subr.bf16.mxu0 %v5507_v51  ;;  %v5518_v51 = vld [vmem:[#allocation8 + $0x88] sm:$0xff]  }
 0xd8a   : > { %4861 = vmatpush3.bf16.msra.mxu0 %v5508_v9  ;;  %v5519_v9 = vld [vmem:[#allocation8 + $0xc0] sm:$0xff]  }
 0xd8b   : > { %4862 = vmatprep.subr.bf16.mxu0 %v5509_v14  ;;  %v5520_v14 = vld [vmem:[#allocation8 + $0x80] sm:$0xff]  }
 0xd8e   : > { %4863 = vmatpush3.bf16.msra.mxu0 %v5510_v37 }
 0xd8f   : > { %4864 = vmatprep.subr.bf16.mxu0 %v5511_v55 }
 0xd92   : > { %4865 = vmatpush3.bf16.msra.mxu0 %v5512_v56 }
 0xd93   : > { %4866 = vmatprep.subr.bf16.mxu0 %v5513_v57 }
 0xd96   : > { %4867 = vmatpush3.bf16.msra.mxu0 %v5514_v17 }
 0xd97   : > { %4868 = vmatprep.subr.bf16.mxu0 %v5515_v48 }
 0xd9a   : > { %4869 = vmatpush3.bf16.msra.mxu0 %v5516_v44 }
 0xd9b   : > { %4870 = vmatprep.subr.bf16.mxu0 %v5517_v29 }
 0xd9e   : > { %4871 = vmatpush3.bf16.msra.mxu0 %v5518_v51 }
 0xd9f   : > { %4872 = vmatprep.subr.bf16.mxu0 %v5519_v9 }
 0xda2   : > { %4873 = vmatpush3.bf16.msra.mxu0 %v5520_v14 }
 0xe45   : > { %v5204_v53 = vpop.f32.mrf.mxu0 }
 0xe46   : > { %v3929_v62 = vadd.f32 %v5204_v53, %v4645_v24 }
 0xe47   : > { %v3920_v50 = vpop.f32.mrf.mxu0 }
 0xe48   : > { %v3921_v10 = vadd.f32 %v4645_v24, %v3920_v50  ;;  %v3936_v2 = vadd.f32 %v3929_v62, %v6419_v60 }
 0xe49   : > { %v5205_v58 = vpop.f32.mrf.mxu0 }
 0xe4a   : > { %v3934_v54 = vadd.f32 %v3921_v10, %v6421_v6 }
 0xe4b   : > { %v3923_v59 = vpop.f32.mrf.mxu0 }
 0xe4c   : > { %v3924_v0 = vadd.f32 %v4645_v24, %v3923_v59 }
 0xe4e   : > { %v3935_v45 = vadd.f32 %v3924_v0, %v6423_v61 }
 0xe50   : > { %v3937_v23 = vadd.f32 %v3935_v45, %v3934_v54 }
 0xe52   : > { %v3938_v40 = vadd.f32 %v3937_v23, %v3936_v2 }
 0xe54   : > { %v3939_v4 = vrot.slane %v3938_v40, 4 }
 0xe56   : > { %v3940_v49 = vadd.f32 %v3939_v4, %v3938_v40 }
 0xe58   : > { %v3941_v5 = vrot.slane %v3940_v49, 2 }
 0xe5a   : > { %v3942_v7 = vadd.f32 %v3941_v5, %v3940_v49 }
 0xe5c   : > { %v3943_v63 = vrot.slane %v3942_v7, 1 }
 0xe5e   : > { %v3944_v8 = vadd.f32 %v3943_v63, %v3942_v7 }
 0xe60   : > { %v3945_v16 = vmul.f32 0.041666668, %v3944_v8 }
 0xe62   : > { %v3946_v11 = vsub.f32 %v3934_v54, %v3945_v16  ;;  %v3947_v19 = vsub.f32 %v3935_v45, %v3945_v16  ;;  %v3948_v20 = vsub.f32 %v3936_v2, %v3945_v16 }
 0xe64   : > { %v3949_v21 = vmul.f32 %v3946_v11, %v3946_v11  ;;  %v3950_v22 = vmul.f32 %v3947_v19, %v3947_v19  ;;  %v3951_v25 = vmul.f32 %v3948_v20, %v3948_v20 }
 0xe66   : > { %v3952_v6 = vadd.f32 %v3950_v22, %v3949_v21  ;;  %v4672_v21 = vld [vmem:[%s6826_s11 + $0x1] ss:$0 sm:$0xff] }
 0xe68   : > { %v3953_v52 = vadd.f32 %v3952_v6, %v3951_v25 }
 0xe6a   : > { %v3954_v61 = vrot.slane %v3953_v52, 4 }
 0xe6c   : > { %v3955_v15 = vadd.f32 %v3954_v61, %v3953_v52 }
 0xe6e   : > { %v3956_v60 = vrot.slane %v3955_v15, 2 }
 0xe70   : > { %v3957_v26 = vadd.f32 %v3956_v60, %v3955_v15 }
 0xe72   : > { %v3958_v28 = vrot.slane %v3957_v26, 1 }
 0xe74   : > { %v3959_v13 = vadd.f32 %v3958_v28, %v3957_v26 }
 0xe76   : > { %v3960_v12 = vmul.f32 0.041666668, %v3959_v13 }
 0xe78   : > { %v3961_v18 = vadd.f32 1e-05, %v3960_v12 }
 0xe7a   : > { %5621 = vrsqrt.f32 %v3961_v18 }
 0xe87   : > { %v5622_v32 = vpop.eup %5621 }
 0xe88   : > { %v3963_v34 = vmul.f32 %v5622_v32, %v3946_v11  ;;  %v3964_v3 = vmul.f32 %v5622_v32, %v3947_v19  ;;  %v3965_v30 = vmul.f32 %v5622_v32, %v3948_v20 }
 0xe8a   : > { %v3972_v35 = vmul.f32 %v4654_v33, %v3963_v34  ;;  %v3973_v39 = vmul.f32 %v4654_v33, %v3964_v3  ;;  %v3974_v38 = vmul.f32 %v4654_v33, %v3965_v30 }
 0xe8c   : > { %v6738_v43 = vadd.f32 %v4655_v36, %v3973_v39  ;;  %v6740_v42 = vadd.f32 %v4655_v36, %v3972_v35  ;;  %v6745_v47 = vadd.f32 %v4655_v36, %v3974_v38 }
 0xe8e   : > { %v3984_v27 = vpack.c.bf16 %v6738_v43, %v6740_v42  ;;  %v3985_v31 = vpack.c.bf16 %v6745_v47, %v6745_v47 }
 0xe90   : > { %4110 = vmatmul.mubr.bf16.vlgmr.msra.gmra.mxu1 %v3984_v27 }
 0xe91   : > { %4119 = vmatprep.mubr.bf16.mxu1 %v5814_v1  ;;  %v4581_v1 = vld [vmem:[%s6824_s9 + $0x2] sm:$0x3] }
 0xe92   : > { %v3994_v55 = vrot.slane %v4581_v1, %v6055_v46  ;;  %v3990_v56 = vrot.slane %v4581_v1, %v6049_v41 }
 0xe98   : > { %4120 = vmatmul.mubr.bf16.gmra.mxu1 %v3985_v31 }
 0xf50   : > { %v4111_v37 = vpop.f32.mrf.mxu1 }
 0xf51   : > { %v4112_v24 = vadd.f32 %v4111_v37, %v3990_v56 }
 0xf52   : > { %v4113_v57 = vpop.f32.mrf.mxu1 }
 0xf53   : > { %v4114_v53 = vadd.f32 %v4113_v57, %v3994_v55  ;;  %v4128_v45 = vmax.f32 %v4112_v24, 0.0 }
 0xf54   : > { %v4115_v17 = vpop.f32.mrf.mxu1 }
 0xf55   : > { %v4116_v50 = vadd.f32 %v4115_v17, %v3990_v56  ;;  %v4129_v0 = vmax.f32 %v4114_v53, 0.0 }
 0xf56   : > { %v4117_v58 = vpop.f32.mrf.mxu1 }
 0xf57   : > { %v4118_v10 = vadd.f32 %v4117_v58, %v3994_v55  ;;  %v4130_v59 = vmax.f32 %v4116_v50, 0.0  ;;  %v4689_v50 = vld [vmem:[%s6827_s12 + $0x1] ss:$0 sm:$0xff] }
 0xf58   : > { %v4121_v62 = vpop.f32.mrf.mxu1 }
 0xf59   : > { %v4131_v54 = vmax.f32 %v4118_v10, 0.0  ;;  %v4134_v4 = vpack.c.bf16 %v4130_v59, %v4128_v45  ;;  %v4122_v49 = vadd.f32 %v4121_v62, %v3990_v56  ;;  %v4690_v59 = vld [vmem:[%s6828_s13 + $0x1] ss:$0 sm:$0xff] }
 0xf5a   : > { %v4123_v2 = vpop.f32.mrf.mxu1 }
 0xf5b   : > { %v4135_v23 = vpack.c.bf16 %v4131_v54, %v4129_v0  ;;  %v4124_v40 = vadd.f32 %v4123_v2, %v3994_v55  ;;  %v4132_v63 = vmax.f32 %v4122_v49, 0.0 }
 0xf5c   : > { %v4125_v46 = vpop.f32.mrf.mxu1 }
 0xf5d   : > { %v4133_v5 = vmax.f32 %v4124_v40, 0.0  ;;  %4272 = vmatprep.mubr.bf16.mxu0 %v4135_v23  ;;  %v4136_v8 = vpack.c.bf16 %v4132_v63, %v4132_v63 }
 0xf5e   : > { %v4126_v41 = vpop.f32.mrf.mxu1  ;;  %4273 = vmatmul.mubr.bf16.vlgmr.msra.gmra.mxu0 %v4134_v4 }
 0xf5f   : > { %v4137_v7 = vpack.c.bf16 %v4133_v5, %v4133_v5 }
 0xf61   : > { %4280 = vmatprep.mubr.bf16.mxu0 %v4137_v7 }
 0xf66   : > { %4281 = vmatmul.mubr.bf16.gmra.mxu0 %v4136_v8 }
0x101e   : > { %v4874_v16 = vpop.f32.mrf.mxu0 }
0x1020   : > { %v4875_v11 = vpop.f32.mrf.mxu0 }
0x1021   : > { %v4876_v20 = vadd.f32 %v4875_v11, %v4874_v16 }
0x1022   : > { %v4877_v19 = vpop.f32.mrf.mxu0 }
0x1023   : > { %v4275_v52 = vadd.f32 %v4876_v20, %v4672_v21 }
0x1024   : > { %v4878_v22 = vpop.f32.mrf.mxu0 }
0x1025   : > { %v4879_v25 = vadd.f32 %v4878_v22, %v4877_v19  ;;  %v4288_v13 = vadd.f32 %v4275_v52, %v6740_v42 }
0x1026   : > { %v4880_v6 = vpop.f32.mrf.mxu0 }
0x1027   : > { %v4278_v61 = vadd.f32 %v4879_v25, %v4672_v21 }
0x1028   : > { %v4881_v15 = vpop.f32.mrf.mxu0 }
0x1029   : > { %v4289_v60 = vadd.f32 %v4278_v61, %v6738_v43  ;;  %v4882_v26 = vadd.f32 %v4881_v15, %v4880_v6 }
0x102a   : > { %v4883_v28 = vpop.f32.mrf.mxu0 }
0x102b   : > { %v4283_v12 = vadd.f32 %v4882_v26, %v4672_v21  ;;  %v4291_v32 = vadd.f32 %v4289_v60, %v4288_v13 }
0x102c   : > { %v4884_v18 = vpop.f32.mrf.mxu0 }
0x102d   : > { %v4290_v33 = vadd.f32 %v4283_v12, %v6745_v47 }
0x102f   : > { %v4292_v34 = vadd.f32 %v4291_v32, %v4290_v33 }
0x1031   : > { %v4293_v3 = vrot.slane %v4292_v34, 4 }
0x1033   : > { %v4294_v36 = vadd.f32 %v4293_v3, %v4292_v34 }
0x1035   : > { %v4295_v35 = vrot.slane %v4294_v36, 2 }
0x1037   : > { %v4296_v39 = vadd.f32 %v4295_v35, %v4294_v36 }
0x1039   : > { %v4297_v30 = vrot.slane %v4296_v39, 1 }
0x103b   : > { %v4298_v27 = vadd.f32 %v4297_v30, %v4296_v39 }
0x103d   : > { %v4299_v38 = vmul.f32 0.041666668, %v4298_v27 }
0x103f   : > { %v4300_v31 = vsub.f32 %v4288_v13, %v4299_v38  ;;  %v4301_v48 = vsub.f32 %v4289_v60, %v4299_v38  ;;  %v4302_v43 = vsub.f32 %v4290_v33, %v4299_v38 }
0x1041   : > { %v4303_v44 = vmul.f32 %v4300_v31, %v4300_v31  ;;  %v4304_v29 = vmul.f32 %v4301_v48, %v4301_v48  ;;  %v4305_v42 = vmul.f32 %v4302_v43, %v4302_v43 }
0x1043   : > { %v4306_v51 = vadd.f32 %v4304_v29, %v4303_v44 }
0x1045   : > { %v4307_v9 = vadd.f32 %v4306_v51, %v4305_v42 }
0x1047   : > { %v4308_v14 = vrot.slane %v4307_v9, 4 }
0x1049   : > { %v4309_v47 = vadd.f32 %v4308_v14, %v4307_v9 }
0x104b   : > { %v4310_v1 = vrot.slane %v4309_v47, 2 }
0x104d   : > { %v4311_v37 = vadd.f32 %v4310_v1, %v4309_v47 }
0x104f   : > { %v4312_v55 = vrot.slane %v4311_v37, 1 }
0x1051   : > { %v4313_v56 = vadd.f32 %v4312_v55, %v4311_v37 }
0x1053   : > { %v4314_v57 = vmul.f32 0.041666668, %v4313_v56 }
0x1055   : > { %v4315_v17 = vadd.f32 1e-05, %v4314_v57 }
0x1057   : > { %5623 = vrsqrt.f32 %v4315_v17 }
0x1064   : > { %v5624_v53 = vpop.eup %5623 }
0x1065   : > { %v4317_v24 = vmul.f32 %v5624_v53, %v4300_v31  ;;  %v4318_v58 = vmul.f32 %v5624_v53, %v4301_v48  ;;  %v4319_v10 = vmul.f32 %v5624_v53, %v4302_v43 }
0x1067   : > { %v4326_v62 = vmul.f32 %v4689_v50, %v4317_v24  ;;  %v4327_v0 = vmul.f32 %v4689_v50, %v4318_v58  ;;  %v4328_v54 = vmul.f32 %v4689_v50, %v4319_v10 }
0x1069   : > { %v4335_v45 = vadd.f32 %v4690_v59, %v4326_v62  ;;  %v4336_v2 = vadd.f32 %v4690_v59, %v4327_v0  ;;  %v4337_v23 = vadd.f32 %v4690_v59, %v4328_v54 }
0x106b   : > { %4340 = vst [vmem:[%s519_s26 + $0x10] sm:$0xff] %v4337_v23  ;;  %4338 = vst [vmem:[%s519_s26] sm:$0xff] %v4335_v45 }
0x106c   : > { %4339 = vst [vmem:[%s519_s26 + $0x8] sm:$0xff] %v4336_v2 }
0x106d   : > { %5742 = shalt.err (!%p5739_p11)
}
0x106e   : > { %s5743_s22 = scalar_lea.hbm %s6771_s20, 384  ;;  %s5747_s19 = scalar_lea.hbm %s6829_s14, 768 }
0x106f   : > { %p5744_p0 = scmp.ne.s32.totalorder %s6771_s20, %s5743_s22  ;;  %p5748_p3 = scmp.lt.s32.totalorder %s6771_s20, %s6829_s14 }
0x1070   : > { %p5749_p10 = scmp.lt.s32.totalorder %s5747_s19, %s5743_s22 }
0x1071   : > { %p5745_p1 = pnand %p5744_p0, %p5940_p5 }
0x1072   : > { %p5750_p9 = por %p5749_p10, %p5748_p3 }
0x1073   : > { %p5746_p2 = pneg %p5745_p1 }
0x1075   : > { %p5751_p12 = pnand %p5750_p9, %p5746_p2 }
0x1077   : > { %5754 = shalt.err (!%p5751_p12)
}
0x1078   : > { %s5825_s24 = smov 128   ;;  %s5826_s27 = smov 8  }
0x1079   : > { %5231 = dma.vmem_to_hbm [thread:$0]  (%p5940_p5), %s6773_s18, 384, %s6771_s20, %s6775_s17, %s5825_s24, %s5825_s24, %s5826_s27  }
0x107a PF: > { %s6848_s25 = sld [smem:[#allocation17_spill]] }
0x107b   : > { %s6849_s28 = sld [smem:[#allocation15_spill]] }
0x1080   : > { %p5258_p13 = scmp.ge.s32.totalorder %s6848_s25, 2 }
0x1081   : > { %s4370_s15 = sand.u32 1, %s6849_s28  }
0x1082   : > { %p5247_p4 = pnand %p5258_p13, %p5944_p6  ;;  %s4371_s22 = scalar_lea.sflag [#allocation4], %s4370_s15 }
0x1084   : > { %p5248_p7 = pneg %p5247_p4 }
0x1086   : > { %5784 = dma.done.wait (%p5248_p7), %s4371_s22, 384  }
0x1087   : > { %5786 = vsyncadd (%p5248_p7), %s4371_s22, 4294966912  ;;  %s6851_s16 = sld [smem:[#allocation18_spill]]  ;;  %s6854_s29 = smov %s5793_s30 }
0x1088   : > { %s6852_s26 = sld [smem:[#allocation16_spill]] }
0x1089   : > { %s6853_s15 = sld [smem:[#allocation19_spill]] }
0x108d   : > { %p27_p8 = scmp.ge.s32.totalorder %s6851_s16, 4  }
0x108e   : > { %s6855_s30 = smov %s6852_s26 }
0x108f   :  { %29 = sbr.rel (!%p27_p8) target bundleno = 6 (0x6), region = 139 }
0x1094   :  { %4376 = vsyncpa [#allocation3], 1 }
0x1095   :  { %4378 = vsyncpa [#allocation3 + $0x1], 1 }
0x1096   :  { %4379 = vsyncpa [#allocation6], 1 }
0x1097   :  { %4380 = vsyncpa [#allocation9], 1 }
0x1098   :  { %4381 = vsyncpa [#allocation4], 1 }
0x1099   :  { %4383 = vsyncpa [#allocation4 + $0x1], 1 }

</bundles_post_ra>
